<compile_context>
chip_gen: v5e
topology: v5e:2x2
jax: 0.10.0
libtpu: 0.0.40
codegen_flags: <defaults>
</compile_context>

<pallas_src>
import jax
import jax.numpy as jnp
from jax.experimental import pallas as pl
from jax.experimental.pallas import tpu as pltpu


_LANE = 128                      # rays per output lane-row (dense, unmasked vst)
_BLOCK_ROWS = 2048               # rows of _LANE rays per grid step (~256K rays)
_MIN_PALLAS_RAYS = 1 << 16       # below this, plain XLA beats fixed kernel cost
_VMEM_LIMIT = 48 * 1024 * 1024   # under v7x's 64 MiB/TC; plenty on v5e/v6e


def _lambertian_kernel(rd_ref, sn_ref, sel_ref, o_ref):
    # rd_ref, sn_ref: (TR, D*_LANE) AoS tiles (D components interleaved along
    # lanes); sel_ref: (D*_LANE, _LANE) constant 0/1 selection matrix (block
    # index is constant -> stays resident in VMEM); o_ref: (TR, _LANE).
    #
    # Elementwise product on the VPU, f32 in-register (casts fuse into the
    # multiply; no separate full-block upcast temporaries).
    p = rd_ref[...].astype(jnp.float32) * sn_ref[...].astype(jnp.float32)
    # Stride-D grouped lane reduction on the MXU: s[t, k] = sum_c p[t, D*k+c].
    # precision=HIGHEST keeps f32 accumulation exact (S is exactly 0/1), and
    # the matmul is small enough to hide under the step's HBM DMA on all gens.
    s = jnp.dot(p, sel_ref[...],
                preferred_element_type=jnp.float32,
                precision=jax.lax.Precision.HIGHEST)
    o_ref[...] = jnp.clip(-s, 0.0, 1.0).astype(o_ref.dtype)


def lambertian_shader_pallas(ray_directions, surface_normals):
    assert ray_directions.shape == surface_normals.shape
    orig_shape = ray_directions.shape
    d = orig_shape[-1]
    lead_shape = orig_shape[:-1]
    out_dtype = ray_directions.dtype

    m = 1
    for s in lead_shape:
        m *= s

    if m == 0:  # empty ray bundle
        return jnp.zeros(lead_shape + (1,), dtype=out_dtype)

    rd_flat = ray_directions.reshape(m, d)
    sn_flat = surface_normals.reshape(m, d)

    if m < _MIN_PALLAS_RAYS:
        # Small bundle: a single fused XLA expression already reads/writes the
        # minimum bytes; kernel launch + reshape overhead would dominate here.
        s = jnp.sum(rd_flat.astype(jnp.float32) * sn_flat.astype(jnp.float32),
                    axis=-1)
        out = jnp.clip(-s, 0.0, 1.0).astype(out_dtype)
        return out.reshape(*lead_shape, 1)

    m_main = (m // _LANE) * _LANE      # >= 65408 here, so r >= 511 rows
    r = m_main // _LANE
    pieces = []

    # --- main body: Pallas kernel over lane-dense AoS blocks ----------------
    # (m_main, D) -> (r, D*_LANE): free, contiguous; NO transpose pass.
    rd_aos = rd_flat[:m_main].reshape(r, d * _LANE)
    sn_aos = sn_flat[:m_main].reshape(r, d * _LANE)

    # Constant 0/1 selection matrix: sel[j, k] = 1 iff j // D == k.
    sel = (jnp.arange(d * _LANE, dtype=jnp.int32)[:, None] // d
           == jnp.arange(_LANE, dtype=jnp.int32)[None, :]).astype(jnp.float32)

    # Rows per grid step: at most _BLOCK_ROWS, but always >= 2 grid steps so
    # both of v7x's TensorCores get work on the "parallel" axis.
    tr = min(_BLOCK_ROWS, ((pl.cdiv(r, 2) + 7) // 8) * 8)
    grid = (pl.cdiv(r, tr),)   # ragged last block is clamped by Pallas

    elt = ray_directions.dtype.itemsize
    cost = pl.CostEstimate(
        flops=2 * m_main * d * _LANE + 2 * d * m_main,
        transcendentals=0,
        bytes_accessed=(2 * d * m_main * elt
                        + m_main * out_dtype.itemsize
                        + sel.size * 4))

    out_main = pl.pallas_call(
        _lambertian_kernel,
        out_shape=jax.ShapeDtypeStruct((r, _LANE), out_dtype),
        grid=grid,
        in_specs=[
            pl.BlockSpec((tr, d * _LANE), lambda i: (i, 0)),
            pl.BlockSpec((tr, d * _LANE), lambda i: (i, 0)),
            pl.BlockSpec((d * _LANE, _LANE), lambda i: (0, 0)),  # resident
        ],
        out_specs=pl.BlockSpec((tr, _LANE), lambda i: (i, 0)),
        compiler_params=pltpu.CompilerParams(
            dimension_semantics=("parallel",),
            vmem_limit_bytes=_VMEM_LIMIT),
        cost_estimate=cost,
    )(rd_aos, sn_aos, sel)
    pieces.append(out_main.reshape(m_main))

    # --- ragged tail (< _LANE rays): pure JAX, same f32 math ----------------
    if m_main < m:
        t_rd = rd_flat[m_main:].astype(jnp.float32)
        t_sn = sn_flat[m_main:].astype(jnp.float32)
        tail = jnp.clip(-jnp.sum(t_rd * t_sn, axis=-1), 0.0, 1.0)
        pieces.append(tail.astype(out_dtype))

    out = pieces[0] if len(pieces) == 1 else jnp.concatenate(pieces)
    return out.reshape(*lead_shape, 1)


def _reference(ray_directions, surface_normals):
    s = jnp.sum(ray_directions * surface_normals, axis=-1)
    return jnp.clip(-s, 0.0, 1.0)[..., None]


if __name__ == "__main__":
    key = jax.random.PRNGKey(0)
    k1, k2, k3, k4 = jax.random.split(key, 4)

    def _unit(x):
        return x / jnp.linalg.norm(x, axis=-1, keepdims=True)

    # 1) Bundle large enough to exercise the Pallas kernel path, with a ragged
    #    ray count so the pure-JAX tail is covered too (2*131*257 = 67334 rays).
    shape = (2, 131, 257, 3)
    rd = _unit(jax.random.normal(k1, shape, dtype=jnp.float32))
    sn = _unit(jax.random.normal(k2, shape, dtype=jnp.float32))
    out = jax.block_until_ready(lambertian_shader_pallas(rd, sn))
    ref = _reference(rd, sn)
    assert out.shape == ref.shape == shape[:-1] + (1,), (out.shape, ref.shape)
    assert jnp.allclose(out, ref, atol=1e-5, rtol=1e-5), "mismatch vs reference"

    # 2) Small bundle consistent with the module's typical use (2 x 16 x 16
    #    image): uses the fused-XLA fallback where a kernel would only add
    #    launch overhead.
    shape2 = (2, 16, 16, 3)
    rd2 = _unit(jax.random.normal(k3, shape2, dtype=jnp.float32))
    sn2 = _unit(jax.random.normal(k4, shape2, dtype=jnp.float32))
    out2 = jax.block_until_ready(lambertian_shader_pallas(rd2, sn2))
    ref2 = _reference(rd2, sn2)
    assert out2.shape == ref2.shape == (2, 16, 16, 1), (out2.shape, ref2.shape)
    assert jnp.allclose(out2, ref2, atol=1e-6, rtol=1e-6), "mismatch (small)"

    print("KERNEL_OK")
</pallas_src>

<mosaic_0001>
module attributes {stable_mosaic.version = 11 : i64} {
  func.func @_lambertian_kernel(%arg0: i32, %arg1: memref<264x384xf32, #tpu.memory_space<vmem>>, %arg2: memref<264x384xf32, #tpu.memory_space<vmem>>, %arg3: memref<384x128xf32, #tpu.memory_space<vmem>>, %arg4: memref<264x128xf32, #tpu.memory_space<vmem>>) attributes {dimension_semantics = [#tpu.dimension_semantics<parallel>], iteration_bounds = array<i64: 2>, scalar_prefetch = 0 : i64, scratch_operands = 0 : i64, tpu.core_type = #tpu.core_type<tc>, window_params = [{transform_indices = @transform_0, window_bounds = array<i64: 264, 384>}, {transform_indices = @transform_1, window_bounds = array<i64: 264, 384>}, {pipeline_mode = #tpu.pipeline_mode<synchronous>, transform_indices = @transform_2, window_bounds = array<i64: 384, 128>}, {transform_indices = @transform_3, window_bounds = array<i64: 264, 128>}]} {
    %c0 = arith.constant 0 : index
    %c0_0 = arith.constant 0 : index
    %0 = vector.load %arg1[%c0, %c0_0] : memref<264x384xf32, #tpu.memory_space<vmem>>, vector<264x384xf32>
    %c0_1 = arith.constant 0 : index
    %c0_2 = arith.constant 0 : index
    %1 = vector.load %arg2[%c0_1, %c0_2] : memref<264x384xf32, #tpu.memory_space<vmem>>, vector<264x384xf32>
    %2 = arith.mulf %0, %1 : vector<264x384xf32>
    %c0_3 = arith.constant 0 : index
    %c0_4 = arith.constant 0 : index
    %3 = vector.load %arg3[%c0_3, %c0_4] : memref<384x128xf32, #tpu.memory_space<vmem>>, vector<384x128xf32>
    %cst = arith.constant dense<0.000000e+00> : vector<264x128xf32>
    %4 = tpu.matmul %2, %3, %cst {dimension_numbers = #tpu.dot_dimension_numbers<[1], [0], [0], [1], [0, 0, 1, 1], [], []>, precision = #tpu.contract_precision<fp32>} : vector<264x384xf32>, vector<384x128xf32>, vector<264x128xf32> -> vector<264x128xf32>
    %cst_5 = arith.constant 0.000000e+00 : f32
    %5 = vector.broadcast %cst_5 : f32 to vector<264x128xf32>
    %6 = arith.subf %5, %4 : vector<264x128xf32>
    %cst_6 = arith.constant 0.000000e+00 : f32
    %cst_7 = arith.constant 1.000000e+00 : f32
    %7 = vector.broadcast %cst_6 : f32 to vector<264x128xf32>
    %8 = arith.maximumf %7, %6 : vector<264x128xf32>
    %9 = vector.broadcast %cst_7 : f32 to vector<264x128xf32>
    %10 = arith.minimumf %9, %8 : vector<264x128xf32>
    %c0_8 = arith.constant 0 : index
    %c0_9 = arith.constant 0 : index
    %11 = vector.load %arg4[%c0_8, %c0_9] : memref<264x128xf32, #tpu.memory_space<vmem>>, vector<264x128xf32>
    tpu.vector_store %arg4[%c0_8, %c0_9], %10 {strides = array<i32>} : memref<264x128xf32, #tpu.memory_space<vmem>>, vector<264x128xf32>,
    return
  }
  func.func @transform_0(%arg0: i32) -> (i32, i32) {
    %c0_i32 = arith.constant 0 : i32
    %c0_i32_0 = arith.constant 0 : i32
    return %arg0, %c0_i32 : i32, i32
  }
  func.func @transform_1(%arg0: i32) -> (i32, i32) {
    %c0_i32 = arith.constant 0 : i32
    %c0_i32_0 = arith.constant 0 : i32
    return %arg0, %c0_i32 : i32, i32
  }
  func.func @transform_2(%arg0: i32) -> (i32, i32) {
    %c0_i32 = arith.constant 0 : i32
    %c0_i32_0 = arith.constant 0 : i32
    %c0_i32_1 = arith.constant 0 : i32
    return %c0_i32, %c0_i32_0 : i32, i32
  }
  func.func @transform_3(%arg0: i32) -> (i32, i32) {
    %c0_i32 = arith.constant 0 : i32
    %c0_i32_0 = arith.constant 0 : i32
    return %arg0, %c0_i32 : i32, i32
  }
}

</mosaic_0001>

<bundles_post_ra>
// kernel: tpu_custom_call.1
= control target key start
LH: loop header
LB: loop body
LE: loop exit
PB: predicated region body
PF: predicated region fallthrough
CT: control target
= control target key end

     0   :  { %s8240_s0 = inlined_call_operand.hbm [shape: f32[526,384], index: 0, kind: input, shape index: {}]   ;;  %s8241_s1 = inlined_call_operand.hbm [shape: f32[526,384], index: 1, kind: input, shape index: {}]   ;;  %s8242_s2 = inlined_call_operand.hbm [shape: f32[384,128], index: 2, kind: input, shape index: {}]   ;;  %s8243_s3 = inlined_call_operand.hbm [shape: f32[526,128], index: 3, kind: output, shape index: {}]  }
   0x1   :  { %8554 = sst [smem:[#allocation68_spill]] %s8242_s2 }
   0x2   :  { %8 = vsyncpa [#allocation3], 0 }
   0x3   :  { %10 = vsyncpa [#allocation3 + $0x1], 0 }
   0x4   :  { %11 = vsyncpa [#allocation6], 0 }
   0x5   :  { %13 = vsyncpa [#allocation6 + $0x1], 0 }
   0x6   :  { %14 = vsyncpa [#allocation4], 0 }
   0x7   :  { %16 = vsyncpa [#allocation4 + $0x1], 0  ;;  %s5164_s12 = smov 0   ;;  %s5166_s13 = smov 0  }
   0x8   :  { %s5168_s14 = smov 0   ;;  %s5170_s15 = smov 0  }
   0x9 LB: > { %s5185_s16 = sadd.s32 4294967295, %s5135_s15   ;;  %s4851_s17 = sadd.s32 4294967294, %s5135_s15   ;;  %s5135_s15 = sphi %s5170_s15, %s9010_s15   ;;  %s5131_s14 = sphi %s5168_s14, %s9009_s14   ;;  %s5127_s13 = sphi %s5166_s13, %s9008_s13   ;;  %s5123_s12 = sphi %s5164_s12, %s9007_s12  }
   0xa   : > { %p42_p0 = scmp.ne.s32.totalorder %s5127_s13, %s5123_s12  ;;  %p43_p1 = scmp.eq.s32.totalorder %s5185_s16, 0 }
   0xb   : > { %p113_p2 = scmp.eq.s32.totalorder %s5185_s16, 1  ;;  %p119_p3 = scmp.eq.s32.totalorder %s4851_s17, 1 }
   0xc   : > { %p5194_p4 = por %p43_p1, %p42_p0  ;;  %p4852_p5 = scmp.ge.s32.totalorder %s5135_s15, 1 }
   0xd   : > { %p5199_p6 = por %p119_p3, %p42_p0  ;;  %p126_p7 = scmp.lt.s32.totalorder %s5135_s15, 3 }
   0xe   : > { %s8557_s2 = sld [smem:[#allocation68_spill]]  ;;  %s5137_s24 = smov [#allocation7]  }
   0xf   : > { %p5207_p8 = pnand %p4852_p5, %p126_p7  ;;  %s139_s25 = sshll.u32 %s5137_s24, 4  ;;  %s140_s25 = int_to_ptr.vmem [resolvable:$true] %s139_s25 }
  0x10   : > { %s5138_s26 = smov 128   ;;  %s5139_s27 = smov 8  }
  0x11   : > { %p4911_p9 = pneg %p5207_p8  ;;  %s5217_s28 = sadd.s32 1, %s5135_s15  }
  0x12   : > { %s29_s29 = sadd.s32 1, %s5131_s14  ;;  %s26_s30 = ssub.s32 %s5135_s15, %s5217_s28 }
  0x13   : > { %p4912_p10 = pnand %p4911_p9, %p43_p1  ;;  %p36_p12 = scmp.ne.s32.totalorder %s5131_s14, %s5127_s13 }
  0x14   : > { %s137_s22 = sshll.u32 %s8557_s2, 4  ;;  %p27_p13 = scmp.eq.s32.totalorder %s26_s30, 0  ;;  %s138_s22 = int_to_ptr.hbm [resolvable:$true] %s137_s22 }
  0x15   : > { %4914 = dma.hbm_to_vmem [thread:$0]  (!%p4912_p10), %s138_s22, 6144, %s140_s25, [#allocation6], %s5138_s26, %s5138_s26, %s5139_s27  }
  0x16   : > { %p37_p0 = scmp.eq.s32.totalorder %s5135_s15, 0  ;;  %p5227_p3 = por %p113_p2, %p36_p12 }
  0x17   : > { %p4927_p5 = scmp.lt.s32.totalorder %s5135_s15, 2  ;;  %s153_s6 = sand.u32 1, %s5131_s14  }
  0x18   : > { %s5233_s5 = scalar_select %p27_p13, %s5131_s14, %s29_s29  }
  0x19   : > { %p38_p7 = por %p37_p0, %p36_p12  ;;  %s5236_s7 = smul.u32 792, %s153_s6 }
  0x1a   : > { %8560 = sst [smem:[#allocation13_spill]] %s5233_s5  ;;  %s4928_s8 = smul.u32 792, %s5135_s15 }
  0x1b   : > { %p5239_p9 = pnand %p4927_p5, %p38_p7  ;;  %s157_s20 = scalar_lea.vmem [#allocation2], %s5236_s7 }
  0x1c   : > { %s163_s17 = scalar_lea.hbm %s8240_s0, %s4928_s8  ;;  %s166_s21 = sshll.u32 %s157_s20, 4  ;;  %s167_s21 = int_to_ptr.vmem [resolvable:$true] %s166_s21 }
  0x1d   : > { %s164_s22 = sshll.u32 %s163_s17, 4  ;;  %s176_s24 = sand.u32 1, %s5135_s15   ;;  %s165_s22 = int_to_ptr.hbm [resolvable:$true] %s164_s22 }
  0x1e   : > { %s154_s25 = scalar_lea.sflag [#allocation3], %s153_s6  ;;  %s5001_s26 = sshra.s32 %s165_s22, 4  ;;  %s5002_s26 = int_to_ptr.hbm [resolvable:$true] %s5001_s26 }
  0x1f   : > { %s5003_s27 = scalar_lea.hbm %s5002_s26, 792  ;;  %p5005_p10 = pneg %p5239_p9 }
  0x20   : > { %p5004_p2 = scmp.ne.s32.totalorder %s5002_s26, %s5003_s27  ;;  %s5008_s10 = scalar_lea.hbm %s8240_s0, 1584 }
  0x21   : > { %p5009_p0 = scmp.lt.s32.totalorder %s5002_s26, %s8240_s0  ;;  %p5010_p5 = scmp.lt.s32.totalorder %s5008_s10, %s5003_s27 }
  0x22   : > { %p5006_p12 = pnand %p5005_p10, %p5004_p2 }
  0x23   : > { %p5011_p7 = por %p5010_p5, %p5009_p0 }
  0x24   : > { %p5007_p13 = pneg %p5006_p12 }
  0x26   : > { %p5012_p11 = pnand %p5011_p7, %p5007_p13 }
  0x28   : > { %5015 = shalt.err (!%p5012_p11)
}
  0x29   : > { %s5140_s6 = smov 384   ;;  %s5141_s20 = smov 24  }
  0x2a   : > { %4918 = dma.hbm_to_vmem [thread:$0]  (!%p5239_p9), %s165_s22, 12672, %s167_s21, %s154_s25, %s5140_s6, %s5140_s6, %s5141_s20  }
  0x2b   : > { %s186_s30 = scalar_lea.hbm %s8241_s1, %s4928_s8  ;;  %s180_s5 = scalar_lea.vmem [#allocation5], %s5236_s7 }
  0x2c   : > { %s189_s11 = sshll.u32 %s180_s5, 4  ;;  %s187_s26 = sshll.u32 %s186_s30, 4  ;;  %s190_s11 = int_to_ptr.vmem [resolvable:$true] %s189_s11  ;;  %s188_s26 = int_to_ptr.hbm [resolvable:$true] %s187_s26 }
  0x2d   : > { %s177_s27 = scalar_lea.sflag [#allocation6], %s176_s24  ;;  %s5031_s10 = sshra.s32 %s188_s26, 4  ;;  %s5032_s10 = int_to_ptr.hbm [resolvable:$true] %s5031_s10 }
  0x2e   : > { %s5033_s17 = scalar_lea.hbm %s5032_s10, 792  ;;  %s5038_s25 = scalar_lea.hbm %s8241_s1, 1584 }
  0x2f   : > { %p5034_p11 = scmp.ne.s32.totalorder %s5032_s10, %s5033_s17  ;;  %p5039_p13 = scmp.lt.s32.totalorder %s5032_s10, %s8241_s1 }
  0x30   : > { %p5040_p0 = scmp.lt.s32.totalorder %s5038_s25, %s5033_s17 }
  0x31   : > { %p5036_p2 = pnand %p5034_p11, %p5005_p10 }
  0x32   : > { %p5041_p5 = por %p5040_p0, %p5039_p13 }
  0x33   : > { %p5037_p12 = pneg %p5036_p2 }
  0x35   : > { %p5042_p7 = pnand %p5041_p5, %p5037_p12 }
  0x37   : > { %5045 = shalt.err (!%p5042_p7)
}
  0x38   : > { %4921 = dma.hbm_to_vmem [thread:$0]  (!%p5239_p9), %s188_s26, 12672, %s190_s11, %s177_s27, %s5140_s6, %s5140_s6, %s5141_s20  }
  0x39   : > { %201 = sbr.rel (%p5207_p8) target bundleno = 1439 (0x59f), region = 32 }
  0x3e   : > { %s5283_s5 = sand.u32 1, %s5127_s13  }
  0x3f   : > { %s4899_s7 = smul.u32 792, %s5283_s5  ;;  %s204_s24 = scalar_lea.sflag [#allocation3], %s5283_s5 }
  0x41   : > { %s5287_s29 = scalar_lea.vmem [#allocation2], %s4899_s7 }
  0x42   : > { %5106 = dma.done.wait (%p5194_p4), %s204_s24, 12672  }
  0x43   : > { %5108 = vsyncadd (%p5194_p4), %s204_s24, 4294954624  ;;  %s213_s9 = sand.u32 1, %s5185_s16   ;;  %s5294_s6 = scalar_lea.vmem [#allocation5], %s4899_s7 }
  0x44   : > { %s214_s23 = scalar_lea.sflag [#allocation6], %s213_s9 }
  0x45   : > { %5110 = dma.done.wait (%p5194_p4), %s214_s23, 12672  }
  0x46   : > { %5112 = vsyncadd (%p5194_p4), %s214_s23, 4294954624 }
  0x47   : > { %5114 = dma.done.wait (%p43_p1), [#allocation6], 6144  }
  0x48   : > { %5116 = vsyncadd (%p43_p1), [#allocation6], 4294961152  ;;  %v566_v0 = vld [vmem:[#allocation7 + $0x78] sm:$0xff]  ;;  %v565_v1 = vld [vmem:[#allocation7 + $0x70] sm:$0xff]  ;;  %s4900_s18 = smul.u32 264, %s5283_s5  ;;  %s5081_s8 = scalar_lea.hbm %s8243_s3, 528 }
  0x49   : > { %v564_v2 = vld [vmem:[#allocation7 + $0x68] sm:$0xff]  ;;  %v5304_v3 = vand.u32 4294901760, %v566_v0  ;;  %v5306_v4 = vand.u32 4294901760, %v565_v1  ;;  %v563_v6 = vld [vmem:[#allocation7 + $0x60] sm:$0xff]  ;;  %v562_v7 = vld [vmem:[#allocation7 + $0x58] sm:$0xff]  ;;  %s4862_s30 = smul.u32 264, %s5185_s16 }
  0x4a   : > { %v5308_v5 = vand.u32 4294901760, %v564_v2  ;;  %v561_v8 = vld [vmem:[#allocation7 + $0x50] sm:$0xff]  ;;  %v5310_v9 = vand.u32 4294901760, %v563_v6  ;;  %v5312_v10 = vand.u32 4294901760, %v562_v7  ;;  %v560_v12 = vld [vmem:[#allocation7 + $0x48] sm:$0xff]  ;;  %v559_v13 = vld [vmem:[#allocation7 + $0x40] sm:$0xff] }
  0x4b   : > { %v5314_v11 = vand.u32 4294901760, %v561_v8  ;;  %4863 = vmatpush.msra.mxu2 %v5304_v3  ;;  %600 = vmatpush.msra.mxu0 %v5304_v3  ;;  %v5319_v14 = vsub.f32 %v566_v0, %v5304_v3  ;;  %v5322_v15 = vsub.f32 %v565_v1, %v5306_v4  ;;  %v558_v17 = vld [vmem:[#allocation7 + $0x38] sm:$0xff]  ;;  %v5327_v18 = vand.u32 4294901760, %v560_v12  ;;  %v557_v25 = vld [vmem:[#allocation7 + $0x30] sm:$0xff]  ;;  %v556_v33 = vld [vmem:[#allocation7 + $0x28] sm:$0xff]  ;;  %s8066_s20 = scalar_lea.vmem [#allocation8], %s4900_s18  ;;  %s4742_s27 = scalar_lea.hbm %s8243_s3, %s4862_s30 }
  0x4c   : > { %v5325_v16 = vsub.f32 %v564_v2, %v5308_v5  ;;  %v5330_v19 = vsub.f32 %v563_v6, %v5310_v9  ;;  %v5333_v20 = vsub.f32 %v562_v7, %v5312_v10  ;;  %v5340_v24 = vand.u32 4294901760, %v559_v13  ;;  %v555_v40 = vld [vmem:[#allocation7 + $0x20] sm:$0xff]  ;;  %v305_v47 = vld [vmem:[%s5287_s29 + $0x198] sm:$0xff]  ;;  %v552_v63 = vld [vmem:[#allocation7 + $0x8] sm:$0xff]  ;;  %s4743_s10 = sshll.u32 %s8066_s20, 4  ;;  %s4745_s17 = sshll.u32 %s4742_s27, 4  ;;  %s4744_s10 = int_to_ptr.vmem [resolvable:$true] %s4743_s10  ;;  %s4746_s17 = int_to_ptr.hbm [resolvable:$true] %s4745_s17 }
  0x4d   : > { %4864 = vmatpush.msra.mxu2 %v5306_v4  ;;  %v898_v21 = vand.u32 4294901760, %v5319_v14  ;;  %602 = vmatpush.msra.mxu0 %v5306_v4  ;;  %v8259_v22 = vand.u32 4294901760, %v5322_v15  ;;  %v5343_v27 = vand.u32 4294901760, %v558_v17  ;;  %v5346_v28 = vsub.f32 %v561_v8, %v5314_v11  ;;  %v404_v48 = vld [vmem:[%s5294_s6 + $0x198] sm:$0xff]  ;;  %v554_v50 = vld [vmem:[#allocation7 + $0x18] sm:$0xff]  ;;  %v553_v54 = vld [vmem:[#allocation7 + $0x10] sm:$0xff] }
  0x4e   : > { %v8258_v23 = vand.u32 4294901760, %v5325_v16  ;;  %v8257_v26 = vand.u32 4294901760, %v5330_v19  ;;  %v8255_v32 = vand.u32 4294901760, %v5333_v20  ;;  %v5363_v35 = vand.u32 4294901760, %v557_v25  ;;  %v254_v8 = vld [vmem:[%s5287_s29] sm:$0xff]  ;;  %s4731_s16 = scalar_lea.sflag [#allocation4], %s5283_s5 }
  0x4f   : > { %4865 = vmatpush.msra.mxu2 %v5308_v5  ;;  %v899_v29 = vsub.f32 %v5319_v14, %v898_v21  ;;  %v905_v30 = vsub.f32 %v5322_v15, %v8259_v22  ;;  %604 = vmatpush.msra.mxu0 %v5308_v5  ;;  %v5366_v36 = vsub.f32 %v560_v12, %v5327_v18  ;;  %v8253_v39 = vand.u32 4294901760, %v5346_v28  ;;  %v353_v12 = vld [vmem:[%s5294_s6] sm:$0xff]  ;;  %s5075_s21 = sshra.s32 %s4746_s17, 4  ;;  %s5076_s21 = int_to_ptr.hbm [resolvable:$true] %s5075_s21 }
  0x50   : > { %v911_v31 = vsub.f32 %v5325_v16, %v8258_v23  ;;  %v917_v34 = vsub.f32 %v5330_v19, %v8257_v26  ;;  %v5372_v41 = vsub.f32 %v559_v13, %v5340_v24  ;;  %v5374_v42 = vand.u32 4294901760, %v556_v33  ;;  %v263_v26 = vld [vmem:[%s5287_s29 + $0x48] sm:$0xff]  ;;  %v362_v23 = vld [vmem:[%s5294_s6 + $0x48] sm:$0xff]  ;;  %s5077_s22 = scalar_lea.hbm %s5076_s21, 264  ;;  %p5082_p9 = scmp.lt.s32.totalorder %s5076_s21, %s8243_s3 }
  0x51   : > { %4866 = vmatpush.msra.mxu2 %v5310_v9  ;;  %v900_v37 = vand.u32 4294901760, %v899_v29  ;;  %v906_v38 = vand.u32 4294901760, %v905_v30  ;;  %606 = vmatpush.msra.mxu0 %v5310_v9  ;;  %v923_v44 = vsub.f32 %v5333_v20, %v8255_v32  ;;  %v8249_v45 = vand.u32 4294901760, %v5366_v36  ;;  %v308_v29 = vld [vmem:[%s5287_s29 + $0x1b0] sm:$0xff]  ;;  %v407_v30 = vld [vmem:[%s5294_s6 + $0x1b0] sm:$0xff]  ;;  %p5078_p1 = scmp.ne.s32.totalorder %s5076_s21, %s5077_s22  ;;  %p5083_p10 = scmp.lt.s32.totalorder %s5081_s8, %s5077_s22 }
  0x52   : > { %v912_v43 = vand.u32 4294901760, %v911_v31  ;;  %v5382_v46 = vsub.f32 %v558_v17, %v5343_v27  ;;  %v5387_v49 = vand.u32 4294901760, %v555_v40  ;;  %v918_v51 = vand.u32 4294901760, %v917_v34  ;;  %v551_v17 = vld [vmem:[#allocation7] sm:$0xff] }
  0x53   : > { %4867 = vmatpush.msra.mxu2 %v5312_v10  ;;  %901 = vmatpush.msra.mxu1 %v900_v37  ;;  %v929_v52 = vsub.f32 %v5346_v28, %v8253_v39  ;;  %v8248_v53 = vand.u32 4294901760, %v5372_v41  ;;  %v5395_v55 = vsub.f32 %v557_v25, %v5363_v35  ;;  %v503_v57 = vmul.f32 %v404_v48, %v305_v47  ;;  %v314_v32 = vld [vmem:[%s5287_s29 + $0x1e0] sm:$0xff]  ;;  %p5079_p4 = pnand %p5078_p1, %p5227_p3  ;;  %p5084_p11 = por %p5083_p10, %p5082_p9 }
  0x54   : > { %4879 = vmatpush.msra.mxu3 %v900_v37  ;;  %608 = vmatpush.msra.mxu0 %v5312_v10  ;;  %v8247_v56 = vand.u32 4294901760, %v5382_v46  ;;  %v924_v58 = vand.u32 4294901760, %v923_v44  ;;  %v935_v59 = vsub.f32 %v5366_v36, %v8249_v45  ;;  %v5403_v60 = vand.u32 4294901760, %v554_v50 }
  0x55   : > { %4868 = vmatpush.msra.mxu2 %v5314_v11  ;;  %907 = vmatpush.msra.mxu1 %v906_v38  ;;  %v5406_v61 = vsub.f32 %v556_v33, %v5374_v42  ;;  %v5409_v62 = vand.u32 4294901760, %v553_v54  ;;  %v5412_v0 = vsub.f32 %v555_v40, %v5387_v49  ;;  %v5414_v1 = vand.u32 4294901760, %v503_v57  ;;  %v356_v40 = vld [vmem:[%s5294_s6 + $0x18] sm:$0xff]  ;;  %p5080_p8 = pneg %p5079_p4 }
  0x56   : > { %4880 = vmatpush.msra.mxu3 %v906_v38  ;;  %610 = vmatpush.msra.mxu0 %v5314_v11  ;;  %v930_v2 = vand.u32 4294901760, %v929_v52  ;;  %v941_v6 = vsub.f32 %v5372_v41, %v8248_v53  ;;  %v8246_v7 = vand.u32 4294901760, %v5395_v55  ;;  %v947_v13 = vsub.f32 %v5382_v46, %v8247_v56  ;;  %v257_v38 = vld [vmem:[%s5287_s29 + $0x18] sm:$0xff]  ;;  %v260_v53 = vld [vmem:[%s5287_s29 + $0x30] sm:$0xff] }
  0x57   : > { %4869 = vmatpush.msra.mxu2 %v5327_v18  ;;  %913 = vmatpush.msra.mxu1 %v912_v43  ;;  %v5428_v25 = vsub.f32 %v503_v57, %v5414_v1  ;;  %v936_v31 = vand.u32 4294901760, %v935_v59  ;;  %v5433_v33 = vand.u32 4294901760, %v552_v63  ;;  %v8244_v34 = vand.u32 4294901760, %v5406_v61  ;;  %p5085_p2 = pnand %p5084_p11, %p5080_p8 }
  0x58   : > { %4881 = vmatpush.msra.mxu3 %v912_v43  ;;  %612 = vmatpush.msra.mxu0 %v5327_v18  ;;  %v5437_v37 = vsub.f32 %v554_v50, %v5403_v60  ;;  %v8245_v43 = vand.u32 4294901760, %v5412_v0  ;;  %v5444_v44 = vsub.f32 %v553_v54, %v5409_v62  ;;  %v452_v47 = vmul.f32 %v353_v12, %v254_v8 }
  0x59   : > { %4870 = vmatpush.msra.mxu2 %v5340_v24  ;;  %919 = vmatpush.msra.mxu1 %v918_v51  ;;  %v942_v48 = vand.u32 4294901760, %v941_v6  ;;  %v953_v50 = vsub.f32 %v5395_v55, %v8246_v7  ;;  %v506_v52 = vmul.f32 %v407_v30, %v308_v29  ;;  %v948_v57 = vand.u32 4294901760, %v947_v13  ;;  %v311_v13 = vld [vmem:[%s5287_s29 + $0x1c8] sm:$0xff]  ;;  %v410_v29 = vld [vmem:[%s5294_s6 + $0x1c8] sm:$0xff] }
  0x5a   : > { %4882 = vmatpush.msra.mxu3 %v918_v51  ;;  %614 = vmatpush.msra.mxu0 %v5340_v24  ;;  %v5450_v51 = vand.u32 4294901760, %v551_v17  ;;  %v8250_v54 = vand.u32 4294901760, %v5428_v25  ;;  %v455_v59 = vmul.f32 %v356_v40, %v257_v38  ;;  %v959_v6 = vsub.f32 %v5406_v61, %v8244_v34 }
  0x5b   : > { %4871 = vmatpush.msra.mxu2 %v5343_v27  ;;  %925 = vmatpush.msra.mxu1 %v924_v58  ;;  %v8252_v8 = vand.u32 4294901760, %v5437_v37  ;;  %v5462_v12 = vsub.f32 %v552_v63, %v5433_v33  ;;  %v965_v30 = vsub.f32 %v5412_v0, %v8245_v43  ;;  %v8251_v38 = vand.u32 4294901760, %v5444_v44 }
  0x5c   : > { %4883 = vmatpush.msra.mxu3 %v924_v58  ;;  %616 = vmatpush.msra.mxu0 %v5343_v27  ;;  %v5454_v58 = vand.u32 4294901760, %v452_v47  ;;  %v954_v63 = vand.u32 4294901760, %v953_v50  ;;  %v5478_v34 = vsub.f32 %v551_v17, %v5450_v51  ;;  %v770_v43 = vsub.f32 %v5428_v25, %v8250_v54  ;;  %v359_v50 = vld [vmem:[%s5294_s6 + $0x30] sm:$0xff] }
  0x5d   : > { %4872 = vmatpush.msra.mxu2 %v5363_v35  ;;  %931 = vmatpush.msra.mxu1 %v930_v2  ;;  %v509_v56 = vmul.f32 %v410_v29, %v311_v13  ;;  %v960_v17 = vand.u32 4294901760, %v959_v6  ;;  %v8256_v45 = vand.u32 4294901760, %v5462_v12  ;;  %v966_v54 = vand.u32 4294901760, %v965_v30 }
  0x5e   : > { %4884 = vmatpush.msra.mxu3 %v930_v2  ;;  %618 = vmatpush.msra.mxu0 %v5363_v35  ;;  %v5464_v2 = vand.u32 4294901760, %v506_v52  ;;  %v5474_v40 = vsub.f32 %v452_v47, %v5454_v58  ;;  %v988_v6 = vand.u32 4294901760, %v5478_v34  ;;  %v458_v29 = vmul.f32 %v359_v50, %v260_v53 }
  0x5f   : > { %4873 = vmatpush.msra.mxu2 %v5374_v42  ;;  %937 = vmatpush.msra.mxu1 %v936_v31  ;;  %v771_v30 = vand.u32 4294901760, %v770_v43 }
  0x60   : > { %4885 = vmatpush.msra.mxu3 %v936_v31  ;;  %620 = vmatpush.msra.mxu0 %v5374_v42  ;;  %v5480_v31 = vand.u32 4294901760, %v455_v59  ;;  %v8254_v7 = vand.u32 4294901760, %v5474_v40  ;;  %v5488_v47 = vsub.f32 %v506_v52, %v5464_v2  ;;  %v977_v52 = vsub.f32 %v5444_v44, %v8251_v38 }
  0x61   : > { %4874 = vmatpush.msra.mxu2 %v5387_v49  ;;  %943 = vmatpush.msra.mxu1 %v942_v48  ;;  %v989_v43 = vsub.f32 %v5478_v34, %v988_v6 }
  0x62   : > { %4886 = vmatpush.msra.mxu3 %v942_v48  ;;  %622 = vmatpush.msra.mxu0 %v5387_v49  ;;  %v971_v48 = vsub.f32 %v5437_v37, %v8252_v8  ;;  %v634_v13 = vsub.f32 %v5474_v40, %v8254_v7  ;;  %v8267_v38 = vand.u32 4294901760, %v5488_v47  ;;  %v5511_v8 = vand.u32 4294901760, %v509_v56 }
  0x63   : > { %4875 = vmatpush.msra.mxu2 %v5403_v60  ;;  %949 = vmatpush.msra.mxu1 %v948_v57  ;;  %v983_v7 = vsub.f32 %v5462_v12, %v8256_v45  ;;  %v978_v53 = vand.u32 4294901760, %v977_v52 }
  0x64   : > { %4887 = vmatpush.msra.mxu3 %v948_v57  ;;  %624 = vmatpush.msra.mxu0 %v5403_v60  ;;  %v5507_v57 = vsub.f32 %v455_v59, %v5480_v31  ;;  %v972_v39 = vand.u32 4294901760, %v971_v48  ;;  %v413_v59 = vld [vmem:[%s5294_s6 + $0x1e0] sm:$0xff]  ;;  %v5525_v48 = vand.u32 4294901760, %v458_v29  ;;  %v5531_v52 = vsub.f32 %v509_v56, %v5511_v8 }
  0x65   : > { %4876 = vmatpush.msra.mxu2 %v5409_v62  ;;  %955 = vmatpush.msra.mxu1 %v954_v63  ;;  %v512_v45 = vmul.f32 %v413_v59, %v314_v32  ;;  %v984_v22 = vand.u32 4294901760, %v983_v7  ;;  %v317_v59 = vld [vmem:[%s5287_s29 + $0x1f8] sm:$0xff] }
  0x66   : > { %4888 = vmatpush.msra.mxu3 %v954_v63  ;;  %626 = vmatpush.msra.mxu0 %v5409_v62  ;;  %v635_v63 = vand.u32 4294901760, %v634_v13  ;;  %v8278_v50 = vand.u32 4294901760, %v5507_v57  ;;  %v5541_v32 = vsub.f32 %v458_v29, %v5525_v48  ;;  %v461_v13 = vmul.f32 %v362_v23, %v263_v26 }
  0x67   : > { %4877 = vmatpush.msra.mxu2 %v5433_v33  ;;  %961 = vmatpush.msra.mxu1 %v960_v17  ;;  %v8562_v29 = vand.u32 4294901760, %v5322_v15 }
  0x68   : > { %4889 = vmatpush.msra.mxu3 %v960_v17  ;;  %628 = vmatpush.msra.mxu0 %v5433_v33  ;;  %v778_v17 = vsub.f32 %v5488_v47, %v8267_v38  ;;  %v642_v56 = vsub.f32 %v5507_v57, %v8278_v50  ;;  %v386_v38 = vld [vmem:[%s5294_s6 + $0x108] sm:$0xff] }
  0x69   : > { %4878 = vmatpush.msra.mxu2 %v5450_v51  ;;  %967 = vmatpush.msra.mxu1 %v966_v54 }
  0x6a   : > { %4890 = vmatpush.msra.mxu3 %v966_v54  ;;  %772 = vmatmul.f32.vlgmr.msra.gmra.mxu2 %v771_v30  ;;  %v990_v54 = vand.u32 4294901760, %v989_v43  ;;  %v779_v7 = vand.u32 4294901760, %v778_v17  ;;  %v5546_v30 = vand.u32 4294901760, %v512_v45  ;;  %v416_v43 = vld [vmem:[%s5294_s6 + $0x1f8] sm:$0xff]  ;;  %v643_v23 = vand.u32 4294901760, %v642_v56 }
  0x6b   : > { %973 = vmatpush.msra.mxu1 %v972_v39  ;;  %1127 = vmatpush.msrb.mxu2 %v5319_v14  ;;  %v8277_v14 = vand.u32 4294901760, %v5541_v32 }
  0x6c   : > { %4891 = vmatpush.msra.mxu3 %v972_v39  ;;  %630 = vmatpush.msra.mxu0 %v5450_v51  ;;  %v8266_v39 = vand.u32 4294901760, %v5531_v52 }
  0x6d   : > { %979 = vmatpush.msra.mxu1 %v978_v53  ;;  %636 = vmatmul.f32.vlgmr.msra.gmra.mxu0 %v635_v63  ;;  %v365_v63 = vld [vmem:[%s5294_s6 + $0x60] sm:$0xff]  ;;  %v650_v17 = vsub.f32 %v5541_v32, %v8277_v14 }
  0x6e   : > { %4892 = vmatpush.msra.mxu3 %v978_v53  ;;  %1573 = vmatpush.msrb.mxu0 %v898_v21  ;;  %v5555_v21 = vand.u32 4294901760, %v461_v13  ;;  %v786_v26 = vsub.f32 %v5531_v52, %v8266_v39  ;;  %v5561_v53 = vsub.f32 %v512_v45, %v5546_v30 }
  0x6f   : > { %985 = vmatpush.msra.mxu1 %v984_v22  ;;  %1130 = vmatpush.msrb.mxu2 %v5322_v15  ;;  %v266_v15 = vld [vmem:[%s5287_s29 + $0x60] sm:$0xff] }
  0x70   : > { %4893 = vmatpush.msra.mxu3 %v984_v22  ;;  %1577 = vmatpush.msrb.mxu0 %v8562_v29  ;;  %v515_v22 = vmul.f32 %v416_v43, %v317_v59  ;;  %v5574_v45 = vsub.f32 %v461_v13, %v5555_v21  ;;  %v787_v56 = vand.u32 4294901760, %v786_v26  ;;  %v320_v43 = vld [vmem:[%s5287_s29 + $0x210] sm:$0xff]  ;;  %v419_v13 = vld [vmem:[%s5294_s6 + $0x210] sm:$0xff]  ;;  %v651_v29 = vand.u32 4294901760, %v650_v17  ;;  %v368_v17 = vld [vmem:[%s5294_s6 + $0x78] sm:$0xff] }
  0x71   : > { %991 = vmatpush.msra.mxu1 %v990_v54  ;;  %1133 = vmatpush.msrb.mxu2 %v5325_v16 }
  0x72   : > { %4894 = vmatpush.msra.mxu3 %v990_v54  ;;  %780 = vmatmul.f32.gmra.mxu2 %v779_v7  ;;  %v464_v54 = vmul.f32 %v365_v63, %v266_v15  ;;  %v8265_v7 = vand.u32 4294901760, %v5561_v53  ;;  %v5579_v59 = vand.u32 4294901760, %v515_v22  ;;  %v269_v63 = vld [vmem:[%s5287_s29 + $0x78] sm:$0xff] }
  0x73   : > { %993 = vmatmul.f32.vlgmr.msra.gmra.mxu1 %v5454_v58  ;;  %1061 = vmatmul.f32.vlgmr.msra.gmra.mxu3 %v5414_v1 }
  0x74   : > { %1340 = vmatpush.msrb.mxu3 %v5304_v3  ;;  %1768 = vmatpush.msrb.mxu1 %v5304_v3  ;;  %v8563_v3 = vand.u32 4294901760, %v5325_v16  ;;  %v5591_v26 = vand.u32 4294901760, %v464_v54  ;;  %v794_v16 = vsub.f32 %v5561_v53, %v8265_v7  ;;  %v5598_v15 = vsub.f32 %v515_v22, %v5579_v59 }
  0x75   : > { %644 = vmatmul.f32.gmra.mxu0 %v643_v23  ;;  %1136 = vmatpush.msrb.mxu2 %v5330_v19  ;;  %v8564_v23 = vand.u32 4294901760, %v5330_v19 }
  0x76   : > { %1342 = vmatpush.msrb.mxu3 %v5306_v4  ;;  %1770 = vmatpush.msrb.mxu1 %v5306_v4  ;;  %v8276_v4 = vand.u32 4294901760, %v5574_v45  ;;  %v5611_v22 = vsub.f32 %v464_v54, %v5591_v26  ;;  %v8566_v54 = vand.u32 4294901760, %v5346_v28 }
  0x77   : > { %1581 = vmatpush.msrb.mxu0 %v8563_v3  ;;  %1139 = vmatpush.msrb.mxu2 %v5333_v20  ;;  %v795_v3 = vand.u32 4294901760, %v794_v16 }
  0x78   : > { %1344 = vmatpush.msrb.mxu3 %v5308_v5  ;;  %1772 = vmatpush.msrb.mxu1 %v5308_v5  ;;  %v518_v5 = vmul.f32 %v419_v13, %v320_v43  ;;  %v658_v19 = vsub.f32 %v5574_v45, %v8276_v4  ;;  %v8264_v43 = vand.u32 4294901760, %v5598_v15  ;;  %v443_v4 = vld [vmem:[%s5294_s6 + $0x2d0] sm:$0xff] }
  0x79   : > { %1585 = vmatpush.msrb.mxu0 %v8564_v23  ;;  %1142 = vmatpush.msrb.mxu2 %v5346_v28  ;;  %v422_v23 = vld [vmem:[%s5294_s6 + $0x228] sm:$0xff] }
  0x7a   : > { %788 = vmatmul.f32.gmra.mxu2 %v787_v56  ;;  %1346 = vmatpush.msrb.mxu3 %v5310_v9  ;;  %v467_v56 = vmul.f32 %v368_v17, %v269_v63  ;;  %v5615_v13 = vand.u32 4294901760, %v518_v5  ;;  %v659_v16 = vand.u32 4294901760, %v658_v19  ;;  %v8275_v63 = vand.u32 4294901760, %v5611_v22 }
  0x7b   : > { %997 = vmatmul.f32.gmra.mxu1 %v5480_v31  ;;  %1065 = vmatmul.f32.gmra.mxu3 %v5464_v2  ;;  %v8567_v19 = vand.u32 4294901760, %v5366_v36 }
  0x7c   : > { %1774 = vmatpush.msrb.mxu1 %v5310_v9  ;;  %1348 = vmatpush.msrb.mxu3 %v5312_v10  ;;  %v8565_v9 = vand.u32 4294901760, %v5333_v20  ;;  %v5628_v20 = vand.u32 4294901760, %v467_v56  ;;  %v5636_v17 = vsub.f32 %v518_v5, %v5615_v13  ;;  %v666_v5 = vsub.f32 %v5611_v22, %v8275_v63  ;;  %v344_v63 = vld [vmem:[%s5287_s29 + $0x2d0] sm:$0xff] }
  0x7d   : > { %652 = vmatmul.f32.gmra.mxu0 %v651_v29  ;;  %1145 = vmatpush.msrb.mxu2 %v5366_v36  ;;  %v323_v29 = vld [vmem:[%s5287_s29 + $0x228] sm:$0xff] }
  0x7e   : > { %1589 = vmatpush.msrb.mxu0 %v8565_v9  ;;  %1776 = vmatpush.msrb.mxu1 %v5312_v10  ;;  %v802_v10 = vsub.f32 %v5598_v15, %v8264_v43  ;;  %v521_v28 = vmul.f32 %v422_v23, %v323_v29  ;;  %v272_v9 = vld [vmem:[%s5287_s29 + $0x90] sm:$0xff]  ;;  %v8263_v23 = vand.u32 4294901760, %v5636_v17 }
  0x7f   : > { %1350 = vmatpush.msrb.mxu3 %v5314_v11  ;;  %1148 = vmatpush.msrb.mxu2 %v5372_v41  ;;  %v437_v43 = vld [vmem:[%s5294_s6 + $0x2a0] sm:$0xff] }
  0x80   : > { %1593 = vmatpush.msrb.mxu0 %v8566_v54  ;;  %1778 = vmatpush.msrb.mxu1 %v5314_v11  ;;  %v371_v11 = vld [vmem:[%s5294_s6 + $0x90] sm:$0xff]  ;;  %v803_v29 = vand.u32 4294901760, %v802_v10  ;;  %v5654_v54 = vand.u32 4294901760, %v521_v28  ;;  %v667_v10 = vand.u32 4294901760, %v666_v5  ;;  %v8571_v5 = vand.u32 4294901760, %v5395_v55 }
  0x81   : > { %1352 = vmatpush.msrb.mxu3 %v5327_v18  ;;  %1151 = vmatpush.msrb.mxu2 %v5382_v46  ;;  %v470_v36 = vmul.f32 %v371_v11, %v272_v9 }
  0x82   : > { %796 = vmatmul.f32.gmra.mxu2 %v795_v3  ;;  %1597 = vmatpush.msrb.mxu0 %v8567_v19  ;;  %v5650_v3 = vsub.f32 %v467_v56, %v5628_v20  ;;  %8568 = vst [vmem:[#allocation14_spill] sm:$0xff] %v5654_v54  ;;  %v425_v19 = vld [vmem:[%s5294_s6 + $0x240] sm:$0xff]  ;;  %v8570_v56 = vand.u32 4294901760, %v5382_v46  ;;  %v5675_v11 = vsub.f32 %v521_v28, %v5654_v54 }
  0x83   : > { %1001 = vmatmul.f32.gmra.mxu1 %v5525_v48  ;;  %1069 = vmatmul.f32.gmra.mxu3 %v5511_v8 }
  0x84   : > { %1780 = vmatpush.msrb.mxu1 %v5327_v18  ;;  %1354 = vmatpush.msrb.mxu3 %v5340_v24  ;;  %v8569_v18 = vand.u32 4294901760, %v5372_v41  ;;  %v8272_v9 = vand.u32 4294901760, %v5650_v3  ;;  %v5667_v41 = vand.u32 4294901760, %v470_v36 }
  0x85   : > { %660 = vmatmul.f32.gmra.mxu0 %v659_v16  ;;  %1154 = vmatpush.msrb.mxu2 %v5395_v55  ;;  %v326_v16 = vld [vmem:[%s5287_s29 + $0x240] sm:$0xff] }
  0x86   : > { %1601 = vmatpush.msrb.mxu0 %v8569_v18  ;;  %1782 = vmatpush.msrb.mxu1 %v5340_v24  ;;  %v810_v24 = vsub.f32 %v5636_v17, %v8263_v23  ;;  %v524_v46 = vmul.f32 %v425_v19, %v326_v16  ;;  %v275_v18 = vld [vmem:[%s5287_s29 + $0xa8] sm:$0xff]  ;;  %v674_v28 = vsub.f32 %v5650_v3, %v8272_v9  ;;  %v8261_v19 = vand.u32 4294901760, %v5675_v11  ;;  %v338_v23 = vld [vmem:[%s5287_s29 + $0x2a0] sm:$0xff] }
  0x87   : > { %1356 = vmatpush.msrb.mxu3 %v5343_v27  ;;  %1157 = vmatpush.msrb.mxu2 %v5406_v61 }
  0x88   : > { %1605 = vmatpush.msrb.mxu0 %v8570_v56  ;;  %1784 = vmatpush.msrb.mxu1 %v5343_v27  ;;  %v374_v27 = vld [vmem:[%s5294_s6 + $0xa8] sm:$0xff]  ;;  %v811_v16 = vand.u32 4294901760, %v810_v24  ;;  %v5693_v56 = vand.u32 4294901760, %v524_v46  ;;  %v675_v24 = vand.u32 4294901760, %v674_v28  ;;  %v8576_v28 = vand.u32 4294901760, %v5437_v37 }
  0x89   : > { %1358 = vmatpush.msrb.mxu3 %v5363_v35  ;;  %1160 = vmatpush.msrb.mxu2 %v5412_v0  ;;  %v473_v55 = vmul.f32 %v374_v27, %v275_v18 }
  0x8a   : > { %804 = vmatmul.f32.gmra.mxu2 %v803_v29  ;;  %1609 = vmatpush.msrb.mxu0 %v8571_v5  ;;  %v5689_v29 = vsub.f32 %v470_v36, %v5667_v41  ;;  %8572 = vst [vmem:[#allocation15_spill] sm:$0xff] %v5693_v56  ;;  %v428_v5 = vld [vmem:[%s5294_s6 + $0x258] sm:$0xff]  ;;  %v8574_v36 = vand.u32 4294901760, %v5412_v0  ;;  %v5714_v27 = vsub.f32 %v524_v46, %v5693_v56 }
  0x8b   : > { %1005 = vmatmul.f32.gmra.mxu1 %v5555_v21  ;;  %1073 = vmatmul.f32.gmra.mxu3 %v5546_v30 }
  0x8c   : > { %1786 = vmatpush.msrb.mxu1 %v5363_v35  ;;  %1360 = vmatpush.msrb.mxu3 %v5374_v42  ;;  %v8573_v35 = vand.u32 4294901760, %v5406_v61  ;;  %v8271_v18 = vand.u32 4294901760, %v5689_v29  ;;  %v5706_v61 = vand.u32 4294901760, %v473_v55  ;;  %8575 = vst [vmem:[#allocation16_spill] sm:$0xff] %v5714_v27 }
  0x8d   : > { %668 = vmatmul.f32.gmra.mxu0 %v667_v10  ;;  %1163 = vmatpush.msrb.mxu2 %v5437_v37  ;;  %v329_v10 = vld [vmem:[%s5287_s29 + $0x258] sm:$0xff] }
  0x8e   : > { %1613 = vmatpush.msrb.mxu0 %v8573_v35  ;;  %1788 = vmatpush.msrb.mxu1 %v5374_v42  ;;  %v818_v42 = vsub.f32 %v5675_v11, %v8261_v19  ;;  %v527_v0 = vmul.f32 %v428_v5, %v329_v10  ;;  %v278_v35 = vld [vmem:[%s5287_s29 + $0xc0] sm:$0xff]  ;;  %v682_v46 = vsub.f32 %v5689_v29, %v8271_v18  ;;  %v8260_v5 = vand.u32 4294901760, %v5714_v27 }
  0x8f   : > { %1362 = vmatpush.msrb.mxu3 %v5387_v49  ;;  %1166 = vmatpush.msrb.mxu2 %v5444_v44  ;;  %v383_v19 = vld [vmem:[%s5294_s6 + $0xf0] sm:$0xff] }
  0x90   : > { %1617 = vmatpush.msrb.mxu0 %v8574_v36  ;;  %1790 = vmatpush.msrb.mxu1 %v5387_v49  ;;  %v377_v49 = vld [vmem:[%s5294_s6 + $0xc0] sm:$0xff]  ;;  %v819_v10 = vand.u32 4294901760, %v818_v42  ;;  %v5732_v36 = vand.u32 4294901760, %v527_v0  ;;  %v683_v42 = vand.u32 4294901760, %v682_v46 }
  0x91   : > { %1364 = vmatpush.msrb.mxu3 %v5403_v60  ;;  %1169 = vmatpush.msrb.mxu2 %v5462_v12  ;;  %v476_v37 = vmul.f32 %v377_v49, %v278_v35 }
  0x92   : > { %812 = vmatmul.f32.gmra.mxu2 %v811_v16  ;;  %1621 = vmatpush.msrb.mxu0 %v8576_v28  ;;  %v5728_v16 = vsub.f32 %v473_v55, %v5706_v61  ;;  %8577 = vst [vmem:[#allocation17_spill] sm:$0xff] %v5732_v36  ;;  %v8578_v28 = vand.u32 4294901760, %v5444_v44  ;;  %v8579_v55 = vand.u32 4294901760, %v5462_v12  ;;  %v826_v44 = vsub.f32 %v5714_v27, %v8260_v5 }
  0x93   : > { %1009 = vmatmul.f32.gmra.mxu1 %v5591_v26  ;;  %1077 = vmatmul.f32.gmra.mxu3 %v5579_v59  ;;  %v5744_v49 = vand.u32 4294901760, %v476_v37 }
  0x94   : > { %1366 = vmatpush.msrb.mxu3 %v5409_v62  ;;  %1792 = vmatpush.msrb.mxu1 %v5403_v60  ;;  %v332_v60 = vld [vmem:[%s5287_s29 + $0x270] sm:$0xff]  ;;  %v8270_v35 = vand.u32 4294901760, %v5728_v16 }
  0x95   : > { %676 = vmatmul.f32.gmra.mxu0 %v675_v24  ;;  %1172 = vmatpush.msrb.mxu2 %v5478_v34  ;;  %v431_v24 = vld [vmem:[%s5294_s6 + $0x270] sm:$0xff] }
  0x96   : > { %1625 = vmatpush.msrb.mxu0 %v8578_v28  ;;  %1368 = vmatpush.msrb.mxu3 %v5433_v33  ;;  %v530_v12 = vmul.f32 %v431_v24, %v332_v60  ;;  %v281_v28 = vld [vmem:[%s5287_s29 + $0xd8] sm:$0xff]  ;;  %v335_v60 = vld [vmem:[%s5287_s29 + $0x288] sm:$0xff] }
  0x97   : > { %1794 = vmatpush.msrb.mxu1 %v5409_v62  ;;  %v5751_v62 = vsub.f32 %v527_v0, %v5732_v36  ;;  %v5764_v0 = vsub.f32 %v476_v37, %v5744_v49  ;;  %v434_v24 = vld [vmem:[%s5294_s6 + $0x288] sm:$0xff] }
  0x98   : > { %1629 = vmatpush.msrb.mxu0 %v8579_v55  ;;  %1370 = vmatpush.msrb.mxu3 %v5450_v51  ;;  %v380_v55 = vld [vmem:[%s5294_s6 + $0xd8] sm:$0xff] }
  0x99   : > { %1796 = vmatpush.msrb.mxu1 %v5433_v33  ;;  %8580 = vst [vmem:[#allocation18_spill] sm:$0xff] %v5751_v62  ;;  %v690_v33 = vsub.f32 %v5728_v16, %v8270_v35  ;;  %v479_v46 = vmul.f32 %v380_v55, %v281_v28  ;;  %v8262_v34 = vand.u32 4294901760, %v5751_v62  ;;  %v533_v28 = vmul.f32 %v434_v24, %v335_v60  ;;  %v284_v55 = vld [vmem:[%s5287_s29 + $0xf0] sm:$0xff]  ;;  %v440_v35 = vld [vmem:[%s5294_s6 + $0x2b8] sm:$0xff] }
  0x9a   : > { %820 = vmatmul.f32.gmra.mxu2 %v819_v10  ;;  %1633 = vmatpush.msrb.mxu0 %v988_v6  ;;  %v827_v10 = vand.u32 4294901760, %v826_v44  ;;  %v5767_v6 = vand.u32 4294901760, %v530_v12 }
  0x9b   : > { %1013 = vmatmul.f32.gmra.mxu1 %v5628_v20  ;;  %1081 = vmatmul.f32.gmra.mxu3 %v5615_v13  ;;  %v691_v5 = vand.u32 4294901760, %v690_v33  ;;  %v834_v37 = vsub.f32 %v5751_v62, %v8262_v34  ;;  %v482_v34 = vmul.f32 %v383_v19, %v284_v55  ;;  %v5791_v24 = vand.u32 4294901760, %v533_v28  ;;  %v287_v55 = vld [vmem:[%s5287_s29 + $0x108] sm:$0xff] }
  0x9c   : > { %1798 = vmatpush.msrb.mxu1 %v5450_v51  ;;  %8581 = vst [vmem:[#allocation19_spill] sm:$0xff] %v5767_v6  ;;  %v8269_v51 = vand.u32 4294901760, %v5764_v0  ;;  %v5778_v44 = vsub.f32 %v530_v12, %v5767_v6 }
  0x9d   : > { %684 = vmatmul.f32.gmra.mxu0 %v683_v42  ;;  %v5772_v42 = vand.u32 4294901760, %v479_v46  ;;  %v835_v12 = vand.u32 4294901760, %v834_v37  ;;  %8583 = vst [vmem:[#allocation21_spill] sm:$0xff] %v5791_v24  ;;  %v5796_v39 = vand.u32 4294901760, %v482_v34  ;;  %v5802_v19 = vsub.f32 %v533_v28, %v5791_v24 }
  0x9e   : > { %8582 = vst [vmem:[#allocation20_spill] sm:$0xff] %v5778_v44  ;;  %v698_v33 = vsub.f32 %v5764_v0, %v8269_v51  ;;  %v8268_v60 = vand.u32 4294901760, %v5778_v44  ;;  %v536_v37 = vmul.f32 %v437_v43, %v338_v23  ;;  %v341_v51 = vld [vmem:[%s5287_s29 + $0x2b8] sm:$0xff] }
  0x9f   : > { %8584 = vst [vmem:[#allocation22_spill] sm:$0xff] %v5802_v19  ;;  %v8274_v43 = vand.u32 4294901760, %v5802_v19 }
  0xa0   : > { %v699_v7 = vand.u32 4294901760, %v698_v33  ;;  %v5815_v23 = vand.u32 4294901760, %v536_v37 }
  0xa2   : > { %828 = vmatmul.f32.gmra.mxu2 %v827_v10  ;;  %v5788_v10 = vsub.f32 %v479_v46, %v5772_v42  ;;  %v842_v46 = vsub.f32 %v5778_v44, %v8268_v60  ;;  %v485_v60 = vmul.f32 %v386_v38, %v287_v55  ;;  %8585 = vst [vmem:[#allocation23_spill] sm:$0xff] %v5815_v23  ;;  %v290_v55 = vld [vmem:[%s5287_s29 + $0x120] sm:$0xff]  ;;  %v449_v44 = vld [vmem:[%s5294_s6 + $0x300] sm:$0xff] }
  0xa3   : > { %1017 = vmatmul.f32.gmra.mxu1 %v5667_v41  ;;  %1085 = vmatmul.f32.gmra.mxu3 %v5654_v54  ;;  %v5826_v38 = vsub.f32 %v536_v37, %v5815_v23 }
  0xa4   : > { %v843_v28 = vand.u32 4294901760, %v842_v46  ;;  %v5820_v9 = vand.u32 4294901760, %v485_v60  ;;  %v539_v46 = vmul.f32 %v440_v35, %v341_v51 }
  0xa5   : > { %692 = vmatmul.f32.gmra.mxu0 %v691_v5  ;;  %v8273_v5 = vand.u32 4294901760, %v5788_v10  ;;  %8586 = vst [vmem:[#allocation24_spill] sm:$0xff] %v5826_v38  ;;  %v8280_v35 = vand.u32 4294901760, %v5826_v38 }
  0xa6   : > { %v5839_v51 = vand.u32 4294901760, %v539_v46 }
  0xa7   : > { %v706_v33 = vsub.f32 %v5788_v10, %v8273_v5  ;;  %v389_v5 = vld [vmem:[%s5294_s6 + $0x120] sm:$0xff] }
  0xa8   : > { %8587 = vst [vmem:[#allocation25_spill] sm:$0xff] %v5839_v51 }
  0xa9   : > { %v707_v18 = vand.u32 4294901760, %v706_v33 }
  0xaa   : > { %836 = vmatmul.f32.gmra.mxu2 %v835_v12  ;;  %v5812_v12 = vsub.f32 %v482_v34, %v5796_v39  ;;  %v850_v34 = vsub.f32 %v5802_v19, %v8274_v43  ;;  %v488_v43 = vmul.f32 %v389_v5, %v290_v55  ;;  %v5850_v5 = vsub.f32 %v539_v46, %v5839_v51  ;;  %v293_v55 = vld [vmem:[%s5287_s29 + $0x138] sm:$0xff] }
  0xab   : > { %1021 = vmatmul.f32.gmra.mxu1 %v5706_v61  ;;  %1089 = vmatmul.f32.gmra.mxu3 %v5693_v56  ;;  %v446_v19 = vld [vmem:[%s5294_s6 + $0x2e8] sm:$0xff] }
  0xac   : > { %v851_v37 = vand.u32 4294901760, %v850_v34  ;;  %v5844_v50 = vand.u32 4294901760, %v488_v43  ;;  %8588 = vst [vmem:[#allocation26_spill] sm:$0xff] %v5850_v5  ;;  %v542_v34 = vmul.f32 %v443_v4, %v344_v63  ;;  %v8290_v4 = vand.u32 4294901760, %v5850_v5 }
  0xad   : > { %700 = vmatmul.f32.gmra.mxu0 %v699_v7  ;;  %v8279_v7 = vand.u32 4294901760, %v5812_v12 }
  0xae   : > { %v5863_v63 = vand.u32 4294901760, %v542_v34 }
  0xaf   : > { %v714_v33 = vsub.f32 %v5812_v12, %v8279_v7  ;;  %v392_v7 = vld [vmem:[%s5294_s6 + $0x138] sm:$0xff] }
  0xb0   : > { %8589 = vst [vmem:[#allocation27_spill] sm:$0xff] %v5863_v63 }
  0xb1   : > { %v715_v14 = vand.u32 4294901760, %v714_v33 }
  0xb2   : > { %844 = vmatmul.f32.gmra.mxu2 %v843_v28  ;;  %v5836_v28 = vsub.f32 %v485_v60, %v5820_v9  ;;  %v858_v60 = vsub.f32 %v5826_v38, %v8280_v35  ;;  %v491_v35 = vmul.f32 %v392_v7, %v293_v55  ;;  %v347_v38 = vld [vmem:[%s5287_s29 + $0x2e8] sm:$0xff]  ;;  %v5874_v7 = vsub.f32 %v542_v34, %v5863_v63  ;;  %v296_v55 = vld [vmem:[%s5287_s29 + $0x150] sm:$0xff] }
  0xb3   : > { %1025 = vmatmul.f32.gmra.mxu1 %v5744_v49  ;;  %1093 = vmatmul.f32.gmra.mxu3 %v5732_v36 }
  0xb4   : > { %v859_v46 = vand.u32 4294901760, %v858_v60  ;;  %8590 = vst [vmem:[#allocation28_spill] sm:$0xff] %v5874_v7  ;;  %v545_v60 = vmul.f32 %v446_v19, %v347_v38  ;;  %v8300_v19 = vand.u32 4294901760, %v5874_v7 }
  0xb5   : > { %708 = vmatmul.f32.gmra.mxu0 %v707_v18  ;;  %v8289_v18 = vand.u32 4294901760, %v5836_v28 }
  0xb6   : > { %v5887_v38 = vand.u32 4294901760, %v545_v60 }
  0xb7   : > { %v722_v33 = vsub.f32 %v5836_v28, %v8289_v18  ;;  %v395_v18 = vld [vmem:[%s5294_s6 + $0x150] sm:$0xff] }
  0xb8   : > { %8591 = vst [vmem:[#allocation29_spill] sm:$0xff] %v5887_v38 }
  0xb9   : > { %v723_v36 = vand.u32 4294901760, %v722_v33 }
  0xba   : > { %852 = vmatmul.f32.gmra.mxu2 %v851_v37  ;;  %v5860_v37 = vsub.f32 %v488_v43, %v5844_v50  ;;  %v866_v43 = vsub.f32 %v5850_v5, %v8290_v4  ;;  %v494_v4 = vmul.f32 %v395_v18, %v296_v55  ;;  %v350_v5 = vld [vmem:[%s5287_s29 + $0x300] sm:$0xff]  ;;  %v398_v55 = vld [vmem:[%s5294_s6 + $0x168] sm:$0xff] }
  0xbb   : > { %1029 = vmatmul.f32.gmra.mxu1 %v5772_v42  ;;  %1097 = vmatmul.f32.gmra.mxu3 %v5767_v6  ;;  %v5868_v6 = vand.u32 4294901760, %v491_v35  ;;  %v548_v18 = vmul.f32 %v449_v44, %v350_v5 }
  0xbc   : > { %v867_v34 = vand.u32 4294901760, %v866_v43  ;;  %v299_v43 = vld [vmem:[%s5287_s29 + $0x168] sm:$0xff] }
  0xbd   : > { %716 = vmatmul.f32.gmra.mxu0 %v715_v14  ;;  %v8299_v14 = vand.u32 4294901760, %v5860_v37  ;;  %v5911_v5 = vand.u32 4294901760, %v548_v18 }
  0xbf   : > { %v730_v33 = vsub.f32 %v5860_v37, %v8299_v14  ;;  %v874_v14 = vsub.f32 %v5874_v7, %v8300_v19  ;;  %v497_v19 = vmul.f32 %v398_v55, %v299_v43  ;;  %8593 = vst [vmem:[#allocation31_spill] sm:$0xff] %v5911_v5  ;;  %v401_v55 = vld [vmem:[%s5294_s6 + $0x180] sm:$0xff] }
  0xc1   : > { %v731_v56 = vand.u32 4294901760, %v730_v33 }
  0xc2   : > { %860 = vmatmul.f32.gmra.mxu2 %v859_v46  ;;  %v5884_v46 = vsub.f32 %v491_v35, %v5868_v6  ;;  %v5898_v35 = vsub.f32 %v545_v60, %v5887_v38  ;;  %v875_v60 = vand.u32 4294901760, %v874_v14  ;;  %v302_v14 = vld [vmem:[%s5287_s29 + $0x180] sm:$0xff] }
  0xc3   : > { %1033 = vmatmul.f32.gmra.mxu1 %v5796_v39  ;;  %1101 = vmatmul.f32.gmra.mxu3 %v5791_v24  ;;  %v5892_v24 = vand.u32 4294901760, %v494_v4 }
  0xc4   : > { %8592 = vst [vmem:[#allocation30_spill] sm:$0xff] %v5898_v35  ;;  %v8308_v44 = vand.u32 4294901760, %v5898_v35 }
  0xc5   : > { %724 = vmatmul.f32.gmra.mxu0 %v723_v36  ;;  %v8307_v36 = vand.u32 4294901760, %v5884_v46 }
  0xc7   : > { %v738_v33 = vsub.f32 %v5884_v46, %v8307_v36  ;;  %v882_v36 = vsub.f32 %v5898_v35, %v8308_v44  ;;  %v500_v44 = vmul.f32 %v401_v55, %v302_v14 }
  0xc9   : > { %v739_v7 = vand.u32 4294901760, %v738_v33  ;;  %v883_v35 = vand.u32 4294901760, %v882_v36  ;;  %v5946_v27 = vand.u32 4294901760, %v500_v44 }
  0xca   : > { %868 = vmatmul.f32.gmra.mxu2 %v867_v34  ;;  %v5908_v34 = vsub.f32 %v494_v4, %v5892_v24  ;;  %v5920_v4 = vsub.f32 %v548_v18, %v5911_v5 }
  0xcb   : > { %1037 = vmatmul.f32.gmra.mxu1 %v5820_v9  ;;  %1105 = vmatmul.f32.gmra.mxu3 %v5815_v23  ;;  %v5914_v23 = vand.u32 4294901760, %v497_v19  ;;  %v5957_v55 = vsub.f32 %v500_v44, %v5946_v27 }
  0xcc   : > { %v8319_v62 = vand.u32 4294901760, %v5908_v34  ;;  %8594 = vst [vmem:[#allocation32_spill] sm:$0xff] %v5920_v4  ;;  %v8320_v54 = vand.u32 4294901760, %v5920_v4 }
  0xcd   : > { %732 = vmatmul.f32.gmra.mxu0 %v731_v56  ;;  %v582_v56 = vld [vmem:[#allocation7 + $0xf8] sm:$0xff] }
  0xce   : > { %v5922_v43 = vand.u32 4294901760, %v582_v56  ;;  %v746_v18 = vsub.f32 %v5908_v34, %v8319_v62  ;;  %v581_v62 = vld [vmem:[#allocation7 + $0xf0] sm:$0xff] }
  0xd0   : > { %8595 = vst [vmem:[#allocation33_spill] sm:$0xff] %v5922_v43  ;;  %1933 = vmatpush.msra.mxu2 %v5922_v43  ;;  %v5930_v33 = vsub.f32 %v582_v56, %v5922_v43  ;;  %2673 = vmatpush.msra.mxu1 %v5922_v43 }
  0xd2   : > { %876 = vmatmul.f32.gmra.mxu2 %v875_v60  ;;  %v5937_v60 = vsub.f32 %v497_v19, %v5914_v23  ;;  %2460 = vmatpush.msra.mxu0 %v5930_v33  ;;  %v890_v19 = vsub.f32 %v5920_v4, %v8320_v54 }
  0xd3   : > { %1041 = vmatmul.f32.gmra.mxu1 %v5844_v50  ;;  %1109 = vmatmul.f32.gmra.mxu3 %v5839_v51  ;;  %v8318_v51 = vand.u32 4294901760, %v5930_v33 }
  0xd4   : > { %v8322_v43 = vand.u32 4294901760, %v5937_v60 }
  0xd5   : > { %740 = vmatmul.f32.gmra.mxu0 %v739_v7  ;;  %v2232_v56 = vsub.f32 %v5930_v33, %v8318_v51  ;;  %v747_v7 = vand.u32 4294901760, %v746_v18  ;;  %v891_v18 = vand.u32 4294901760, %v890_v19  ;;  %v8321_v51 = vand.u32 4294901760, %v5957_v55 }
  0xd6   : > { %v754_v14 = vsub.f32 %v5937_v60, %v8322_v43 }
  0xd7   : > { %v2233_v36 = vand.u32 4294901760, %v2232_v56  ;;  %v5960_v56 = vand.u32 4294901760, %v581_v62  ;;  %v762_v44 = vsub.f32 %v5957_v55, %v8321_v51  ;;  %v580_v51 = vld [vmem:[#allocation7 + $0xe8] sm:$0xff] }
  0xd9   : > { %2234 = vmatpush.msra.mxu3 %v2233_v36  ;;  %8596 = vst [vmem:[#allocation34_spill] sm:$0xff] %v5960_v56  ;;  %1935 = vmatpush.msra.mxu2 %v5960_v56 }
  0xda   : > { %884 = vmatmul.f32.gmra.mxu2 %v883_v35  ;;  %v755_v35 = vand.u32 4294901760, %v754_v14  ;;  %2675 = vmatpush.msra.mxu1 %v5960_v56  ;;  %v763_v14 = vand.u32 4294901760, %v762_v44  ;;  %v5987_v44 = vand.u32 4294901760, %v580_v51 }
  0xdb   : > { %1045 = vmatmul.f32.gmra.mxu1 %v5868_v6  ;;  %1113 = vmatmul.f32.gmra.mxu3 %v5863_v63  ;;  %v8601_v63 = vand.u32 4294901760, %v5507_v57 }
  0xdc   : > { %8597 = vst [vmem:[#allocation35_spill] sm:$0xff] %v5987_v44  ;;  %1937 = vmatpush.msra.mxu2 %v5987_v44  ;;  %2677 = vmatpush.msra.mxu1 %v5987_v44 }
  0xdd   : > { %748 = vmatmul.f32.gmra.mxu0 %v747_v7  ;;  %v5966_v7 = vsub.f32 %v581_v62, %v5960_v56 }
  0xdf   : > { %v8323_v19 = vand.u32 4294901760, %v5966_v7  ;;  %2463 = vmatpush.msra.mxu0 %v5966_v7 }
  0xe1   : > { %v2238_v36 = vsub.f32 %v5966_v7, %v8323_v19 }
  0xe2   : > { %892 = vmatmul.f32.gmra.mxu2 %v891_v18 }
  0xe3   : > { %1049 = vmatmul.f32.gmra.mxu1 %v5892_v24  ;;  %1117 = vmatmul.f32.gmra.mxu3 %v5887_v38  ;;  %v2239_v18 = vand.u32 4294901760, %v2238_v36  ;;  %v8598_v36 = vand.u32 4294901760, %v5474_v40 }
  0xe5   : > { %756 = vmatmul.f32.gmra.mxu0 %v755_v35  ;;  %2240 = vmatpush.msra.mxu3 %v2239_v18  ;;  %v5994_v18 = vsub.f32 %v580_v51, %v5987_v44 }
  0xe7   : > { %8599 = vst [vmem:[#allocation36_spill] sm:$0xff] %v5994_v18  ;;  %2466 = vmatpush.msra.mxu0 %v5994_v18 }
  0xea   : > { %1175 = vmatmul.f32.vlgmr.msrb.gmra.mxu2 %v5474_v40  ;;  %v5978_v62 = vpop.f32.mrf.mxu0 }
  0xeb   : > { %1053 = vmatmul.f32.gmra.mxu1 %v5914_v23  ;;  %1121 = vmatmul.f32.gmra.mxu3 %v5911_v5  ;;  %v8333_v5 = vand.u32 4294901760, %v5994_v18 }
  0xed   : > { %v773_v35 = vpop.f32.mrf.mxu2  ;;  %764 = vmatmul.f32.gmra.mxu0 %v763_v14  ;;  %v2244_v40 = vsub.f32 %v5994_v18, %v8333_v5 }
  0xf0   : > { %v5982_v54 = vpop.f32.mrf.mxu1 }
  0xf2   : > { %1180 = vmatmul.f32.gmra.mxu2 %v5507_v57  ;;  %v5985_v43 = vpop.f32.mrf.mxu0  ;;  %v579_v57 = vld [vmem:[#allocation7 + $0xe0] sm:$0xff] }
  0xf3   : > { %1057 = vmatmul.f32.gmra.mxu1 %v5946_v27  ;;  %1374 = vmatmul.f32.vlgmr.msrb.gmra.mxu3 %v8598_v36  ;;  %v2245_v36 = vand.u32 4294901760, %v2244_v40  ;;  %v8603_v40 = vand.u32 4294901760, %v5541_v32 }
  0xf5   : > { %v781_v14 = vpop.f32.mrf.mxu2  ;;  %1635 = vmatmul.f32.vlgmr.msrb.gmra.mxu0 %v5454_v58  ;;  %2246 = vmatpush.msra.mxu3 %v2245_v36 }
  0xf6   : > { %v1062_v19 = vpop.f32.mrf.mxu3 }
  0xf7   : > { %v6000_v38 = vadd.f32 %v1062_v19, %v773_v35 }
  0xf8   : > { %v6002_v4 = vpop.f32.mrf.mxu1 }
  0xf9   : > { %8600 = vst [vmem:[#allocation37_spill] sm:$0xff] %v6000_v38 }
  0xfa   : > { %1185 = vmatmul.f32.gmra.mxu2 %v5541_v32  ;;  %v6008_v51 = vpop.f32.mrf.mxu0 }
  0xfb   : > { %1380 = vmatmul.f32.gmra.mxu3 %v8601_v63  ;;  %1800 = vmatmul.f32.vlgmr.msrb.gmra.mxu1 %v5454_v58  ;;  %v6024_v58 = vand.u32 4294901760, %v579_v57 }
  0xfd   : > { %v789_v44 = vpop.f32.mrf.mxu2  ;;  %1639 = vmatmul.f32.gmra.mxu0 %v5480_v31  ;;  %8604 = vst [vmem:[#allocation39_spill] sm:$0xff] %v6024_v58  ;;  %1939 = vmatpush.msra.mxu2 %v6024_v58 }
  0xfe   : > { %v1066_v19 = vpop.f32.mrf.mxu3  ;;  %2679 = vmatpush.msra.mxu1 %v6024_v58 }
  0xff   : > { %v6014_v35 = vadd.f32 %v1066_v19, %v781_v14  ;;  %v6029_v14 = vsub.f32 %v579_v57, %v6024_v58  ;;  %v8607_v57 = vand.u32 4294901760, %v5574_v45 }
 0x100   : > { %v6016_v38 = vpop.f32.mrf.mxu1 }
 0x101   : > { %8602 = vst [vmem:[#allocation38_spill] sm:$0xff] %v6014_v35  ;;  %2469 = vmatpush.msra.mxu0 %v6029_v14 }
 0x102   : > { %1190 = vmatmul.f32.gmra.mxu2 %v5574_v45  ;;  %v6019_v5 = vpop.f32.mrf.mxu0  ;;  %8605 = vst [vmem:[#allocation40_spill] sm:$0xff] %v6029_v14 }
 0x103   : > { %1386 = vmatmul.f32.gmra.mxu3 %v8603_v40  ;;  %1804 = vmatmul.f32.gmra.mxu1 %v5480_v31  ;;  %v8337_v31 = vand.u32 4294901760, %v6029_v14 }
 0x105   : > { %v797_v63 = vpop.f32.mrf.mxu2  ;;  %1643 = vmatmul.f32.gmra.mxu0 %v5525_v48  ;;  %v2250_v35 = vsub.f32 %v6029_v14, %v8337_v31  ;;  %v8609_v31 = vand.u32 4294901760, %v5611_v22 }
 0x106   : > { %v1070_v36 = vpop.f32.mrf.mxu3 }
 0x107   : > { %v6032_v19 = vadd.f32 %v1070_v36, %v789_v44  ;;  %v2251_v44 = vand.u32 4294901760, %v2250_v35 }
 0x108   : > { %v6034_v32 = vpop.f32.mrf.mxu1 }
 0x109   : > { %8606 = vst [vmem:[#allocation41_spill] sm:$0xff] %v6032_v19  ;;  %2252 = vmatpush.msra.mxu3 %v2251_v44 }
 0x10a   : > { %1195 = vmatmul.f32.gmra.mxu2 %v5611_v22  ;;  %v6039_v40 = vpop.f32.mrf.mxu0 }
 0x10b   : > { %1392 = vmatmul.f32.gmra.mxu3 %v8607_v57  ;;  %1808 = vmatmul.f32.gmra.mxu1 %v5525_v48  ;;  %v578_v48 = vld [vmem:[#allocation7 + $0xd8] sm:$0xff] }
 0x10c   : > { %v6058_v45 = vand.u32 4294901760, %v578_v48 }
 0x10d   : > { %v805_v36 = vpop.f32.mrf.mxu2  ;;  %1647 = vmatmul.f32.gmra.mxu0 %v5555_v21 }
 0x10e   : > { %v1074_v19 = vpop.f32.mrf.mxu3  ;;  %8610 = vst [vmem:[#allocation43_spill] sm:$0xff] %v6058_v45  ;;  %1941 = vmatpush.msra.mxu2 %v6058_v45  ;;  %2681 = vmatpush.msra.mxu1 %v6058_v45 }
 0x10f   : > { %v6048_v58 = vadd.f32 %v1074_v19, %v797_v63  ;;  %v6063_v63 = vsub.f32 %v578_v48, %v6058_v45  ;;  %v8612_v48 = vand.u32 4294901760, %v5650_v3 }
 0x110   : > { %v6050_v56 = vpop.f32.mrf.mxu1 }
 0x111   : > { %8608 = vst [vmem:[#allocation42_spill] sm:$0xff] %v6048_v58  ;;  %2472 = vmatpush.msra.mxu0 %v6063_v63 }
 0x112   : > { %1200 = vmatmul.f32.gmra.mxu2 %v5650_v3  ;;  %v6053_v18 = vpop.f32.mrf.mxu0 }
 0x113   : > { %1398 = vmatmul.f32.gmra.mxu3 %v8609_v31  ;;  %1812 = vmatmul.f32.gmra.mxu1 %v5555_v21  ;;  %v8340_v21 = vand.u32 4294901760, %v6063_v63 }
 0x115   : > { %v813_v35 = vpop.f32.mrf.mxu2  ;;  %1651 = vmatmul.f32.gmra.mxu0 %v5591_v26  ;;  %v2256_v44 = vsub.f32 %v6063_v63, %v8340_v21  ;;  %v8614_v21 = vand.u32 4294901760, %v5689_v29 }
 0x116   : > { %v1078_v57 = vpop.f32.mrf.mxu3 }
 0x117   : > { %v6066_v19 = vadd.f32 %v1078_v57, %v805_v36  ;;  %v2257_v36 = vand.u32 4294901760, %v2256_v44 }
 0x118   : > { %v6068_v22 = vpop.f32.mrf.mxu1 }
 0x119   : > { %8611 = vst [vmem:[#allocation44_spill] sm:$0xff] %v6066_v19  ;;  %2258 = vmatpush.msra.mxu3 %v2257_v36  ;;  %v8618_v36 = vand.u32 4294901760, %v5728_v16 }
 0x11a   : > { %1205 = vmatmul.f32.gmra.mxu2 %v5689_v29  ;;  %v6073_v31 = vpop.f32.mrf.mxu0 }
 0x11b   : > { %1404 = vmatmul.f32.gmra.mxu3 %v8612_v48  ;;  %1816 = vmatmul.f32.gmra.mxu1 %v5591_v26  ;;  %v577_v26 = vld [vmem:[#allocation7 + $0xd0] sm:$0xff] }
 0x11c   : > { %v6092_v3 = vand.u32 4294901760, %v577_v26 }
 0x11d   : > { %v821_v57 = vpop.f32.mrf.mxu2  ;;  %1655 = vmatmul.f32.gmra.mxu0 %v5628_v20 }
 0x11e   : > { %v1082_v19 = vpop.f32.mrf.mxu3  ;;  %8615 = vst [vmem:[#allocation46_spill] sm:$0xff] %v6092_v3  ;;  %1943 = vmatpush.msra.mxu2 %v6092_v3  ;;  %2683 = vmatpush.msra.mxu1 %v6092_v3 }
 0x11f   : > { %v6082_v58 = vadd.f32 %v1082_v19, %v813_v35  ;;  %v6100_v19 = vsub.f32 %v577_v26, %v6092_v3 }
 0x120   : > { %v6084_v45 = vpop.f32.mrf.mxu1 }
 0x121   : > { %8613 = vst [vmem:[#allocation45_spill] sm:$0xff] %v6082_v58  ;;  %2475 = vmatpush.msra.mxu0 %v6100_v19 }
 0x122   : > { %1210 = vmatmul.f32.gmra.mxu2 %v5728_v16  ;;  %v6087_v14 = vpop.f32.mrf.mxu0  ;;  %8617 = vst [vmem:[#allocation48_spill] sm:$0xff] %v6100_v19 }
 0x123   : > { %1410 = vmatmul.f32.gmra.mxu3 %v8614_v21  ;;  %1820 = vmatmul.f32.gmra.mxu1 %v5628_v20  ;;  %v8342_v20 = vand.u32 4294901760, %v6100_v19 }
 0x125   : > { %v829_v44 = vpop.f32.mrf.mxu2  ;;  %1659 = vmatmul.f32.gmra.mxu0 %v5667_v41 }
 0x126   : > { %v1086_v48 = vpop.f32.mrf.mxu3 }
 0x127   : > { %v6097_v35 = vadd.f32 %v1086_v48, %v821_v57  ;;  %v2262_v57 = vsub.f32 %v6100_v19, %v8342_v20 }
 0x128   : > { %v6102_v29 = vpop.f32.mrf.mxu1 }
 0x129   : > { %8616 = vst [vmem:[#allocation47_spill] sm:$0xff] %v6097_v35  ;;  %v2263_v48 = vand.u32 4294901760, %v2262_v57 }
 0x12a   : > { %1215 = vmatmul.f32.gmra.mxu2 %v5764_v0  ;;  %v6107_v21 = vpop.f32.mrf.mxu0 }
 0x12b   : > { %1416 = vmatmul.f32.gmra.mxu3 %v8618_v36  ;;  %1824 = vmatmul.f32.gmra.mxu1 %v5667_v41  ;;  %v8620_v41 = vand.u32 4294901760, %v5764_v0  ;;  %v576_v36 = vld [vmem:[#allocation7 + $0xc8] sm:$0xff] }
 0x12c   : > { %2264 = vmatpush.msra.mxu3 %v2263_v48  ;;  %v6126_v20 = vand.u32 4294901760, %v576_v36 }
 0x12d   : > { %v837_v26 = vpop.f32.mrf.mxu2  ;;  %1663 = vmatmul.f32.gmra.mxu0 %v5706_v61 }
 0x12e   : > { %v1090_v35 = vpop.f32.mrf.mxu3  ;;  %8621 = vst [vmem:[#allocation50_spill] sm:$0xff] %v6126_v20  ;;  %1945 = vmatpush.msra.mxu2 %v6126_v20  ;;  %2685 = vmatpush.msra.mxu1 %v6126_v20  ;;  %v6134_v57 = vsub.f32 %v576_v36, %v6126_v20 }
 0x12f   : > { %v6116_v58 = vadd.f32 %v1090_v35, %v829_v44 }
 0x130   : > { %v6118_v3 = vpop.f32.mrf.mxu1  ;;  %8623 = vst [vmem:[#allocation52_spill] sm:$0xff] %v6134_v57  ;;  %2478 = vmatpush.msra.mxu0 %v6134_v57 }
 0x131   : > { %8619 = vst [vmem:[#allocation49_spill] sm:$0xff] %v6116_v58 }
 0x132   : > { %1220 = vmatmul.f32.gmra.mxu2 %v5788_v10  ;;  %v6121_v16 = vpop.f32.mrf.mxu0 }
 0x133   : > { %1422 = vmatmul.f32.gmra.mxu3 %v8620_v41  ;;  %1828 = vmatmul.f32.gmra.mxu1 %v5706_v61  ;;  %v8345_v61 = vand.u32 4294901760, %v6134_v57  ;;  %v8624_v41 = vand.u32 4294901760, %v5788_v10 }
 0x135   : > { %v845_v19 = vpop.f32.mrf.mxu2  ;;  %1667 = vmatmul.f32.gmra.mxu0 %v5744_v49 }
 0x136   : > { %v1094_v44 = vpop.f32.mrf.mxu3 }
 0x137   : > { %v6131_v35 = vadd.f32 %v1094_v44, %v837_v26  ;;  %v2268_v26 = vsub.f32 %v6134_v57, %v8345_v61 }
 0x138   : > { %v6136_v0 = vpop.f32.mrf.mxu1 }
 0x139   : > { %8622 = vst [vmem:[#allocation51_spill] sm:$0xff] %v6131_v35  ;;  %v2269_v44 = vand.u32 4294901760, %v2268_v26 }
 0x13a   : > { %1225 = vmatmul.f32.gmra.mxu2 %v5812_v12  ;;  %v6141_v48 = vpop.f32.mrf.mxu0 }
 0x13b   : > { %1428 = vmatmul.f32.gmra.mxu3 %v8624_v41  ;;  %1832 = vmatmul.f32.gmra.mxu1 %v5744_v49  ;;  %v8626_v49 = vand.u32 4294901760, %v5812_v12  ;;  %v575_v41 = vld [vmem:[#allocation7 + $0xc0] sm:$0xff] }
 0x13c   : > { %2270 = vmatpush.msra.mxu3 %v2269_v44  ;;  %v6160_v61 = vand.u32 4294901760, %v575_v41 }
 0x13d   : > { %v853_v36 = vpop.f32.mrf.mxu2  ;;  %1671 = vmatmul.f32.gmra.mxu0 %v5772_v42 }
 0x13e   : > { %v1098_v35 = vpop.f32.mrf.mxu3  ;;  %8627 = vst [vmem:[#allocation54_spill] sm:$0xff] %v6160_v61  ;;  %1947 = vmatpush.msra.mxu2 %v6160_v61  ;;  %2687 = vmatpush.msra.mxu1 %v6160_v61  ;;  %v6168_v26 = vsub.f32 %v575_v41, %v6160_v61 }
 0x13f   : > { %v6150_v58 = vadd.f32 %v1098_v35, %v845_v19 }
 0x140   : > { %v6152_v20 = vpop.f32.mrf.mxu1  ;;  %8629 = vst [vmem:[#allocation56_spill] sm:$0xff] %v6168_v26  ;;  %2481 = vmatpush.msra.mxu0 %v6168_v26 }
 0x141   : > { %8625 = vst [vmem:[#allocation53_spill] sm:$0xff] %v6150_v58 }
 0x142   : > { %1230 = vmatmul.f32.gmra.mxu2 %v5836_v28  ;;  %v6155_v10 = vpop.f32.mrf.mxu0 }
 0x143   : > { %1434 = vmatmul.f32.gmra.mxu3 %v8626_v49  ;;  %1836 = vmatmul.f32.gmra.mxu1 %v5772_v42  ;;  %v8348_v42 = vand.u32 4294901760, %v6168_v26  ;;  %v8630_v49 = vand.u32 4294901760, %v5836_v28 }
 0x145   : > { %v861_v57 = vpop.f32.mrf.mxu2  ;;  %1675 = vmatmul.f32.gmra.mxu0 %v5796_v39 }
 0x146   : > { %v1102_v19 = vpop.f32.mrf.mxu3 }
 0x147   : > { %v6165_v35 = vadd.f32 %v1102_v19, %v853_v36  ;;  %v2274_v36 = vsub.f32 %v6168_v26, %v8348_v42 }
 0x148   : > { %v6170_v12 = vpop.f32.mrf.mxu1 }
 0x149   : > { %8628 = vst [vmem:[#allocation55_spill] sm:$0xff] %v6165_v35  ;;  %v2275_v19 = vand.u32 4294901760, %v2274_v36 }
 0x14a   : > { %1235 = vmatmul.f32.gmra.mxu2 %v5860_v37  ;;  %v6175_v44 = vpop.f32.mrf.mxu0 }
 0x14b   : > { %1440 = vmatmul.f32.gmra.mxu3 %v8630_v49  ;;  %1840 = vmatmul.f32.gmra.mxu1 %v5796_v39  ;;  %v8632_v39 = vand.u32 4294901760, %v5860_v37  ;;  %v574_v49 = vld [vmem:[#allocation7 + $0xb8] sm:$0xff] }
 0x14c   : > { %2276 = vmatpush.msra.mxu3 %v2275_v19  ;;  %v6194_v42 = vand.u32 4294901760, %v574_v49 }
 0x14d   : > { %v869_v41 = vpop.f32.mrf.mxu2  ;;  %1679 = vmatmul.f32.gmra.mxu0 %v5820_v9 }
 0x14e   : > { %v1106_v35 = vpop.f32.mrf.mxu3  ;;  %8633 = vst [vmem:[#allocation58_spill] sm:$0xff] %v6194_v42  ;;  %1949 = vmatpush.msra.mxu2 %v6194_v42  ;;  %2689 = vmatpush.msra.mxu1 %v6194_v42  ;;  %v6202_v36 = vsub.f32 %v574_v49, %v6194_v42 }
 0x14f   : > { %v6184_v58 = vadd.f32 %v1106_v35, %v861_v57 }
 0x150   : > { %v6186_v61 = vpop.f32.mrf.mxu1  ;;  %2484 = vmatpush.msra.mxu0 %v6202_v36 }
 0x151   : > { %8631 = vst [vmem:[#allocation57_spill] sm:$0xff] %v6184_v58 }
 0x152   : > { %1240 = vmatmul.f32.gmra.mxu2 %v5884_v46  ;;  %v6189_v28 = vpop.f32.mrf.mxu0 }
 0x153   : > { %1446 = vmatmul.f32.gmra.mxu3 %v8632_v39  ;;  %1844 = vmatmul.f32.gmra.mxu1 %v5820_v9  ;;  %v8351_v9 = vand.u32 4294901760, %v6202_v36  ;;  %v8635_v39 = vand.u32 4294901760, %v5884_v46 }
 0x155   : > { %v877_v26 = vpop.f32.mrf.mxu2  ;;  %1683 = vmatmul.f32.gmra.mxu0 %v5844_v50 }
 0x156   : > { %v1110_v57 = vpop.f32.mrf.mxu3 }
 0x157   : > { %v6199_v35 = vadd.f32 %v1110_v57, %v869_v41  ;;  %v2280_v41 = vsub.f32 %v6202_v36, %v8351_v9 }
 0x158   : > { %v6204_v37 = vpop.f32.mrf.mxu1 }
 0x159   : > { %8634 = vst [vmem:[#allocation59_spill] sm:$0xff] %v6199_v35  ;;  %v2281_v57 = vand.u32 4294901760, %v2280_v41 }
 0x15a   : > { %1245 = vmatmul.f32.gmra.mxu2 %v5908_v34  ;;  %v6209_v19 = vpop.f32.mrf.mxu0 }
 0x15b   : > { %1452 = vmatmul.f32.gmra.mxu3 %v8635_v39  ;;  %1848 = vmatmul.f32.gmra.mxu1 %v5844_v50  ;;  %v8637_v50 = vand.u32 4294901760, %v5908_v34 }
 0x15c   : > { %2282 = vmatpush.msra.mxu3 %v2281_v57 }
 0x15d   : > { %v885_v49 = vpop.f32.mrf.mxu2  ;;  %1687 = vmatmul.f32.gmra.mxu0 %v5868_v6 }
 0x15e   : > { %v1114_v35 = vpop.f32.mrf.mxu3 }
 0x15f   : > { %v6218_v58 = vadd.f32 %v1114_v35, %v877_v26  ;;  %v573_v26 = vld [vmem:[#allocation7 + $0xb0] sm:$0xff] }
 0x160   : > { %v6220_v42 = vpop.f32.mrf.mxu1  ;;  %v6233_v57 = vand.u32 4294901760, %v573_v26 }
 0x161   : > { %8636 = vst [vmem:[#allocation60_spill] sm:$0xff] %v6218_v58 }
 0x162   : > { %1250 = vmatmul.f32.gmra.mxu2 %v5937_v60  ;;  %v6223_v46 = vpop.f32.mrf.mxu0  ;;  %8639 = vst [vmem:[#allocation62_spill] sm:$0xff] %v6233_v57  ;;  %v6239_v34 = vsub.f32 %v573_v26, %v6233_v57  ;;  %2691 = vmatpush.msra.mxu1 %v6233_v57 }
 0x163   : > { %1458 = vmatmul.f32.gmra.mxu3 %v8637_v50  ;;  %1852 = vmatmul.f32.gmra.mxu1 %v5868_v6  ;;  %v8641_v6 = vand.u32 4294901760, %v5937_v60 }
 0x164   : > { %1951 = vmatpush.msra.mxu2 %v6233_v57  ;;  %2487 = vmatpush.msra.mxu0 %v6239_v34 }
 0x165   : > { %v893_v39 = vpop.f32.mrf.mxu2  ;;  %1691 = vmatmul.f32.gmra.mxu0 %v5892_v24 }
 0x166   : > { %v1118_v9 = vpop.f32.mrf.mxu3 }
 0x167   : > { %v6229_v41 = vadd.f32 %v1118_v9, %v885_v49  ;;  %v995_v9 = vadd.f32 %v5982_v54, %v5978_v62  ;;  %v8352_v49 = vand.u32 4294901760, %v6239_v34 }
 0x168   : > { %v6231_v35 = vpop.f32.mrf.mxu1 }
 0x169   : > { %8638 = vst [vmem:[#allocation61_spill] sm:$0xff] %v6229_v41  ;;  %v2286_v60 = vsub.f32 %v6239_v34, %v8352_v49 }
 0x16a   : > { %1255 = vmatmul.f32.gmra.mxu2 %v5957_v55  ;;  %v6236_v58 = vpop.f32.mrf.mxu0 }
 0x16b   : > { %8640 = vst [vmem:[#allocation63_spill] sm:$0xff] %v6236_v58  ;;  %1464 = vmatmul.f32.gmra.mxu3 %v8641_v6  ;;  %1856 = vmatmul.f32.gmra.mxu1 %v5892_v24  ;;  %v2287_v54 = vand.u32 4294901760, %v2286_v60  ;;  %v8644_v58 = vand.u32 4294901760, %v5957_v55 }
 0x16d   : > { %v1176_v50 = vpop.f32.mrf.mxu2  ;;  %1695 = vmatmul.f32.gmra.mxu0 %v5914_v23  ;;  %2288 = vmatpush.msra.mxu3 %v2287_v54 }
 0x16e   : > { %v1122_v26 = vpop.f32.mrf.mxu3  ;;  %v1177_v41 = vadd.f32 %v1176_v50, %v995_v9  ;;  %v999_v9 = vadd.f32 %v6002_v4, %v5985_v43  ;;  %v8645_v4 = vand.u32 4294901760, %v5428_v25  ;;  %v1003_v43 = vadd.f32 %v6016_v38, %v6008_v51 }
 0x16f   : > { %v6254_v6 = vadd.f32 %v1122_v26, %v893_v39 }
 0x170   : > { %v6256_v24 = vpop.f32.mrf.mxu1 }
 0x171   : > { %8642 = vst [vmem:[#allocation64_spill] sm:$0xff] %v6254_v6  ;;  %v572_v6 = vld [vmem:[#allocation7 + $0xa8] sm:$0xff] }
 0x172   : > { %8643 = vst [vmem:[#allocation65_spill] sm:$0xff] %v6256_v24  ;;  %1260 = vmatmul.f32.gmra.mxu2 %v5428_v25  ;;  %v1636_v62 = vpop.f32.mrf.mxu0  ;;  %v6265_v24 = vand.u32 4294901760, %v572_v6 }
 0x173   : > { %1470 = vmatmul.f32.gmra.mxu3 %v8644_v58  ;;  %1860 = vmatmul.f32.gmra.mxu1 %v5914_v23 }
 0x174   : > { %v6269_v58 = vsub.f32 %v572_v6, %v6265_v24  ;;  %2693 = vmatpush.msra.mxu1 %v6265_v24  ;;  %1953 = vmatpush.msra.mxu2 %v6265_v24 }
 0x175   : > { %v1181_v50 = vpop.f32.mrf.mxu2  ;;  %1699 = vmatmul.f32.gmra.mxu0 %v5946_v27 }
 0x176   : > { %v1182_v39 = vadd.f32 %v1181_v50, %v999_v9  ;;  %v1375_v26 = vpop.f32.mrf.mxu3  ;;  %2490 = vmatpush.msra.mxu0 %v6269_v58  ;;  %v8646_v50 = vand.u32 4294901760, %v5488_v47 }
 0x177   : > { %v1376_v49 = vadd.f32 %v1375_v26, %v1177_v41  ;;  %v2291_v41 = vand.u32 4294901760, %v6269_v58  ;;  %v1007_v26 = vadd.f32 %v6034_v32, %v6019_v5  ;;  %v8647_v5 = vand.u32 4294901760, %v5531_v52 }
 0x178   : > { %v1801_v60 = vpop.f32.mrf.mxu1  ;;  %v1011_v32 = vadd.f32 %v6050_v56, %v6039_v40 }
 0x179   : > { %v1637_v57 = vadd.f32 %v1636_v62, %v1376_v49  ;;  %v2292_v25 = vsub.f32 %v6269_v58, %v2291_v41 }
 0x17a   : > { %1265 = vmatmul.f32.gmra.mxu2 %v5488_v47  ;;  %v1640_v55 = vpop.f32.mrf.mxu0 }
 0x17b   : > { %v6272_v23 = vadd.f32 %v1801_v60, %v1637_v57  ;;  %1476 = vmatmul.f32.gmra.mxu3 %v8645_v4  ;;  %1864 = vmatmul.f32.gmra.mxu1 %v5946_v27  ;;  %v2293_v62 = vand.u32 4294901760, %v2292_v25 }
 0x17d   : > { %v1186_v49 = vpop.f32.mrf.mxu2  ;;  %1703 = vmatmul.f32.gmra.mxu0 %v5414_v1  ;;  %2294 = vmatpush.msra.mxu3 %v2293_v62 }
 0x17e   : > { %v1187_v6 = vadd.f32 %v1186_v49, %v1003_v43  ;;  %v1381_v57 = vpop.f32.mrf.mxu3  ;;  %v571_v43 = vld [vmem:[#allocation7 + $0xa0] sm:$0xff] }
 0x17f   : > { %v1382_v54 = vadd.f32 %v1381_v57, %v1182_v39  ;;  %v6295_v57 = vand.u32 4294901760, %v571_v43 }
 0x180   : > { %v1805_v27 = vpop.f32.mrf.mxu1 }
 0x181   : > { %v1641_v9 = vadd.f32 %v1640_v55, %v1382_v54  ;;  %v6299_v54 = vsub.f32 %v571_v43, %v6295_v57  ;;  %2695 = vmatpush.msra.mxu1 %v6295_v57  ;;  %1955 = vmatpush.msra.mxu2 %v6295_v57 }
 0x182   : > { %1270 = vmatmul.f32.gmra.mxu2 %v5531_v52  ;;  %v1644_v38 = vpop.f32.mrf.mxu0 }
 0x183   : > { %v6287_v51 = vadd.f32 %v1805_v27, %v1641_v9  ;;  %1482 = vmatmul.f32.gmra.mxu3 %v8646_v50  ;;  %1868 = vmatmul.f32.gmra.mxu1 %v5414_v1 }
 0x184   : > { %2493 = vmatpush.msra.mxu0 %v6299_v54 }
 0x185   : > { %v1191_v60 = vpop.f32.mrf.mxu2  ;;  %1707 = vmatmul.f32.gmra.mxu0 %v5464_v2 }
 0x186   : > { %v1192_v39 = vadd.f32 %v1191_v60, %v1007_v26  ;;  %v1387_v4 = vpop.f32.mrf.mxu3  ;;  %v8648_v60 = vand.u32 4294901760, %v5561_v53 }
 0x187   : > { %v1388_v55 = vadd.f32 %v1387_v4, %v1187_v6  ;;  %v2297_v6 = vand.u32 4294901760, %v6299_v54  ;;  %v1015_v4 = vadd.f32 %v6068_v22, %v6053_v18  ;;  %v8649_v18 = vand.u32 4294901760, %v5598_v15 }
 0x188   : > { %v1809_v49 = vpop.f32.mrf.mxu1  ;;  %v1019_v22 = vadd.f32 %v6084_v45, %v6073_v31 }
 0x189   : > { %v1645_v25 = vadd.f32 %v1644_v38, %v1388_v55  ;;  %v2298_v52 = vsub.f32 %v6299_v54, %v2297_v6  ;;  %v8703_v54 = vld [vmem:[#allocation63_spill] sm:$0xff] }
 0x18a   : > { %1275 = vmatmul.f32.gmra.mxu2 %v5561_v53  ;;  %v1648_v47 = vpop.f32.mrf.mxu0 }
 0x18b   : > { %v6302_v1 = vadd.f32 %v1809_v49, %v1645_v25  ;;  %1488 = vmatmul.f32.gmra.mxu3 %v8647_v5  ;;  %1872 = vmatmul.f32.gmra.mxu1 %v5464_v2  ;;  %v2299_v50 = vand.u32 4294901760, %v2298_v52  ;;  %v570_v25 = vld [vmem:[#allocation7 + $0x98] sm:$0xff] }
 0x18c   : > { %v6325_v5 = vand.u32 4294901760, %v570_v25 }
 0x18d   : > { %v1196_v27 = vpop.f32.mrf.mxu2  ;;  %1711 = vmatmul.f32.gmra.mxu0 %v5511_v8  ;;  %2300 = vmatpush.msra.mxu3 %v2299_v50 }
 0x18e   : > { %v1197_v62 = vadd.f32 %v1196_v27, %v1011_v32  ;;  %v1393_v9 = vpop.f32.mrf.mxu3  ;;  %v6329_v27 = vsub.f32 %v570_v25, %v6325_v5  ;;  %2697 = vmatpush.msra.mxu1 %v6325_v5  ;;  %1957 = vmatpush.msra.mxu2 %v6325_v5 }
 0x18f   : > { %v1394_v38 = vadd.f32 %v1393_v9, %v1192_v39 }
 0x190   : > { %v1813_v2 = vpop.f32.mrf.mxu1  ;;  %2496 = vmatpush.msra.mxu0 %v6329_v27 }
 0x191   : > { %v1649_v26 = vadd.f32 %v1648_v47, %v1394_v38 }
 0x192   : > { %1280 = vmatmul.f32.gmra.mxu2 %v5598_v15  ;;  %v1652_v56 = vpop.f32.mrf.mxu0 }
 0x193   : > { %v6317_v40 = vadd.f32 %v1813_v2, %v1649_v26  ;;  %1494 = vmatmul.f32.gmra.mxu3 %v8648_v60  ;;  %1876 = vmatmul.f32.gmra.mxu1 %v5511_v8  ;;  %v1023_v60 = vadd.f32 %v6102_v29, %v6087_v14  ;;  %v1027_v14 = vadd.f32 %v6118_v3, %v6107_v21 }
 0x195   : > { %v1201_v55 = vpop.f32.mrf.mxu2  ;;  %1715 = vmatmul.f32.gmra.mxu0 %v5546_v30 }
 0x196   : > { %v1202_v39 = vadd.f32 %v1201_v55, %v1015_v4  ;;  %v1399_v43 = vpop.f32.mrf.mxu3 }
 0x197   : > { %v1400_v49 = vadd.f32 %v1399_v43, %v1197_v62  ;;  %v2303_v62 = vand.u32 4294901760, %v6329_v27 }
 0x198   : > { %v1817_v47 = vpop.f32.mrf.mxu1 }
 0x199   : > { %v1653_v32 = vadd.f32 %v1652_v56, %v1400_v49  ;;  %v2304_v15 = vsub.f32 %v6329_v27, %v2303_v62  ;;  %v8650_v56 = vand.u32 4294901760, %v5636_v17 }
 0x19a   : > { %1285 = vmatmul.f32.gmra.mxu2 %v5636_v17  ;;  %v1656_v53 = vpop.f32.mrf.mxu0 }
 0x19b   : > { %v6332_v8 = vadd.f32 %v1817_v47, %v1653_v32  ;;  %1500 = vmatmul.f32.gmra.mxu3 %v8649_v18  ;;  %1880 = vmatmul.f32.gmra.mxu1 %v5546_v30  ;;  %v2305_v50 = vand.u32 4294901760, %v2304_v15  ;;  %v569_v47 = vld [vmem:[#allocation7 + $0x90] sm:$0xff]  ;;  %v8651_v32 = vld [vmem:[#allocation16_spill] sm:$0xff] }
 0x19c   : > { %v6356_v18 = vand.u32 4294901760, %v569_v47 }
 0x19d   : > { %v1206_v9 = vpop.f32.mrf.mxu2  ;;  %1719 = vmatmul.f32.gmra.mxu0 %v5579_v59  ;;  %2306 = vmatpush.msra.mxu3 %v2305_v50 }
 0x19e   : > { %v1207_v52 = vadd.f32 %v1206_v9, %v1019_v22  ;;  %v1405_v38 = vpop.f32.mrf.mxu3  ;;  %1959 = vmatpush.msra.mxu2 %v6356_v18  ;;  %v6367_v29 = vsub.f32 %v569_v47, %v6356_v18  ;;  %2699 = vmatpush.msra.mxu1 %v6356_v18  ;;  %v8653_v9 = vld [vmem:[#allocation14_spill] sm:$0xff]  ;;  %v568_v47 = vld [vmem:[#allocation7 + $0x88] sm:$0xff] }
 0x19f   : > { %v1406_v2 = vadd.f32 %v1405_v38, %v1202_v39 }
 0x1a0   : > { %v1821_v30 = vpop.f32.mrf.mxu1  ;;  %2499 = vmatpush.msra.mxu0 %v6367_v29 }
 0x1a1   : > { %v1657_v26 = vadd.f32 %v1656_v53, %v1406_v2  ;;  %v8654_v2 = vld [vmem:[#allocation18_spill] sm:$0xff] }
 0x1a2   : > { %1290 = vmatmul.f32.gmra.mxu2 %v5675_v11  ;;  %v1660_v45 = vpop.f32.mrf.mxu0 }
 0x1a3   : > { %v6347_v31 = vadd.f32 %v1821_v30, %v1657_v26  ;;  %1506 = vmatmul.f32.gmra.mxu3 %v8650_v56  ;;  %1884 = vmatmul.f32.gmra.mxu1 %v5579_v59  ;;  %v8652_v59 = vand.u32 4294901760, %v5675_v11  ;;  %v2309_v11 = vand.u32 4294901760, %v6367_v29  ;;  %v1031_v56 = vadd.f32 %v6136_v0, %v6121_v16 }
 0x1a4   : > { %v1035_v16 = vadd.f32 %v6152_v20, %v6141_v48 }
 0x1a5   : > { %v1211_v4 = vpop.f32.mrf.mxu2  ;;  %1723 = vmatmul.f32.gmra.mxu0 %v5615_v13  ;;  %v2310_v3 = vsub.f32 %v6367_v29, %v2309_v11 }
 0x1a6   : > { %v1212_v55 = vadd.f32 %v1211_v4, %v1023_v60  ;;  %v1411_v39 = vpop.f32.mrf.mxu3  ;;  %v8656_v4 = vld [vmem:[#allocation15_spill] sm:$0xff] }
 0x1a7   : > { %v1412_v43 = vadd.f32 %v1411_v39, %v1207_v52  ;;  %v2311_v50 = vand.u32 4294901760, %v2310_v3 }
 0x1a8   : > { %v1825_v49 = vpop.f32.mrf.mxu1 }
 0x1a9   : > { %v1661_v25 = vadd.f32 %v1660_v45, %v1412_v43  ;;  %v8655_v45 = vand.u32 4294901760, %v8651_v32  ;;  %2312 = vmatpush.msra.mxu3 %v2311_v50 }
 0x1aa   : > { %1295 = vmatmul.f32.gmra.mxu2 %v8651_v32  ;;  %v1664_v53 = vpop.f32.mrf.mxu0  ;;  %v6386_v32 = vand.u32 4294901760, %v568_v47 }
 0x1ab   : > { %v6358_v17 = vadd.f32 %v1825_v49, %v1661_v25  ;;  %1512 = vmatmul.f32.gmra.mxu3 %v8652_v59  ;;  %1888 = vmatmul.f32.gmra.mxu1 %v5615_v13 }
 0x1ac   : > { %1961 = vmatpush.msra.mxu2 %v6386_v32  ;;  %v6397_v0 = vsub.f32 %v568_v47, %v6386_v32  ;;  %2701 = vmatpush.msra.mxu1 %v6386_v32 }
 0x1ad   : > { %v1216_v22 = vpop.f32.mrf.mxu2  ;;  %1727 = vmatmul.f32.gmra.mxu0 %v8653_v9 }
 0x1ae   : > { %v1217_v52 = vadd.f32 %v1216_v22, %v1027_v14  ;;  %v1417_v38 = vpop.f32.mrf.mxu3  ;;  %v8658_v22 = vand.u32 4294901760, %v8654_v2  ;;  %2502 = vmatpush.msra.mxu0 %v6397_v0 }
 0x1af   : > { %v1418_v13 = vadd.f32 %v1417_v38, %v1212_v55 }
 0x1b0   : > { %v1829_v15 = vpop.f32.mrf.mxu1 }
 0x1b1   : > { %v1665_v21 = vadd.f32 %v1664_v53, %v1418_v13  ;;  %v8657_v53 = vld [vmem:[#allocation20_spill] sm:$0xff] }
 0x1b2   : > { %1300 = vmatmul.f32.gmra.mxu2 %v8654_v2  ;;  %v1668_v30 = vpop.f32.mrf.mxu0  ;;  %v8660_v2 = vld [vmem:[#allocation22_spill] sm:$0xff] }
 0x1b3   : > { %v6377_v26 = vadd.f32 %v1829_v15, %v1665_v21  ;;  %1518 = vmatmul.f32.gmra.mxu3 %v8655_v45  ;;  %1892 = vmatmul.f32.gmra.mxu1 %v8653_v9  ;;  %v2315_v15 = vand.u32 4294901760, %v6397_v0 }
 0x1b5   : > { %v1221_v60 = vpop.f32.mrf.mxu2  ;;  %1731 = vmatmul.f32.gmra.mxu0 %v8656_v4  ;;  %v2316_v20 = vsub.f32 %v6397_v0, %v2315_v15 }
 0x1b6   : > { %v1222_v55 = vadd.f32 %v1221_v60, %v1031_v56  ;;  %v1423_v39 = vpop.f32.mrf.mxu3  ;;  %v8661_v56 = vand.u32 4294901760, %v8657_v53  ;;  %v1039_v60 = vadd.f32 %v6170_v12, %v6155_v10  ;;  %v1043_v10 = vadd.f32 %v6186_v61, %v6175_v44 }
 0x1b7   : > { %v1424_v43 = vadd.f32 %v1423_v39, %v1217_v52  ;;  %v8659_v52 = vld [vmem:[#allocation17_spill] sm:$0xff]  ;;  %v2317_v50 = vand.u32 4294901760, %v2316_v20  ;;  %v8667_v44 = vand.u32 4294901760, %v5966_v7 }
 0x1b8   : > { %v1833_v49 = vpop.f32.mrf.mxu1 }
 0x1b9   : > { %v1669_v25 = vadd.f32 %v1668_v30, %v1424_v43  ;;  %2318 = vmatpush.msra.mxu3 %v2317_v50 }
 0x1ba   : > { %1305 = vmatmul.f32.gmra.mxu2 %v8657_v53  ;;  %v1672_v59 = vpop.f32.mrf.mxu0 }
 0x1bb   : > { %v6388_v14 = vadd.f32 %v1833_v49, %v1669_v25  ;;  %1524 = vmatmul.f32.gmra.mxu3 %v8658_v22  ;;  %1896 = vmatmul.f32.gmra.mxu1 %v8656_v4  ;;  %v8663_v22 = vld [vmem:[#allocation24_spill] sm:$0xff] }
 0x1bc   : > { %v8671_v7 = vand.u32 4294901760, %v8663_v22 }
 0x1bd   : > { %v1226_v9 = vpop.f32.mrf.mxu2  ;;  %1735 = vmatmul.f32.gmra.mxu0 %v8659_v52 }
 0x1be   : > { %v1227_v38 = vadd.f32 %v1226_v9, %v1035_v16  ;;  %v1429_v13 = vpop.f32.mrf.mxu3 }
 0x1bf   : > { %v1430_v3 = vadd.f32 %v1429_v13, %v1222_v55  ;;  %v8662_v55 = vld [vmem:[#allocation19_spill] sm:$0xff]  ;;  %v8665_v13 = vld [vmem:[#allocation21_spill] sm:$0xff] }
 0x1c0   : > { %v1837_v21 = vpop.f32.mrf.mxu1 }
 0x1c1   : > { %v1673_v48 = vadd.f32 %v1672_v59, %v1430_v3  ;;  %v567_v59 = vld [vmem:[#allocation7 + $0x80] sm:$0xff]  ;;  %v8666_v3 = vand.u32 4294901760, %v5930_v33  ;;  %v8670_v33 = vld [vmem:[#allocation26_spill] sm:$0xff] }
 0x1c2   : > { %1310 = vmatmul.f32.gmra.mxu2 %v8660_v2  ;;  %v1676_v30 = vpop.f32.mrf.mxu0  ;;  %v6416_v53 = vand.u32 4294901760, %v567_v59 }
 0x1c3   : > { %v6407_v45 = vadd.f32 %v1837_v21, %v1673_v48  ;;  %1530 = vmatmul.f32.gmra.mxu3 %v8661_v56  ;;  %1900 = vmatmul.f32.gmra.mxu1 %v8659_v52  ;;  %v8664_v52 = vand.u32 4294901760, %v8660_v2  ;;  %v8668_v56 = vld [vmem:[#allocation36_spill] sm:$0xff] }
 0x1c4   : > { %1963 = vmatpush.msra.mxu2 %v6416_v53  ;;  %v6427_v12 = vsub.f32 %v567_v59, %v6416_v53  ;;  %2703 = vmatpush.msra.mxu1 %v6416_v53  ;;  %v8674_v59 = vld [vmem:[#allocation23_spill] sm:$0xff] }
 0x1c5   : > { %v1231_v4 = vpop.f32.mrf.mxu2  ;;  %1739 = vmatmul.f32.gmra.mxu0 %v8662_v55 }
 0x1c6   : > { %v1232_v39 = vadd.f32 %v1231_v4, %v1039_v60  ;;  %v1435_v43 = vpop.f32.mrf.mxu3  ;;  %2906 = vmatpush.msrb.mxu2 %v8666_v3  ;;  %v2321_v48 = vand.u32 4294901760, %v6427_v12  ;;  %2505 = vmatpush.msra.mxu0 %v6427_v12  ;;  %v8669_v60 = vand.u32 4294901760, %v8668_v56  ;;  %v354_v3 = vld [vmem:[%s5294_s6 + $0x8] sm:$0xff] }
 0x1c7   : > { %v1436_v49 = vadd.f32 %v1435_v43, %v1227_v38 }
 0x1c8   : > { %v1841_v25 = vpop.f32.mrf.mxu1  ;;  %2910 = vmatpush.msrb.mxu2 %v8667_v44 }
 0x1c9   : > { %v1677_v47 = vadd.f32 %v1676_v30, %v1436_v49  ;;  %v2322_v30 = vsub.f32 %v6427_v12, %v2321_v48  ;;  %v8672_v49 = vld [vmem:[#allocation40_spill] sm:$0xff] }
 0x1ca   : > { %1315 = vmatmul.f32.gmra.mxu2 %v8663_v22  ;;  %v1680_v16 = vpop.f32.mrf.mxu0  ;;  %v8676_v22 = vand.u32 4294901760, %v6063_v63  ;;  %v8682_v63 = vand.u32 4294901760, %v8670_v33  ;;  %v267_v12 = vld [vmem:[%s5287_s29 + $0x68] sm:$0xff] }
 0x1cb   : > { %v6418_v9 = vadd.f32 %v1841_v25, %v1677_v47  ;;  %1536 = vmatmul.f32.gmra.mxu3 %v8664_v52  ;;  %1904 = vmatmul.f32.gmra.mxu1 %v8662_v55  ;;  %v2323_v55 = vand.u32 4294901760, %v2322_v30  ;;  %v8673_v25 = vand.u32 4294901760, %v8672_v49  ;;  %v8680_v30 = vld [vmem:[#allocation35_spill] sm:$0xff]  ;;  %v8686_v49 = vld [vmem:[#allocation25_spill] sm:$0xff] }
 0x1cc   : > { %2914 = vmatpush.msrb.mxu2 %v8669_v60 }
 0x1cd   : > { %v1236_v38 = vpop.f32.mrf.mxu2  ;;  %1743 = vmatmul.f32.gmra.mxu0 %v8665_v13  ;;  %2324 = vmatpush.msra.mxu3 %v2323_v55  ;;  %v8683_v55 = vld [vmem:[#allocation39_spill] sm:$0xff] }
 0x1ce   : > { %v1237_v21 = vadd.f32 %v1236_v38, %v1043_v10  ;;  %v1441_v20 = vpop.f32.mrf.mxu3  ;;  %2918 = vmatpush.msrb.mxu2 %v8673_v25  ;;  %v255_v38 = vld [vmem:[%s5287_s29 + $0x8] sm:$0xff] }
 0x1cf   : > { %v1442_v61 = vadd.f32 %v1441_v20, %v1232_v39  ;;  %v1047_v39 = vadd.f32 %v6204_v37, %v6189_v28  ;;  %v8677_v20 = vld [vmem:[#allocation34_spill] sm:$0xff]  ;;  %v8678_v37 = vld [vmem:[#allocation48_spill] sm:$0xff] }
 0x1d0   : > { %v1845_v2 = vpop.f32.mrf.mxu1  ;;  %2922 = vmatpush.msrb.mxu2 %v8676_v22  ;;  %v8690_v22 = vld [vmem:[#allocation46_spill] sm:$0xff] }
 0x1d1   : > { %v1681_v50 = vadd.f32 %v1680_v16, %v1442_v61  ;;  %v8675_v16 = vld [vmem:[#allocation33_spill] sm:$0xff]  ;;  %v8679_v61 = vand.u32 4294901760, %v8678_v37  ;;  %v8692_v37 = vld [vmem:[#allocation30_spill] sm:$0xff] }
 0x1d2   : > { %1320 = vmatmul.f32.gmra.mxu2 %v8670_v33  ;;  %v1684_v4 = vpop.f32.mrf.mxu0  ;;  %3101 = vmatpush.msrb.mxu3 %v8675_v16  ;;  %v8688_v33 = vld [vmem:[#allocation56_spill] sm:$0xff] }
 0x1d3   : > { %v6443_v43 = vadd.f32 %v1845_v2, %v1681_v50  ;;  %1542 = vmatmul.f32.gmra.mxu3 %v8671_v7  ;;  %1908 = vmatmul.f32.gmra.mxu1 %v8665_v13  ;;  %v453_v2 = vmul.f32 %v354_v3, %v255_v38  ;;  %v8681_v50 = vld [vmem:[#allocation28_spill] sm:$0xff]  ;;  %v8689_v38 = vand.u32 4294901760, %v8688_v33  ;;  %v261_v33 = vld [vmem:[%s5287_s29 + $0x38] sm:$0xff] }
 0x1d4   : > { %3103 = vmatpush.msrb.mxu3 %v8677_v20  ;;  %2926 = vmatpush.msrb.mxu2 %v8679_v61  ;;  %v258_v3 = vld [vmem:[%s5287_s29 + $0x20] sm:$0xff] }
 0x1d5   : > { %v1241_v47 = vpop.f32.mrf.mxu2  ;;  %1747 = vmatmul.f32.gmra.mxu0 %v8674_v59  ;;  %v6474_v25 = vand.u32 4294901760, %v453_v2 }
 0x1d6   : > { %v1242_v52 = vadd.f32 %v1241_v47, %v1047_v39  ;;  %v1447_v10 = vpop.f32.mrf.mxu3  ;;  %3105 = vmatpush.msrb.mxu3 %v8680_v30  ;;  %v8693_v30 = vld [vmem:[#allocation50_spill] sm:$0xff] }
 0x1d7   : > { %v1448_v13 = vadd.f32 %v1447_v10, %v1237_v21  ;;  %v1051_v21 = vadd.f32 %v6220_v42, %v6209_v19  ;;  %v8687_v10 = vld [vmem:[#allocation43_spill] sm:$0xff]  ;;  %v357_v42 = vld [vmem:[%s5294_s6 + $0x20] sm:$0xff] }
 0x1d8   : > { %v1849_v28 = vpop.f32.mrf.mxu1  ;;  %3107 = vmatpush.msrb.mxu3 %v8683_v55  ;;  %v8696_v55 = vand.u32 4294901760, %v6239_v34  ;;  %v360_v34 = vld [vmem:[%s5294_s6 + $0x38] sm:$0xff] }
 0x1d9   : > { %v1685_v44 = vadd.f32 %v1684_v4, %v1448_v13  ;;  %v8684_v4 = vld [vmem:[#allocation52_spill] sm:$0xff]  ;;  %v8691_v13 = vand.u32 4294901760, %v6202_v36  ;;  %v598_v36 = vld [vmem:[#allocation7 + $0x178] sm:$0xff]  ;;  %v459_v58 = vmul.f32 %v360_v34, %v261_v33 }
 0x1da   : > { %1325 = vmatmul.f32.gmra.mxu2 %v8681_v50  ;;  %v1688_v56 = vpop.f32.mrf.mxu0  ;;  %v8685_v7 = vand.u32 4294901760, %v8684_v4  ;;  %3109 = vmatpush.msrb.mxu3 %v8687_v10 }
 0x1db   : > { %v6463_v60 = vadd.f32 %v1849_v28, %v1685_v44  ;;  %1548 = vmatmul.f32.gmra.mxu3 %v8682_v63  ;;  %1912 = vmatmul.f32.gmra.mxu1 %v8674_v59  ;;  %v6485_v28 = vsub.f32 %v453_v2, %v6474_v25  ;;  %v456_v44 = vmul.f32 %v357_v42, %v258_v3  ;;  %v8700_v3 = vld [vmem:[#allocation62_spill] sm:$0xff] }
 0x1dc   : > { %2930 = vmatpush.msrb.mxu2 %v8685_v7  ;;  %3111 = vmatpush.msrb.mxu3 %v8690_v22  ;;  %v1055_v2 = vadd.f32 %v6231_v35, %v6223_v46  ;;  %v8697_v7 = vld [vmem:[#allocation27_spill] sm:$0xff]  ;;  %v8699_v35 = vld [vmem:[#allocation58_spill] sm:$0xff]  ;;  %v8701_v22 = vld [vmem:[#allocation32_spill] sm:$0xff] }
 0x1dd   : > { %v1246_v39 = vpop.f32.mrf.mxu2  ;;  %1751 = vmatmul.f32.gmra.mxu0 %v8686_v49 }
 0x1de   : > { %v1247_v47 = vadd.f32 %v1246_v39, %v1051_v21  ;;  %v1453_v16 = vpop.f32.mrf.mxu3  ;;  %2934 = vmatpush.msrb.mxu2 %v8689_v38  ;;  %3113 = vmatpush.msrb.mxu3 %v8693_v30  ;;  %v8695_v21 = vld [vmem:[#allocation54_spill] sm:$0xff] }
 0x1df   : > { %v1454_v59 = vadd.f32 %v1453_v16, %v1242_v52  ;;  %v8694_v52 = vand.u32 4294901760, %v8681_v50  ;;  %v1966_v50 = vand.u32 4294901760, %v6485_v28  ;;  %v6503_v16 = vand.u32 4294901760, %v456_v44 }
 0x1e0   : > { %v1853_v19 = vpop.f32.mrf.mxu1  ;;  %2938 = vmatpush.msrb.mxu2 %v8691_v13  ;;  %3115 = vmatpush.msrb.mxu3 %v8695_v21 }
 0x1e1   : > { %v1689_v20 = vadd.f32 %v1688_v56, %v1454_v59  ;;  %v6496_v56 = vand.u32 4294901760, %v598_v36  ;;  %8698 = vst [vmem:[#allocation16_spill] sm:$0xff] %v6503_v16  ;;  %v6523_v13 = vsub.f32 %v456_v44, %v6503_v16 }
 0x1e2   : > { %1330 = vmatmul.f32.gmra.mxu2 %v8692_v37  ;;  %v1692_v61 = vpop.f32.mrf.mxu0  ;;  %3117 = vmatpush.msrb.mxu3 %v8699_v35 }
 0x1e3   : > { %v6489_v63 = vadd.f32 %v1853_v19, %v1689_v20  ;;  %1554 = vmatmul.f32.gmra.mxu3 %v8694_v52  ;;  %1916 = vmatmul.f32.gmra.mxu1 %v8686_v49  ;;  %v6507_v46 = vsub.f32 %v598_v36, %v6496_v56  ;;  %v1967_v19 = vsub.f32 %v6485_v28, %v1966_v50  ;;  %v1974_v21 = vand.u32 4294901760, %v6523_v13 }
 0x1e4   : > { %2942 = vmatpush.msrb.mxu2 %v8696_v55  ;;  %3266 = vmatpush.msrb.mxu0 %v6496_v56  ;;  %v6541_v55 = vand.u32 4294901760, %v459_v58 }
 0x1e5   : > { %v1251_v4 = vpop.f32.mrf.mxu2  ;;  %1755 = vmatmul.f32.gmra.mxu0 %v8697_v7  ;;  %v8357_v59 = vand.u32 4294901760, %v6507_v46  ;;  %3119 = vmatpush.msrb.mxu3 %v8700_v3  ;;  %v1975_v35 = vsub.f32 %v6523_v13, %v1974_v21 }
 0x1e6   : > { %v1252_v39 = vadd.f32 %v1251_v4, %v1055_v2  ;;  %v1459_v49 = vpop.f32.mrf.mxu3  ;;  %2946 = vmatpush.msrb.mxu2 %v2291_v41  ;;  %8706 = vst [vmem:[#allocation14_spill] sm:$0xff] %v6541_v55 }
 0x1e7   : > { %v1460_v10 = vadd.f32 %v1459_v49, %v1247_v47  ;;  %v3565_v41 = vsub.f32 %v6507_v46, %v8357_v59  ;;  %3121 = vmatpush.msrb.mxu3 %v6265_v24  ;;  %v8705_v24 = vld [vmem:[#allocation29_spill] sm:$0xff]  ;;  %v363_v49 = vld [vmem:[%s5294_s6 + $0x50] sm:$0xff] }
 0x1e8   : > { %v1857_v38 = vpop.f32.mrf.mxu1  ;;  %2950 = vmatpush.msrb.mxu2 %v2297_v6  ;;  %v8704_v6 = vld [vmem:[#allocation65_spill] sm:$0xff] }
 0x1e9   : > { %v1693_v42 = vadd.f32 %v1692_v61, %v1460_v10  ;;  %v8702_v61 = vand.u32 4294901760, %v8692_v37  ;;  %v1059_v44 = vadd.f32 %v8704_v6, %v8703_v54  ;;  %v3566_v30 = vand.u32 4294901760, %v3565_v41  ;;  %3123 = vmatpush.msrb.mxu3 %v6295_v57  ;;  %v8708_v10 = vld [vmem:[#allocation31_spill] sm:$0xff] }
 0x1ea   : > { %1335 = vmatmul.f32.gmra.mxu2 %v8701_v22  ;;  %v1696_v47 = vpop.f32.mrf.mxu0  ;;  %v1968_v37 = vand.u32 4294901760, %v1967_v19 }
 0x1eb   : > { %v6529_v20 = vadd.f32 %v1857_v38, %v1693_v42  ;;  %1560 = vmatmul.f32.gmra.mxu3 %v8702_v61  ;;  %1920 = vmatmul.f32.gmra.mxu1 %v8697_v7  ;;  %v264_v7 = vld [vmem:[%s5287_s29 + $0x50] sm:$0xff]  ;;  %v1976_v38 = vand.u32 4294901760, %v1975_v35 }
 0x1ec   : > { %2954 = vmatpush.msrb.mxu2 %v2303_v62  ;;  %3567 = vmatpush.msrb.mxu1 %v3566_v30 }
 0x1ed   : > { %v1256_v52 = vpop.f32.mrf.mxu2  ;;  %1759 = vmatmul.f32.gmra.mxu0 %v8705_v24  ;;  %3125 = vmatpush.msrb.mxu3 %v6325_v5  ;;  %v6555_v5 = vsub.f32 %v459_v58, %v6541_v55 }
 0x1ee   : > { %v1257_v36 = vadd.f32 %v1256_v52, %v1059_v44  ;;  %v1465_v2 = vpop.f32.mrf.mxu3  ;;  %2958 = vmatpush.msrb.mxu2 %v2309_v11  ;;  %v597_v11 = vld [vmem:[#allocation7 + $0x170] sm:$0xff] }
 0x1ef   : > { %v1466_v4 = vadd.f32 %v1465_v2, %v1252_v39  ;;  %3127 = vmatpush.msrb.mxu3 %v6356_v18  ;;  %v462_v39 = vmul.f32 %v363_v49, %v264_v7  ;;  %v8707_v18 = vand.u32 4294901760, %v8701_v22  ;;  %v6563_v0 = vand.u32 4294901760, %v597_v11 }
 0x1f0   : > { %v1861_v57 = vpop.f32.mrf.mxu1  ;;  %2962 = vmatpush.msrb.mxu2 %v2315_v15  ;;  %v1982_v3 = vand.u32 4294901760, %v6555_v5 }
 0x1f1   : > { %v1697_v27 = vadd.f32 %v1696_v47, %v1466_v4  ;;  %3129 = vmatpush.msrb.mxu3 %v6386_v32  ;;  %v8709_v32 = vld [vmem:[#allocation37_spill] sm:$0xff]  ;;  %v6572_v42 = vand.u32 4294901760, %v462_v39  ;;  %3268 = vmatpush.msrb.mxu0 %v6563_v0 }
 0x1f2   : > { %1969 = vmatmul.f32.vlgmr.msra.gmra.mxu2 %v1968_v37  ;;  %v1700_v62 = vpop.f32.mrf.mxu0  ;;  %v1983_v61 = vsub.f32 %v6555_v5, %v1982_v3 }
 0x1f3   : > { %v6558_v29 = vadd.f32 %v1861_v57, %v1697_v27  ;;  %1566 = vmatmul.f32.gmra.mxu3 %v8707_v18  ;;  %1924 = vmatmul.f32.gmra.mxu1 %v8705_v24  ;;  %8710 = vst [vmem:[#allocation18_spill] sm:$0xff] %v6572_v42  ;;  %v6586_v54 = vsub.f32 %v462_v39, %v6572_v42  ;;  %v270_v27 = vld [vmem:[%s5287_s29 + $0x80] sm:$0xff] }
 0x1f4   : > { %2966 = vmatpush.msrb.mxu2 %v2321_v48  ;;  %3131 = vmatpush.msrb.mxu3 %v6416_v53  ;;  %v366_v48 = vld [vmem:[%s5294_s6 + $0x68] sm:$0xff]  ;;  %v6578_v53 = vsub.f32 %v597_v11, %v6563_v0  ;;  %v1984_v4 = vand.u32 4294901760, %v1983_v61  ;;  %v372_v61 = vld [vmem:[%s5294_s6 + $0x98] sm:$0xff] }
 0x1f5   : > { %v1261_v15 = vpop.f32.mrf.mxu2  ;;  %1763 = vmatmul.f32.gmra.mxu0 %v8708_v10  ;;  %v465_v6 = vmul.f32 %v366_v48, %v267_v12  ;;  %v1990_v7 = vand.u32 4294901760, %v6586_v54 }
 0x1f6   : > { %3793 = vmatpush.msra.mxu2 %v6507_v46  ;;  %v1262_v33 = vadd.f32 %v1261_v15, %v8709_v32  ;;  %v1471_v34 = vpop.f32.mrf.mxu3  ;;  %v8355_v58 = vand.u32 4294901760, %v6578_v53 }
 0x1f7   : > { %v1472_v19 = vadd.f32 %v1471_v34, %v1257_v36  ;;  %v8711_v36 = vld [vmem:[#allocation38_spill] sm:$0xff]  ;;  %v6599_v49 = vand.u32 4294901760, %v465_v6  ;;  %v1991_v11 = vsub.f32 %v6586_v54, %v1990_v7 }
 0x1f8   : > { %v1865_v22 = vpop.f32.mrf.mxu1  ;;  %3796 = vmatpush.msra.mxu2 %v6578_v53  ;;  %v3571_v30 = vsub.f32 %v6578_v53, %v8355_v58 }
 0x1f9   : > { %v1701_v47 = vadd.f32 %v1700_v62, %v1472_v19  ;;  %8712 = vst [vmem:[#allocation15_spill] sm:$0xff] %v6599_v49  ;;  %v369_v62 = vld [vmem:[%s5294_s6 + $0x80] sm:$0xff]  ;;  %v6608_v15 = vsub.f32 %v465_v6, %v6599_v49 }
 0x1fa   : > { %1977 = vmatmul.f32.gmra.mxu2 %v1976_v38  ;;  %v1704_v41 = vpop.f32.mrf.mxu0  ;;  %v3572_v24 = vand.u32 4294901760, %v3571_v30  ;;  %v8713_v19 = vld [vmem:[#allocation41_spill] sm:$0xff] }
 0x1fb   : > { %v6588_v44 = vadd.f32 %v1865_v22, %v1701_v47  ;;  %2326 = vmatmul.f32.vlgmr.msra.gmra.mxu3 %v6474_v25  ;;  %1928 = vmatmul.f32.gmra.mxu1 %v8708_v10  ;;  %v468_v10 = vmul.f32 %v369_v62, %v270_v27  ;;  %v1992_v22 = vand.u32 4294901760, %v1991_v11  ;;  %v1998_v47 = vand.u32 4294901760, %v6608_v15 }
 0x1fc   : > { %4006 = vmatpush.msra.mxu3 %v6496_v56  ;;  %3573 = vmatpush.msrb.mxu1 %v3572_v24 }
 0x1fd   : > { %v1266_v52 = vpop.f32.mrf.mxu2  ;;  %2508 = vmatmul.f32.vlgmr.msra.gmra.mxu0 %v6485_v28 }
 0x1fe   : > { %v1267_v2 = vadd.f32 %v1266_v52, %v8711_v36  ;;  %v1477_v37 = vpop.f32.mrf.mxu3  ;;  %4008 = vmatpush.msra.mxu3 %v6563_v0 }
 0x1ff   : > { %v1478_v57 = vadd.f32 %v1477_v37, %v1262_v33  ;;  %v596_v33 = vld [vmem:[#allocation7 + $0x168] sm:$0xff]  ;;  %v1999_v37 = vsub.f32 %v6608_v15, %v1998_v47 }
 0x200   : > { %v1869_v35 = vpop.f32.mrf.mxu1  ;;  %v6615_v34 = vand.u32 4294901760, %v596_v33 }
 0x201   : > { %v1705_v39 = vadd.f32 %v1704_v41, %v1478_v57  ;;  %v6620_v41 = vand.u32 4294901760, %v468_v10 }
 0x202   : > { %1985 = vmatmul.f32.gmra.mxu2 %v1984_v4  ;;  %v1708_v18 = vpop.f32.mrf.mxu0  ;;  %3270 = vmatpush.msrb.mxu0 %v6615_v34  ;;  %v6627_v6 = vsub.f32 %v596_v33, %v6615_v34 }
 0x203   : > { %v6610_v32 = vadd.f32 %v1869_v35, %v1705_v39  ;;  %2330 = vmatmul.f32.gmra.mxu3 %v6503_v16  ;;  %2707 = vmatmul.f32.vlgmr.msra.gmra.mxu1 %v1966_v50  ;;  %8714 = vst [vmem:[#allocation20_spill] sm:$0xff] %v6620_v41  ;;  %v273_v50 = vld [vmem:[%s5287_s29 + $0x98] sm:$0xff]  ;;  %v6635_v4 = vsub.f32 %v468_v10, %v6620_v41  ;;  %v2000_v10 = vand.u32 4294901760, %v1999_v37 }
 0x204   : > { %4010 = vmatpush.msra.mxu3 %v6615_v34  ;;  %v8354_v24 = vand.u32 4294901760, %v6627_v6  ;;  %3799 = vmatpush.msra.mxu2 %v6627_v6  ;;  %v8716_v39 = vld [vmem:[#allocation42_spill] sm:$0xff] }
 0x205   : > { %v1271_v38 = vpop.f32.mrf.mxu2  ;;  %2513 = vmatmul.f32.gmra.mxu0 %v6523_v13  ;;  %v8360_v33 = vand.u32 4294901760, %v6635_v4  ;;  %v276_v13 = vld [vmem:[%s5287_s29 + $0xb0] sm:$0xff] }
 0x206   : > { %v1272_v12 = vadd.f32 %v1271_v38, %v8713_v19  ;;  %v1483_v48 = vpop.f32.mrf.mxu3  ;;  %v3577_v27 = vsub.f32 %v6627_v6, %v8354_v24 }
 0x207   : > { %v1484_v28 = vadd.f32 %v1483_v48, %v1267_v2  ;;  %v471_v2 = vmul.f32 %v372_v61, %v273_v50  ;;  %v2007_v50 = vsub.f32 %v6635_v4, %v8360_v33 }
 0x208   : > { %v1873_v30 = vpop.f32.mrf.mxu1  ;;  %v3578_v35 = vand.u32 4294901760, %v3577_v27  ;;  %v8719_v27 = vld [vmem:[#allocation44_spill] sm:$0xff] }
 0x209   : > { %v1709_v52 = vadd.f32 %v1708_v18, %v1484_v28  ;;  %v6648_v38 = vand.u32 4294901760, %v471_v2 }
 0x20a   : > { %1993 = vmatmul.f32.gmra.mxu2 %v1992_v22  ;;  %v1712_v36 = vpop.f32.mrf.mxu0  ;;  %3579 = vmatpush.msrb.mxu1 %v3578_v35  ;;  %v2008_v35 = vand.u32 4294901760, %v2007_v50 }
 0x20b   : > { %v6637_v57 = vadd.f32 %v1873_v30, %v1709_v52  ;;  %2334 = vmatmul.f32.gmra.mxu3 %v6541_v55  ;;  %2713 = vmatmul.f32.gmra.mxu1 %v1974_v21  ;;  %8717 = vst [vmem:[#allocation22_spill] sm:$0xff] %v6648_v38  ;;  %v375_v21 = vld [vmem:[%s5294_s6 + $0xb0] sm:$0xff]  ;;  %v6656_v61 = vsub.f32 %v471_v2, %v6648_v38 }
 0x20c   : > { %v474_v30 = vmul.f32 %v375_v21, %v276_v13 }
 0x20d   : > { %8715 = vst [vmem:[#allocation17_spill] sm:$0xff] %v6637_v57  ;;  %v1276_v62 = vpop.f32.mrf.mxu2  ;;  %2518 = vmatmul.f32.gmra.mxu0 %v6555_v5 }
 0x20e   : > { %v1277_v18 = vadd.f32 %v1276_v62, %v8716_v39  ;;  %v1489_v11 = vpop.f32.mrf.mxu3  ;;  %v8359_v39 = vand.u32 4294901760, %v6656_v61 }
 0x20f   : > { %v1490_v19 = vadd.f32 %v1489_v11, %v1272_v12  ;;  %v595_v12 = vld [vmem:[#allocation7 + $0x160] sm:$0xff]  ;;  %v6668_v11 = vand.u32 4294901760, %v474_v30 }
 0x210   : > { %v1877_v48 = vpop.f32.mrf.mxu1  ;;  %v2015_v50 = vsub.f32 %v6656_v61, %v8359_v39 }
 0x211   : > { %v1713_v22 = vadd.f32 %v1712_v36, %v1490_v19  ;;  %v6663_v36 = vand.u32 4294901760, %v595_v12  ;;  %8720 = vst [vmem:[#allocation24_spill] sm:$0xff] %v6668_v11 }
 0x212   : > { %2001 = vmatmul.f32.gmra.mxu2 %v2000_v10  ;;  %v1716_v28 = vpop.f32.mrf.mxu0  ;;  %v378_v10 = vld [vmem:[%s5294_s6 + $0xc8] sm:$0xff] }
 0x213   : > { %v6658_v52 = vadd.f32 %v1877_v48, %v1713_v22  ;;  %2338 = vmatmul.f32.gmra.mxu3 %v6572_v42  ;;  %2719 = vmatmul.f32.gmra.mxu1 %v1982_v3  ;;  %v279_v3 = vld [vmem:[%s5287_s29 + $0xc8] sm:$0xff]  ;;  %v6675_v19 = vsub.f32 %v595_v12, %v6663_v36 }
 0x214   : > { %3272 = vmatpush.msrb.mxu0 %v6663_v36  ;;  %4012 = vmatpush.msra.mxu3 %v6663_v36 }
 0x215   : > { %8718 = vst [vmem:[#allocation19_spill] sm:$0xff] %v6658_v52  ;;  %v1281_v37 = vpop.f32.mrf.mxu2  ;;  %2523 = vmatmul.f32.gmra.mxu0 %v6586_v54  ;;  %v8356_v48 = vand.u32 4294901760, %v6675_v19  ;;  %3802 = vmatpush.msra.mxu2 %v6675_v19  ;;  %v282_v54 = vld [vmem:[%s5287_s29 + $0xe0] sm:$0xff] }
 0x216   : > { %v1282_v62 = vadd.f32 %v1281_v37, %v8719_v27  ;;  %v1495_v2 = vpop.f32.mrf.mxu3  ;;  %v6683_v37 = vsub.f32 %v474_v30, %v6668_v11  ;;  %v8722_v30 = vld [vmem:[#allocation45_spill] sm:$0xff] }
 0x217   : > { %v1496_v5 = vadd.f32 %v1495_v2, %v1277_v18  ;;  %v477_v18 = vmul.f32 %v378_v10, %v279_v3  ;;  %v2016_v3 = vand.u32 4294901760, %v2015_v50 }
 0x218   : > { %v1881_v13 = vpop.f32.mrf.mxu1  ;;  %v8358_v10 = vand.u32 4294901760, %v6683_v37 }
 0x219   : > { %v1717_v21 = vadd.f32 %v1716_v28, %v1496_v5  ;;  %v3583_v28 = vsub.f32 %v6675_v19, %v8356_v48 }
 0x21a   : > { %2009 = vmatmul.f32.gmra.mxu2 %v2008_v35  ;;  %v1720_v22 = vpop.f32.mrf.mxu0 }
 0x21b   : > { %v6685_v12 = vadd.f32 %v1881_v13, %v1717_v21  ;;  %2342 = vmatmul.f32.gmra.mxu3 %v6599_v49  ;;  %2725 = vmatmul.f32.gmra.mxu1 %v1990_v7  ;;  %v3584_v2 = vand.u32 4294901760, %v3583_v28  ;;  %v6696_v13 = vand.u32 4294901760, %v477_v18  ;;  %v381_v7 = vld [vmem:[%s5294_s6 + $0xe0] sm:$0xff]  ;;  %v2023_v28 = vsub.f32 %v6683_v37, %v8358_v10 }
 0x21d   : > { %8721 = vst [vmem:[#allocation21_spill] sm:$0xff] %v6685_v12  ;;  %v1286_v27 = vpop.f32.mrf.mxu2  ;;  %2528 = vmatmul.f32.gmra.mxu0 %v6608_v15  ;;  %3585 = vmatpush.msrb.mxu1 %v3584_v2  ;;  %v6704_v50 = vsub.f32 %v477_v18, %v6696_v13  ;;  %v2024_v59 = vand.u32 4294901760, %v2023_v28 }
 0x21e   : > { %v1287_v35 = vadd.f32 %v1286_v27, %v8722_v30  ;;  %v1501_v5 = vpop.f32.mrf.mxu3  ;;  %8723 = vst [vmem:[#allocation36_spill] sm:$0xff] %v6696_v13  ;;  %v480_v27 = vmul.f32 %v381_v7, %v282_v54 }
 0x21f   : > { %v1502_v21 = vadd.f32 %v1501_v5, %v1282_v62  ;;  %v594_v62 = vld [vmem:[#allocation7 + $0x158] sm:$0xff]  ;;  %v8361_v18 = vand.u32 4294901760, %v6704_v50 }
 0x220   : > { %v1885_v24 = vpop.f32.mrf.mxu1  ;;  %v8725_v5 = vld [vmem:[#allocation47_spill] sm:$0xff]  ;;  %v6716_v54 = vand.u32 4294901760, %v480_v27 }
 0x221   : > { %v1721_v58 = vadd.f32 %v1720_v22, %v1502_v21  ;;  %v6711_v22 = vand.u32 4294901760, %v594_v62 }
 0x222   : > { %2017 = vmatmul.f32.gmra.mxu2 %v2016_v3  ;;  %v1724_v48 = vpop.f32.mrf.mxu0  ;;  %8726 = vst [vmem:[#allocation40_spill] sm:$0xff] %v6716_v54  ;;  %v6731_v33 = vsub.f32 %v480_v27, %v6716_v54  ;;  %v8730_v27 = vld [vmem:[#allocation49_spill] sm:$0xff] }
 0x223   : > { %v6706_v30 = vadd.f32 %v1885_v24, %v1721_v58  ;;  %2346 = vmatmul.f32.gmra.mxu3 %v6620_v41  ;;  %2731 = vmatmul.f32.gmra.mxu1 %v1998_v47  ;;  %v285_v58 = vld [vmem:[%s5287_s29 + $0xf8] sm:$0xff]  ;;  %v384_v24 = vld [vmem:[%s5294_s6 + $0xf8] sm:$0xff]  ;;  %v6723_v47 = vsub.f32 %v594_v62, %v6711_v22 }
 0x224   : > { %3274 = vmatpush.msrb.mxu0 %v6711_v22  ;;  %4014 = vmatpush.msra.mxu3 %v6711_v22  ;;  %v483_v39 = vmul.f32 %v384_v24, %v285_v58 }
 0x225   : > { %8724 = vst [vmem:[#allocation26_spill] sm:$0xff] %v6706_v30  ;;  %v1291_v2 = vpop.f32.mrf.mxu2  ;;  %2533 = vmatmul.f32.gmra.mxu0 %v6635_v4  ;;  %3805 = vmatpush.msra.mxu2 %v6723_v47 }
 0x226   : > { %v1292_v3 = vadd.f32 %v1291_v2, %v8725_v5  ;;  %v1507_v21 = vpop.f32.mrf.mxu3  ;;  %v8364_v2 = vand.u32 4294901760, %v6723_v47  ;;  %v2031_v5 = vsub.f32 %v6704_v50, %v8361_v18 }
 0x227   : > { %v1508_v15 = vadd.f32 %v1507_v21, %v1287_v35  ;;  %v6742_v21 = vand.u32 4294901760, %v483_v39 }
 0x228   : > { %v1889_v7 = vpop.f32.mrf.mxu1 }
 0x229   : > { %v1725_v10 = vadd.f32 %v1724_v48, %v1508_v15  ;;  %v8728_v48 = vand.u32 4294901760, %v6635_v4  ;;  %8729 = vst [vmem:[#allocation33_spill] sm:$0xff] %v6742_v21  ;;  %v288_v4 = vld [vmem:[%s5287_s29 + $0x110] sm:$0xff] }
 0x22a   : > { %2025 = vmatmul.f32.gmra.mxu2 %v2024_v59  ;;  %v1728_v28 = vpop.f32.mrf.mxu0  ;;  %v3589_v59 = vsub.f32 %v6723_v47, %v8364_v2  ;;  %v6749_v2 = vsub.f32 %v483_v39, %v6742_v21 }
 0x22b   : > { %v6733_v35 = vadd.f32 %v1889_v7, %v1725_v10  ;;  %2350 = vmatmul.f32.gmra.mxu3 %v6648_v38  ;;  %2737 = vmatmul.f32.gmra.mxu1 %v8728_v48  ;;  %v2032_v10 = vand.u32 4294901760, %v2031_v5  ;;  %v8367_v7 = vand.u32 4294901760, %v6731_v33  ;;  %v387_v48 = vld [vmem:[%s5294_s6 + $0x110] sm:$0xff] }
 0x22c   : > { %v3590_v58 = vand.u32 4294901760, %v3589_v59  ;;  %v486_v5 = vmul.f32 %v387_v48, %v288_v4  ;;  %v8370_v39 = vand.u32 4294901760, %v6749_v2  ;;  %v291_v4 = vld [vmem:[%s5287_s29 + $0x128] sm:$0xff] }
 0x22d   : > { %8727 = vst [vmem:[#allocation23_spill] sm:$0xff] %v6733_v35  ;;  %v1296_v62 = vpop.f32.mrf.mxu2  ;;  %2538 = vmatmul.f32.gmra.mxu0 %v6656_v61  ;;  %v2039_v59 = vsub.f32 %v6731_v33, %v8367_v7 }
 0x22e   : > { %v1297_v24 = vadd.f32 %v1296_v62, %v8730_v27  ;;  %v1513_v15 = vpop.f32.mrf.mxu3  ;;  %3591 = vmatpush.msrb.mxu1 %v3590_v58 }
 0x22f   : > { %v1514_v18 = vadd.f32 %v1513_v15, %v1292_v3  ;;  %v8732_v3 = vand.u32 4294901760, %v6656_v61  ;;  %v2040_v15 = vand.u32 4294901760, %v2039_v59 }
 0x230   : > { %v1893_v38 = vpop.f32.mrf.mxu1 }
 0x231   : > { %v1729_v35 = vadd.f32 %v1728_v28, %v1514_v18  ;;  %v8733_v28 = vld [vmem:[#allocation51_spill] sm:$0xff] }
 0x232   : > { %2033 = vmatmul.f32.gmra.mxu2 %v2032_v10  ;;  %v1732_v41 = vpop.f32.mrf.mxu0  ;;  %v6762_v10 = vand.u32 4294901760, %v486_v5 }
 0x233   : > { %v6754_v62 = vadd.f32 %v1893_v38, %v1729_v35  ;;  %2354 = vmatmul.f32.gmra.mxu3 %v6668_v11  ;;  %2743 = vmatmul.f32.gmra.mxu1 %v8732_v3  ;;  %v390_v38 = vld [vmem:[%s5294_s6 + $0x128] sm:$0xff]  ;;  %v2047_v3 = vsub.f32 %v6749_v2, %v8370_v39  ;;  %v393_v39 = vld [vmem:[%s5294_s6 + $0x140] sm:$0xff] }
 0x234   : > { %8734 = vst [vmem:[#allocation48_spill] sm:$0xff] %v6762_v10  ;;  %v593_v35 = vld [vmem:[#allocation7 + $0x150] sm:$0xff]  ;;  %v489_v59 = vmul.f32 %v390_v38, %v291_v4 }
 0x235   : > { %8731 = vst [vmem:[#allocation34_spill] sm:$0xff] %v6754_v62  ;;  %v1301_v18 = vpop.f32.mrf.mxu2  ;;  %2543 = vmatmul.f32.gmra.mxu0 %v6683_v37  ;;  %v6766_v11 = vand.u32 4294901760, %v593_v35 }
 0x236   : > { %v1302_v58 = vadd.f32 %v1301_v18, %v8733_v28  ;;  %v1519_v27 = vpop.f32.mrf.mxu3  ;;  %v6772_v18 = vsub.f32 %v486_v5, %v6762_v10 }
 0x237   : > { %v1520_v7 = vadd.f32 %v1519_v27, %v1297_v24  ;;  %3276 = vmatpush.msrb.mxu0 %v6766_v11  ;;  %v6776_v24 = vsub.f32 %v593_v35, %v6766_v11  ;;  %4016 = vmatpush.msra.mxu3 %v6766_v11  ;;  %v2048_v27 = vand.u32 4294901760, %v2047_v3 }
 0x238   : > { %v1897_v48 = vpop.f32.mrf.mxu1  ;;  %v8376_v35 = vand.u32 4294901760, %v6772_v18 }
 0x239   : > { %v1733_v61 = vadd.f32 %v1732_v41, %v1520_v7  ;;  %v8736_v41 = vand.u32 4294901760, %v6683_v37  ;;  %v8375_v7 = vand.u32 4294901760, %v6776_v24  ;;  %3808 = vmatpush.msra.mxu2 %v6776_v24 }
 0x23a   : > { %2041 = vmatmul.f32.gmra.mxu2 %v2040_v15  ;;  %v1736_v62 = vpop.f32.mrf.mxu0  ;;  %v8737_v15 = vld [vmem:[#allocation53_spill] sm:$0xff] }
 0x23b   : > { %v6778_v28 = vadd.f32 %v1897_v48, %v1733_v61  ;;  %2358 = vmatmul.f32.gmra.mxu3 %v6696_v13  ;;  %2749 = vmatmul.f32.gmra.mxu1 %v8736_v41  ;;  %v6789_v48 = vand.u32 4294901760, %v489_v59  ;;  %v3595_v37 = vsub.f32 %v6776_v24, %v8375_v7  ;;  %v294_v41 = vld [vmem:[%s5287_s29 + $0x140] sm:$0xff] }
 0x23c   : > { %v492_v49 = vmul.f32 %v393_v39, %v294_v41  ;;  %v396_v39 = vld [vmem:[%s5294_s6 + $0x158] sm:$0xff] }
 0x23d   : > { %8735 = vst [vmem:[#allocation35_spill] sm:$0xff] %v6778_v28  ;;  %v1306_v5 = vpop.f32.mrf.mxu2  ;;  %2548 = vmatmul.f32.gmra.mxu0 %v6704_v50  ;;  %v3596_v28 = vand.u32 4294901760, %v3595_v37 }
 0x23e   : > { %v1307_v4 = vadd.f32 %v1306_v5, %v8737_v15  ;;  %v1525_v38 = vpop.f32.mrf.mxu3  ;;  %8738 = vst [vmem:[#allocation28_spill] sm:$0xff] %v6789_v48  ;;  %v2055_v5 = vsub.f32 %v6772_v18, %v8376_v35  ;;  %v6800_v15 = vsub.f32 %v489_v59, %v6789_v48  ;;  %v6810_v59 = vand.u32 4294901760, %v492_v49 }
 0x23f   : > { %v1526_v61 = vadd.f32 %v1525_v38, %v1302_v58  ;;  %3597 = vmatpush.msrb.mxu1 %v3596_v28  ;;  %v8740_v58 = vand.u32 4294901760, %v6704_v50  ;;  %v297_v28 = vld [vmem:[%s5287_s29 + $0x158] sm:$0xff] }
 0x240   : > { %v1901_v13 = vpop.f32.mrf.mxu1  ;;  %v8379_v35 = vand.u32 4294901760, %v6800_v15  ;;  %8742 = vst [vmem:[#allocation52_spill] sm:$0xff] %v6810_v59 }
 0x241   : > { %v1737_v30 = vadd.f32 %v1736_v62, %v1526_v61  ;;  %v2056_v61 = vand.u32 4294901760, %v2055_v5  ;;  %v6820_v5 = vsub.f32 %v492_v49, %v6810_v59 }
 0x242   : > { %2049 = vmatmul.f32.gmra.mxu2 %v2048_v27  ;;  %v1740_v3 = vpop.f32.mrf.mxu0  ;;  %v8741_v27 = vld [vmem:[#allocation55_spill] sm:$0xff] }
 0x243   : > { %v6802_v7 = vadd.f32 %v1901_v13, %v1737_v30  ;;  %2362 = vmatmul.f32.gmra.mxu3 %v6716_v54  ;;  %2755 = vmatmul.f32.gmra.mxu1 %v8740_v58  ;;  %v592_v30 = vld [vmem:[#allocation7 + $0x148] sm:$0xff]  ;;  %v495_v58 = vmul.f32 %v396_v39, %v297_v28 }
 0x244   : > { %v6814_v54 = vand.u32 4294901760, %v592_v30  ;;  %v8746_v28 = vld [vmem:[#allocation57_spill] sm:$0xff] }
 0x245   : > { %8739 = vst [vmem:[#allocation39_spill] sm:$0xff] %v6802_v7  ;;  %v1311_v62 = vpop.f32.mrf.mxu2  ;;  %2553 = vmatmul.f32.gmra.mxu0 %v6731_v33 }
 0x246   : > { %v1312_v38 = vadd.f32 %v1311_v62, %v8741_v27  ;;  %v1531_v37 = vpop.f32.mrf.mxu3  ;;  %v2063_v62 = vsub.f32 %v6800_v15, %v8379_v35  ;;  %3278 = vmatpush.msrb.mxu0 %v6814_v54  ;;  %v6824_v27 = vsub.f32 %v592_v30, %v6814_v54  ;;  %4018 = vmatpush.msra.mxu3 %v6814_v54  ;;  %v399_v35 = vld [vmem:[%s5294_s6 + $0x170] sm:$0xff] }
 0x247   : > { %v1532_v13 = vadd.f32 %v1531_v37, %v1307_v4 }
 0x248   : > { %v1905_v41 = vpop.f32.mrf.mxu1  ;;  %v8384_v37 = vand.u32 4294901760, %v6824_v27  ;;  %3811 = vmatpush.msra.mxu2 %v6824_v27  ;;  %v2064_v30 = vand.u32 4294901760, %v2063_v62 }
 0x249   : > { %v1741_v50 = vadd.f32 %v1740_v3, %v1532_v13  ;;  %v8744_v3 = vand.u32 4294901760, %v6731_v33 }
 0x24a   : > { %2057 = vmatmul.f32.gmra.mxu2 %v2056_v61  ;;  %v1744_v7 = vpop.f32.mrf.mxu0  ;;  %v6835_v61 = vand.u32 4294901760, %v495_v58  ;;  %v3601_v33 = vsub.f32 %v6824_v27, %v8384_v37 }
 0x24b   : > { %v6826_v4 = vadd.f32 %v1905_v41, %v1741_v50  ;;  %2366 = vmatmul.f32.gmra.mxu3 %v6742_v21  ;;  %2761 = vmatmul.f32.gmra.mxu1 %v8744_v3  ;;  %v8385_v41 = vand.u32 4294901760, %v6820_v5  ;;  %v300_v3 = vld [vmem:[%s5287_s29 + $0x170] sm:$0xff] }
 0x24c   : > { %8745 = vst [vmem:[#allocation43_spill] sm:$0xff] %v6835_v61  ;;  %v6845_v42 = vsub.f32 %v495_v58, %v6835_v61 }
 0x24d   : > { %8743 = vst [vmem:[#allocation25_spill] sm:$0xff] %v6826_v4  ;;  %v1316_v49 = vpop.f32.mrf.mxu2  ;;  %2558 = vmatmul.f32.gmra.mxu0 %v6749_v2  ;;  %v3602_v4 = vand.u32 4294901760, %v3601_v33  ;;  %v2071_v62 = vsub.f32 %v6820_v5, %v8385_v41 }
 0x24e   : > { %v1317_v39 = vadd.f32 %v1316_v49, %v8746_v28  ;;  %v1537_v13 = vpop.f32.mrf.mxu3  ;;  %v498_v28 = vmul.f32 %v399_v35, %v300_v3  ;;  %v8388_v58 = vand.u32 4294901760, %v6845_v42  ;;  %v303_v35 = vld [vmem:[%s5287_s29 + $0x188] sm:$0xff] }
 0x24f   : > { %v1538_v50 = vadd.f32 %v1537_v13, %v1312_v38  ;;  %3603 = vmatpush.msrb.mxu1 %v3602_v4  ;;  %v8748_v38 = vand.u32 4294901760, %v6749_v2  ;;  %v8749_v13 = vld [vmem:[#allocation59_spill] sm:$0xff] }
 0x250   : > { %v1909_v21 = vpop.f32.mrf.mxu1  ;;  %v6858_v52 = vand.u32 4294901760, %v498_v28 }
 0x251   : > { %v1745_v12 = vadd.f32 %v1744_v7, %v1538_v50  ;;  %v2072_v50 = vand.u32 4294901760, %v2071_v62 }
 0x252   : > { %2065 = vmatmul.f32.gmra.mxu2 %v2064_v30  ;;  %v1748_v49 = vpop.f32.mrf.mxu0  ;;  %8750 = vst [vmem:[#allocation46_spill] sm:$0xff] %v6858_v52 }
 0x253   : > { %v6850_v37 = vadd.f32 %v1909_v21, %v1745_v12  ;;  %2370 = vmatmul.f32.gmra.mxu3 %v6762_v10  ;;  %2767 = vmatmul.f32.gmra.mxu1 %v8748_v38  ;;  %v402_v12 = vld [vmem:[%s5294_s6 + $0x188] sm:$0xff]  ;;  %v591_v21 = vld [vmem:[#allocation7 + $0x140] sm:$0xff]  ;;  %v2079_v38 = vsub.f32 %v6845_v42, %v8388_v58  ;;  %v405_v58 = vld [vmem:[%s5294_s6 + $0x1a0] sm:$0xff] }
 0x254   : > { %v6862_v41 = vand.u32 4294901760, %v591_v21  ;;  %v501_v62 = vmul.f32 %v402_v12, %v303_v35 }
 0x255   : > { %8747 = vst [vmem:[#allocation56_spill] sm:$0xff] %v6850_v37  ;;  %v1321_v7 = vpop.f32.mrf.mxu2  ;;  %2563 = vmatmul.f32.gmra.mxu0 %v6772_v18 }
 0x256   : > { %v1322_v30 = vadd.f32 %v1321_v7, %v8749_v13  ;;  %v1543_v33 = vpop.f32.mrf.mxu3  ;;  %v6868_v7 = vsub.f32 %v498_v28, %v6858_v52  ;;  %3280 = vmatpush.msrb.mxu0 %v6862_v41  ;;  %4020 = vmatpush.msra.mxu3 %v6862_v41 }
 0x257   : > { %v1544_v4 = vadd.f32 %v1543_v33, %v1317_v39  ;;  %v6872_v39 = vsub.f32 %v591_v21, %v6862_v41 }
 0x258   : > { %v1913_v3 = vpop.f32.mrf.mxu1  ;;  %v8394_v21 = vand.u32 4294901760, %v6868_v7 }
 0x259   : > { %v1749_v2 = vadd.f32 %v1748_v49, %v1544_v4  ;;  %v8752_v49 = vand.u32 4294901760, %v6772_v18  ;;  %v8393_v33 = vand.u32 4294901760, %v6872_v39  ;;  %3814 = vmatpush.msra.mxu2 %v6872_v39  ;;  %v8753_v4 = vld [vmem:[#allocation60_spill] sm:$0xff] }
 0x25a   : > { %2073 = vmatmul.f32.gmra.mxu2 %v2072_v50  ;;  %v1752_v10 = vpop.f32.mrf.mxu0  ;;  %v2080_v50 = vand.u32 4294901760, %v2079_v38 }
 0x25b   : > { %v6874_v13 = vadd.f32 %v1913_v3, %v1749_v2  ;;  %2374 = vmatmul.f32.gmra.mxu3 %v6789_v48  ;;  %2773 = vmatmul.f32.gmra.mxu1 %v8752_v49  ;;  %v6885_v3 = vand.u32 4294901760, %v501_v62  ;;  %v3607_v18 = vsub.f32 %v6872_v39, %v8393_v33  ;;  %v306_v49 = vld [vmem:[%s5287_s29 + $0x1a0] sm:$0xff] }
 0x25c   : > { %v504_v55 = vmul.f32 %v405_v58, %v306_v49  ;;  %v408_v58 = vld [vmem:[%s5294_s6 + $0x1b8] sm:$0xff] }
 0x25d   : > { %8751 = vst [vmem:[#allocation30_spill] sm:$0xff] %v6874_v13  ;;  %v1326_v28 = vpop.f32.mrf.mxu2  ;;  %2568 = vmatmul.f32.gmra.mxu0 %v6800_v15  ;;  %v3608_v13 = vand.u32 4294901760, %v3607_v18 }
 0x25e   : > { %v1327_v35 = vadd.f32 %v1326_v28, %v8753_v4  ;;  %v1549_v12 = vpop.f32.mrf.mxu3  ;;  %8754 = vst [vmem:[#allocation50_spill] sm:$0xff] %v6885_v3  ;;  %v2087_v28 = vsub.f32 %v6868_v7, %v8394_v21  ;;  %v6896_v4 = vsub.f32 %v501_v62, %v6885_v3  ;;  %v6906_v62 = vand.u32 4294901760, %v504_v55 }
 0x25f   : > { %v1550_v2 = vadd.f32 %v1549_v12, %v1322_v30  ;;  %3609 = vmatpush.msrb.mxu1 %v3608_v13  ;;  %v8756_v30 = vand.u32 4294901760, %v6800_v15  ;;  %v309_v13 = vld [vmem:[%s5287_s29 + $0x1b8] sm:$0xff] }
 0x260   : > { %v1917_v48 = vpop.f32.mrf.mxu1  ;;  %v8397_v21 = vand.u32 4294901760, %v6896_v4  ;;  %8758 = vst [vmem:[#allocation27_spill] sm:$0xff] %v6906_v62 }
 0x261   : > { %v1753_v37 = vadd.f32 %v1752_v10, %v1550_v2  ;;  %v2088_v2 = vand.u32 4294901760, %v2087_v28  ;;  %v6916_v28 = vsub.f32 %v504_v55, %v6906_v62 }
 0x262   : > { %2081 = vmatmul.f32.gmra.mxu2 %v2080_v50  ;;  %v1756_v38 = vpop.f32.mrf.mxu0  ;;  %v8757_v50 = vld [vmem:[#allocation61_spill] sm:$0xff] }
 0x263   : > { %v6898_v33 = vadd.f32 %v1917_v48, %v1753_v37  ;;  %2378 = vmatmul.f32.gmra.mxu3 %v6810_v59  ;;  %2779 = vmatmul.f32.gmra.mxu1 %v8756_v30  ;;  %v590_v37 = vld [vmem:[#allocation7 + $0x138] sm:$0xff]  ;;  %v507_v30 = vmul.f32 %v408_v58, %v309_v13  ;;  %v8762_v13 = vld [vmem:[#allocation64_spill] sm:$0xff] }
 0x264   : > { %v6910_v59 = vand.u32 4294901760, %v590_v37 }
 0x265   : > { %8755 = vst [vmem:[#allocation54_spill] sm:$0xff] %v6898_v33  ;;  %v1331_v10 = vpop.f32.mrf.mxu2  ;;  %2573 = vmatmul.f32.gmra.mxu0 %v6820_v5 }
 0x266   : > { %v1332_v12 = vadd.f32 %v1331_v10, %v8757_v50  ;;  %v1555_v18 = vpop.f32.mrf.mxu3  ;;  %v2095_v10 = vsub.f32 %v6896_v4, %v8397_v21  ;;  %3282 = vmatpush.msrb.mxu0 %v6910_v59  ;;  %v6920_v50 = vsub.f32 %v590_v37, %v6910_v59  ;;  %4022 = vmatpush.msra.mxu3 %v6910_v59  ;;  %v411_v21 = vld [vmem:[%s5294_s6 + $0x1d0] sm:$0xff] }
 0x267   : > { %v1556_v48 = vadd.f32 %v1555_v18, %v1327_v35 }
 0x268   : > { %v1921_v49 = vpop.f32.mrf.mxu1  ;;  %v8402_v18 = vand.u32 4294901760, %v6920_v50  ;;  %3817 = vmatpush.msra.mxu2 %v6920_v50  ;;  %v2096_v37 = vand.u32 4294901760, %v2095_v10 }
 0x269   : > { %v1757_v15 = vadd.f32 %v1756_v38, %v1556_v48  ;;  %v8760_v38 = vand.u32 4294901760, %v6820_v5 }
 0x26a   : > { %2089 = vmatmul.f32.gmra.mxu2 %v2088_v2  ;;  %v1760_v33 = vpop.f32.mrf.mxu0  ;;  %v6931_v2 = vand.u32 4294901760, %v507_v30  ;;  %v3613_v5 = vsub.f32 %v6920_v50, %v8402_v18 }
 0x26b   : > { %v6922_v35 = vadd.f32 %v1921_v49, %v1757_v15  ;;  %2382 = vmatmul.f32.gmra.mxu3 %v6835_v61  ;;  %2785 = vmatmul.f32.gmra.mxu1 %v8760_v38  ;;  %v8403_v49 = vand.u32 4294901760, %v6916_v28  ;;  %v312_v38 = vld [vmem:[%s5287_s29 + $0x1d0] sm:$0xff] }
 0x26c   : > { %8761 = vst [vmem:[#allocation62_spill] sm:$0xff] %v6931_v2  ;;  %v6941_v16 = vsub.f32 %v507_v30, %v6931_v2 }
 0x26d   : > { %8759 = vst [vmem:[#allocation58_spill] sm:$0xff] %v6922_v35  ;;  %v1336_v55 = vpop.f32.mrf.mxu2  ;;  %2578 = vmatmul.f32.gmra.mxu0 %v6845_v42  ;;  %v3614_v35 = vand.u32 4294901760, %v3613_v5  ;;  %v2103_v10 = vsub.f32 %v6916_v28, %v8403_v49 }
 0x26e   : > { %v1337_v58 = vadd.f32 %v1336_v55, %v8762_v13  ;;  %v1561_v48 = vpop.f32.mrf.mxu3  ;;  %v510_v13 = vmul.f32 %v411_v21, %v312_v38  ;;  %v8406_v30 = vand.u32 4294901760, %v6941_v16  ;;  %v315_v21 = vld [vmem:[%s5287_s29 + $0x1e8] sm:$0xff] }
 0x26f   : > { %v1562_v15 = vadd.f32 %v1561_v48, %v1332_v12  ;;  %3615 = vmatpush.msrb.mxu1 %v3614_v35  ;;  %v8764_v12 = vand.u32 4294901760, %v6845_v42  ;;  %v2104_v5 = vand.u32 4294901760, %v2103_v10 }
 0x270   : > { %v1925_v61 = vpop.f32.mrf.mxu1  ;;  %v2111_v42 = vsub.f32 %v6941_v16, %v8406_v30 }
 0x271   : > { %v1761_v57 = vadd.f32 %v1760_v33, %v1562_v15  ;;  %v6954_v15 = vand.u32 4294901760, %v510_v13 }
 0x272   : > { %2097 = vmatmul.f32.gmra.mxu2 %v2096_v37  ;;  %v1764_v55 = vpop.f32.mrf.mxu0 }
 0x273   : > { %v6946_v18 = vadd.f32 %v1925_v61, %v1761_v57  ;;  %2386 = vmatmul.f32.gmra.mxu3 %v6858_v52  ;;  %2791 = vmatmul.f32.gmra.mxu1 %v8764_v12  ;;  %8765 = vst [vmem:[#allocation63_spill] sm:$0xff] %v6954_v15  ;;  %v414_v57 = vld [vmem:[%s5294_s6 + $0x1e8] sm:$0xff]  ;;  %v6962_v52 = vsub.f32 %v510_v13, %v6954_v15 }
 0x274   : > { %v589_v12 = vld [vmem:[#allocation7 + $0x130] sm:$0xff] }
 0x275   : > { %8763 = vst [vmem:[#allocation32_spill] sm:$0xff] %v6946_v18  ;;  %v1970_v33 = vpop.f32.mrf.mxu2  ;;  %2583 = vmatmul.f32.gmra.mxu0 %v6868_v7  ;;  %v513_v18 = vmul.f32 %v414_v57, %v315_v21 }
 0x276   : > { %v1567_v48 = vpop.f32.mrf.mxu3  ;;  %v1971_v37 = vadd.f32 %v1970_v33, %v6272_v23  ;;  %v6964_v23 = vand.u32 4294901760, %v589_v12  ;;  %v2112_v33 = vand.u32 4294901760, %v2111_v42 }
 0x277   : > { %v1568_v35 = vadd.f32 %v1567_v48, %v1337_v58  ;;  %v8767_v58 = vand.u32 4294901760, %v6868_v7  ;;  %v6979_v21 = vand.u32 4294901760, %v513_v18 }
 0x278   : > { %v1929_v61 = vpop.f32.mrf.mxu1  ;;  %3284 = vmatpush.msrb.mxu0 %v6964_v23  ;;  %4024 = vmatpush.msra.mxu3 %v6964_v23 }
 0x279   : > { %v1765_v38 = vadd.f32 %v1764_v55, %v1568_v35  ;;  %v6973_v55 = vsub.f32 %v589_v12, %v6964_v23  ;;  %v8410_v35 = vand.u32 4294901760, %v6962_v52  ;;  %8768 = vst [vmem:[#allocation29_spill] sm:$0xff] %v6979_v21  ;;  %v6992_v30 = vsub.f32 %v513_v18, %v6979_v21 }
 0x27a   : > { %2105 = vmatmul.f32.gmra.mxu2 %v2104_v5  ;;  %v2509_v49 = vpop.f32.mrf.mxu0 }
 0x27b   : > { %v6966_v10 = vadd.f32 %v1929_v61, %v1765_v38  ;;  %2390 = vmatmul.f32.gmra.mxu3 %v6885_v3  ;;  %2797 = vmatmul.f32.gmra.mxu1 %v8767_v58  ;;  %v8409_v7 = vand.u32 4294901760, %v6973_v55  ;;  %v318_v61 = vld [vmem:[%s5287_s29 + $0x200] sm:$0xff]  ;;  %v417_v38 = vld [vmem:[%s5294_s6 + $0x200] sm:$0xff]  ;;  %v8413_v18 = vand.u32 4294901760, %v6992_v30 }
 0x27c   : > { %3820 = vmatpush.msra.mxu2 %v6973_v55 }
 0x27d   : > { %8766 = vst [vmem:[#allocation65_spill] sm:$0xff] %v6966_v10  ;;  %v1978_v13 = vpop.f32.mrf.mxu2  ;;  %2588 = vmatmul.f32.gmra.mxu0 %v6896_v4  ;;  %v3619_v42 = vsub.f32 %v6973_v55, %v8409_v7  ;;  %v8770_v7 = vand.u32 4294901760, %v6896_v4  ;;  %v588_v4 = vld [vmem:[#allocation7 + $0x128] sm:$0xff] }
 0x27e   : > { %v1979_v48 = vadd.f32 %v1978_v13, %v6287_v51  ;;  %v2327_v5 = vpop.f32.mrf.mxu3  ;;  %v2119_v13 = vsub.f32 %v6962_v52, %v8410_v35 }
 0x27f   : > { %v2328_v57 = vadd.f32 %v2327_v5, %v1971_v37  ;;  %v3620_v37 = vand.u32 4294901760, %v3619_v42  ;;  %v516_v5 = vmul.f32 %v417_v38, %v318_v61  ;;  %v321_v61 = vld [vmem:[%s5287_s29 + $0x218] sm:$0xff]  ;;  %v420_v38 = vld [vmem:[%s5294_s6 + $0x218] sm:$0xff] }
 0x280   : > { %v2708_v12 = vpop.f32.mrf.mxu1  ;;  %v2120_v35 = vand.u32 4294901760, %v2119_v13  ;;  %v7012_v13 = vand.u32 4294901760, %v588_v4 }
 0x281   : > { %v2510_v58 = vadd.f32 %v2509_v49, %v2328_v57  ;;  %3621 = vmatpush.msrb.mxu1 %v3620_v37  ;;  %v7002_v10 = vand.u32 4294901760, %v516_v5  ;;  %v2127_v37 = vsub.f32 %v6992_v30, %v8413_v18 }
 0x282   : > { %2113 = vmatmul.f32.gmra.mxu2 %v2112_v33  ;;  %v2514_v51 = vpop.f32.mrf.mxu0  ;;  %3286 = vmatpush.msrb.mxu0 %v7012_v13 }
 0x283   : > { %v6994_v3 = vadd.f32 %v2708_v12, %v2510_v58  ;;  %2394 = vmatmul.f32.gmra.mxu3 %v6906_v62  ;;  %2803 = vmatmul.f32.gmra.mxu1 %v8770_v7  ;;  %8771 = vst [vmem:[#allocation37_spill] sm:$0xff] %v7002_v10  ;;  %v519_v62 = vmul.f32 %v420_v38, %v321_v61  ;;  %v2128_v38 = vand.u32 4294901760, %v2127_v37 }
 0x284   : > { %4026 = vmatpush.msra.mxu3 %v7012_v13 }
 0x285   : > { %8769 = vst [vmem:[#allocation31_spill] sm:$0xff] %v6994_v3  ;;  %v1986_v49 = vpop.f32.mrf.mxu2  ;;  %2593 = vmatmul.f32.gmra.mxu0 %v6916_v28 }
 0x286   : > { %v1987_v33 = vadd.f32 %v1986_v49, %v6302_v1  ;;  %v2331_v57 = vpop.f32.mrf.mxu3  ;;  %v7010_v1 = vsub.f32 %v516_v5, %v7002_v10  ;;  %v7025_v5 = vand.u32 4294901760, %v519_v62 }
 0x287   : > { %v2332_v12 = vadd.f32 %v2331_v57, %v1979_v48  ;;  %v8773_v48 = vand.u32 4294901760, %v6916_v28 }
 0x288   : > { %v2714_v42 = vpop.f32.mrf.mxu1  ;;  %8774 = vst [vmem:[#allocation41_spill] sm:$0xff] %v7025_v5  ;;  %v8417_v28 = vand.u32 4294901760, %v7010_v1 }
 0x289   : > { %v2515_v58 = vadd.f32 %v2514_v51, %v2332_v12 }
 0x28a   : > { %2121 = vmatmul.f32.gmra.mxu2 %v2120_v35  ;;  %v2519_v7 = vpop.f32.mrf.mxu0  ;;  %v7021_v35 = vsub.f32 %v588_v4, %v7012_v13  ;;  %v423_v4 = vld [vmem:[%s5294_s6 + $0x230] sm:$0xff]  ;;  %v2135_v37 = vsub.f32 %v7010_v1, %v8417_v28 }
 0x28b   : > { %v7014_v49 = vadd.f32 %v2714_v42, %v2515_v58  ;;  %2398 = vmatmul.f32.gmra.mxu3 %v6931_v2  ;;  %2809 = vmatmul.f32.gmra.mxu1 %v8773_v48  ;;  %v324_v58 = vld [vmem:[%s5287_s29 + $0x230] sm:$0xff] }
 0x28c   : > { %v8416_v12 = vand.u32 4294901760, %v7021_v35  ;;  %3823 = vmatpush.msra.mxu2 %v7021_v35  ;;  %v2136_v28 = vand.u32 4294901760, %v2135_v37 }
 0x28d   : > { %8772 = vst [vmem:[#allocation38_spill] sm:$0xff] %v7014_v49  ;;  %v1994_v51 = vpop.f32.mrf.mxu2  ;;  %2598 = vmatmul.f32.gmra.mxu0 %v6941_v16  ;;  %v7037_v49 = vsub.f32 %v519_v62, %v7025_v5 }
 0x28e   : > { %v1995_v57 = vadd.f32 %v1994_v51, %v6317_v40  ;;  %v2335_v61 = vpop.f32.mrf.mxu3  ;;  %v3625_v18 = vsub.f32 %v7021_v35, %v8416_v12  ;;  %v522_v51 = vmul.f32 %v423_v4, %v324_v58  ;;  %v8776_v12 = vand.u32 4294901760, %v6941_v16  ;;  %v426_v58 = vld [vmem:[%s5294_s6 + $0x248] sm:$0xff] }
 0x28f   : > { %v2336_v42 = vadd.f32 %v2335_v61, %v1987_v33 }
 0x290   : > { %v2720_v48 = vpop.f32.mrf.mxu1  ;;  %v3626_v33 = vand.u32 4294901760, %v3625_v18  ;;  %v7050_v3 = vand.u32 4294901760, %v522_v51 }
 0x291   : > { %v2520_v2 = vadd.f32 %v2519_v7, %v2336_v42  ;;  %v8420_v7 = vand.u32 4294901760, %v7037_v49 }
 0x292   : > { %2129 = vmatmul.f32.gmra.mxu2 %v2128_v38  ;;  %v2524_v40 = vpop.f32.mrf.mxu0  ;;  %3627 = vmatpush.msrb.mxu1 %v3626_v33  ;;  %8777 = vst [vmem:[#allocation44_spill] sm:$0xff] %v7050_v3 }
 0x293   : > { %v7042_v61 = vadd.f32 %v2720_v48, %v2520_v2  ;;  %2402 = vmatmul.f32.gmra.mxu3 %v6954_v15  ;;  %2815 = vmatmul.f32.gmra.mxu1 %v8776_v12  ;;  %v327_v2 = vld [vmem:[%s5287_s29 + $0x248] sm:$0xff]  ;;  %v2143_v16 = vsub.f32 %v7037_v49, %v8420_v7  ;;  %v7058_v15 = vsub.f32 %v522_v51, %v7050_v3 }
 0x294   : > { %v587_v12 = vld [vmem:[#allocation7 + $0x120] sm:$0xff] }
 0x295   : > { %8775 = vst [vmem:[#allocation42_spill] sm:$0xff] %v7042_v61  ;;  %v2002_v62 = vpop.f32.mrf.mxu2  ;;  %2603 = vmatmul.f32.gmra.mxu0 %v6962_v52  ;;  %v2144_v51 = vand.u32 4294901760, %v2143_v16 }
 0x296   : > { %v2003_v38 = vadd.f32 %v2002_v62, %v6332_v8  ;;  %v2339_v42 = vpop.f32.mrf.mxu3  ;;  %v525_v8 = vmul.f32 %v426_v58, %v327_v2  ;;  %v7060_v62 = vand.u32 4294901760, %v587_v12  ;;  %v8424_v2 = vand.u32 4294901760, %v7058_v15 }
 0x297   : > { %v2340_v18 = vadd.f32 %v2339_v42, %v1995_v57  ;;  %v8779_v57 = vand.u32 4294901760, %v6962_v52 }
 0x298   : > { %v2726_v4 = vpop.f32.mrf.mxu1  ;;  %3288 = vmatpush.msrb.mxu0 %v7060_v62  ;;  %4028 = vmatpush.msra.mxu3 %v7060_v62  ;;  %v7075_v58 = vand.u32 4294901760, %v525_v8 }
 0x299   : > { %v2525_v48 = vadd.f32 %v2524_v40, %v2340_v18 }
 0x29a   : > { %2137 = vmatmul.f32.gmra.mxu2 %v2136_v28  ;;  %v2529_v33 = vpop.f32.mrf.mxu0  ;;  %v7069_v28 = vsub.f32 %v587_v12, %v7060_v62  ;;  %8780 = vst [vmem:[#allocation47_spill] sm:$0xff] %v7075_v58  ;;  %v429_v12 = vld [vmem:[%s5294_s6 + $0x260] sm:$0xff] }
 0x29b   : > { %v7062_v37 = vadd.f32 %v2726_v4, %v2525_v48  ;;  %2406 = vmatmul.f32.gmra.mxu3 %v6979_v21  ;;  %2821 = vmatmul.f32.gmra.mxu1 %v8779_v57  ;;  %v330_v48 = vld [vmem:[%s5287_s29 + $0x260] sm:$0xff]  ;;  %v7088_v21 = vsub.f32 %v525_v8, %v7075_v58 }
 0x29c   : > { %v8423_v52 = vand.u32 4294901760, %v7069_v28  ;;  %3826 = vmatpush.msra.mxu2 %v7069_v28 }
 0x29d   : > { %8778 = vst [vmem:[#allocation45_spill] sm:$0xff] %v7062_v37  ;;  %v2010_v40 = vpop.f32.mrf.mxu2  ;;  %2608 = vmatmul.f32.gmra.mxu0 %v6992_v30  ;;  %v8427_v8 = vand.u32 4294901760, %v7088_v21 }
 0x29e   : > { %v2011_v42 = vadd.f32 %v2010_v40, %v6347_v31  ;;  %v2343_v18 = vpop.f32.mrf.mxu3  ;;  %v3631_v16 = vsub.f32 %v7069_v28, %v8423_v52  ;;  %v2151_v40 = vsub.f32 %v7058_v15, %v8424_v2  ;;  %v8782_v52 = vand.u32 4294901760, %v6992_v30  ;;  %v586_v30 = vld [vmem:[#allocation7 + $0x118] sm:$0xff] }
 0x29f   : > { %v2344_v4 = vadd.f32 %v2343_v18, %v2003_v38  ;;  %v528_v38 = vmul.f32 %v429_v12, %v330_v48  ;;  %v333_v48 = vld [vmem:[%s5287_s29 + $0x278] sm:$0xff] }
 0x2a0   : > { %v2732_v57 = vpop.f32.mrf.mxu1  ;;  %v3632_v18 = vand.u32 4294901760, %v3631_v16  ;;  %v2152_v2 = vand.u32 4294901760, %v2151_v40  ;;  %v7108_v40 = vand.u32 4294901760, %v586_v30 }
 0x2a1   : > { %v2530_v7 = vadd.f32 %v2529_v33, %v2344_v4  ;;  %v7098_v61 = vand.u32 4294901760, %v528_v38 }
 0x2a2   : > { %2145 = vmatmul.f32.gmra.mxu2 %v2144_v51  ;;  %v2534_v31 = vpop.f32.mrf.mxu0  ;;  %3633 = vmatpush.msrb.mxu1 %v3632_v18  ;;  %v2159_v18 = vsub.f32 %v7088_v21, %v8427_v8 }
 0x2a3   : > { %v7090_v37 = vadd.f32 %v2732_v57, %v2530_v7  ;;  %2410 = vmatmul.f32.gmra.mxu3 %v7002_v10  ;;  %2827 = vmatmul.f32.gmra.mxu1 %v8782_v52  ;;  %8783 = vst [vmem:[#allocation51_spill] sm:$0xff] %v7098_v61  ;;  %v432_v7 = vld [vmem:[%s5294_s6 + $0x278] sm:$0xff] }
 0x2a4   : > { %v531_v10 = vmul.f32 %v432_v7, %v333_v48  ;;  %3290 = vmatpush.msrb.mxu0 %v7108_v40  ;;  %4030 = vmatpush.msra.mxu3 %v7108_v40  ;;  %v2160_v7 = vand.u32 4294901760, %v2159_v18 }
 0x2a5   : > { %8781 = vst [vmem:[#allocation49_spill] sm:$0xff] %v7090_v37  ;;  %v2018_v33 = vpop.f32.mrf.mxu2  ;;  %2613 = vmatmul.f32.gmra.mxu0 %v7010_v1 }
 0x2a6   : > { %v2019_v51 = vadd.f32 %v2018_v33, %v6358_v17  ;;  %v2347_v4 = vpop.f32.mrf.mxu3  ;;  %v7106_v17 = vsub.f32 %v528_v38, %v7098_v61  ;;  %v7121_v38 = vand.u32 4294901760, %v531_v10 }
 0x2a7   : > { %v2348_v12 = vadd.f32 %v2347_v4, %v2011_v42  ;;  %v8785_v42 = vand.u32 4294901760, %v7010_v1 }
 0x2a8   : > { %v2738_v57 = vpop.f32.mrf.mxu1  ;;  %8786 = vst [vmem:[#allocation55_spill] sm:$0xff] %v7121_v38  ;;  %v8431_v1 = vand.u32 4294901760, %v7106_v17 }
 0x2a9   : > { %v2535_v16 = vadd.f32 %v2534_v31, %v2348_v12 }
 0x2aa   : > { %2153 = vmatmul.f32.gmra.mxu2 %v2152_v2  ;;  %v2539_v52 = vpop.f32.mrf.mxu0  ;;  %v7117_v2 = vsub.f32 %v586_v30, %v7108_v40  ;;  %v435_v30 = vld [vmem:[%s5294_s6 + $0x290] sm:$0xff]  ;;  %v2167_v18 = vsub.f32 %v7106_v17, %v8431_v1 }
 0x2ab   : > { %v7110_v33 = vadd.f32 %v2738_v57, %v2535_v16  ;;  %2414 = vmatmul.f32.gmra.mxu3 %v7025_v5  ;;  %2833 = vmatmul.f32.gmra.mxu1 %v8785_v42  ;;  %v336_v16 = vld [vmem:[%s5287_s29 + $0x290] sm:$0xff] }
 0x2ac   : > { %v8430_v12 = vand.u32 4294901760, %v7117_v2  ;;  %3829 = vmatpush.msra.mxu2 %v7117_v2  ;;  %v2168_v1 = vand.u32 4294901760, %v2167_v18 }
 0x2ad   : > { %8784 = vst [vmem:[#allocation53_spill] sm:$0xff] %v7110_v33  ;;  %v2026_v31 = vpop.f32.mrf.mxu2  ;;  %2618 = vmatmul.f32.gmra.mxu0 %v7037_v49  ;;  %v7133_v33 = vsub.f32 %v531_v10, %v7121_v38 }
 0x2ae   : > { %v2027_v4 = vadd.f32 %v2026_v31, %v6377_v26  ;;  %v2351_v48 = vpop.f32.mrf.mxu3  ;;  %v3637_v8 = vsub.f32 %v7117_v2, %v8430_v12  ;;  %v8787_v12 = vand.u32 4294901760, %v7037_v49 }
 0x2af   : > { %v2352_v57 = vadd.f32 %v2351_v48, %v2019_v51  ;;  %v534_v51 = vmul.f32 %v435_v30, %v336_v16  ;;  %v438_v16 = vld [vmem:[%s5294_s6 + $0x2a8] sm:$0xff] }
 0x2b0   : > { %v2744_v42 = vpop.f32.mrf.mxu1  ;;  %v3638_v31 = vand.u32 4294901760, %v3637_v8 }
 0x2b1   : > { %v2540_v5 = vadd.f32 %v2539_v52, %v2352_v57  ;;  %v8434_v52 = vand.u32 4294901760, %v7133_v33  ;;  %v7146_v37 = vand.u32 4294901760, %v534_v51 }
 0x2b2   : > { %2161 = vmatmul.f32.gmra.mxu2 %v2160_v7  ;;  %v2544_v26 = vpop.f32.mrf.mxu0  ;;  %3639 = vmatpush.msrb.mxu1 %v3638_v31 }
 0x2b3   : > { %v7138_v48 = vadd.f32 %v2744_v42, %v2540_v5  ;;  %2418 = vmatmul.f32.gmra.mxu3 %v7050_v3  ;;  %2839 = vmatmul.f32.gmra.mxu1 %v8787_v12  ;;  %8788 = vst [vmem:[#allocation57_spill] sm:$0xff] %v7146_v37  ;;  %v339_v5 = vld [vmem:[%s5287_s29 + $0x2a8] sm:$0xff]  ;;  %v2175_v49 = vsub.f32 %v7133_v33, %v8434_v52 }
 0x2b4   : > { %v7154_v31 = vsub.f32 %v534_v51, %v7146_v37  ;;  %v537_v3 = vmul.f32 %v438_v16, %v339_v5 }
 0x2b5   : > { %v2034_v10 = vpop.f32.mrf.mxu2  ;;  %2623 = vmatmul.f32.gmra.mxu0 %v7058_v15 }
 0x2b6   : > { %v2035_v7 = vadd.f32 %v2034_v10, %v6388_v14  ;;  %v2355_v57 = vpop.f32.mrf.mxu3  ;;  %v7166_v5 = vand.u32 4294901760, %v537_v3 }
 0x2b7   : > { %v2356_v8 = vadd.f32 %v2355_v57, %v2027_v4  ;;  %v8790_v4 = vand.u32 4294901760, %v7058_v15  ;;  %v2176_v57 = vand.u32 4294901760, %v2175_v49 }
 0x2b8   : > { %v2750_v30 = vpop.f32.mrf.mxu1 }
 0x2b9   : > { %v2545_v42 = vadd.f32 %v2544_v26, %v2356_v8  ;;  %v585_v26 = vld [vmem:[#allocation7 + $0x110] sm:$0xff]  ;;  %v8437_v8 = vand.u32 4294901760, %v7154_v31 }
 0x2ba   : > { %2169 = vmatmul.f32.gmra.mxu2 %v2168_v1  ;;  %v2549_v12 = vpop.f32.mrf.mxu0  ;;  %v7161_v18 = vand.u32 4294901760, %v585_v26 }
 0x2bb   : > { %v7156_v14 = vadd.f32 %v2750_v30, %v2545_v42  ;;  %2422 = vmatmul.f32.gmra.mxu3 %v7075_v58  ;;  %2845 = vmatmul.f32.gmra.mxu1 %v8790_v4  ;;  %v342_v30 = vld [vmem:[%s5287_s29 + $0x2c0] sm:$0xff]  ;;  %v441_v42 = vld [vmem:[%s5294_s6 + $0x2c0] sm:$0xff]  ;;  %v2183_v52 = vsub.f32 %v7154_v31, %v8437_v8 }
 0x2bc   : > { %3292 = vmatpush.msrb.mxu0 %v7161_v18  ;;  %v7170_v15 = vsub.f32 %v585_v26, %v7161_v18  ;;  %4032 = vmatpush.msra.mxu3 %v7161_v18  ;;  %v7181_v26 = vsub.f32 %v537_v3, %v7166_v5 }
 0x2bd   : > { %8789 = vst [vmem:[#allocation59_spill] sm:$0xff] %v7156_v14  ;;  %v2042_v10 = vpop.f32.mrf.mxu2  ;;  %2628 = vmatmul.f32.gmra.mxu0 %v7088_v21  ;;  %v2184_v14 = vand.u32 4294901760, %v2183_v52 }
 0x2be   : > { %v2043_v1 = vadd.f32 %v2042_v10, %v6407_v45  ;;  %v2359_v51 = vpop.f32.mrf.mxu3  ;;  %v8438_v4 = vand.u32 4294901760, %v7170_v15  ;;  %3832 = vmatpush.msra.mxu2 %v7170_v15 }
 0x2bf   : > { %v2360_v16 = vadd.f32 %v2359_v51, %v2035_v7  ;;  %v540_v7 = vmul.f32 %v441_v42, %v342_v30  ;;  %v8441_v30 = vand.u32 4294901760, %v7181_v26 }
 0x2c0   : > { %v2756_v49 = vpop.f32.mrf.mxu1  ;;  %v3643_v51 = vsub.f32 %v7170_v15, %v8438_v4 }
 0x2c1   : > { %v2550_v45 = vadd.f32 %v2549_v12, %v2360_v16  ;;  %v8792_v12 = vand.u32 4294901760, %v7088_v21  ;;  %v7194_v42 = vand.u32 4294901760, %v540_v7 }
 0x2c2   : > { %2177 = vmatmul.f32.gmra.mxu2 %v2176_v57  ;;  %v2554_v10 = vpop.f32.mrf.mxu0  ;;  %v3644_v57 = vand.u32 4294901760, %v3643_v51 }
 0x2c3   : > { %v7186_v58 = vadd.f32 %v2756_v49, %v2550_v45  ;;  %2426 = vmatmul.f32.gmra.mxu3 %v7098_v61  ;;  %2851 = vmatmul.f32.gmra.mxu1 %v8792_v12  ;;  %v345_v49 = vld [vmem:[%s5287_s29 + $0x2d8] sm:$0xff]  ;;  %v444_v45 = vld [vmem:[%s5294_s6 + $0x2d8] sm:$0xff]  ;;  %v2191_v12 = vsub.f32 %v7181_v26, %v8441_v30 }
 0x2c4   : > { %3645 = vmatpush.msrb.mxu1 %v3644_v57  ;;  %v543_v21 = vmul.f32 %v444_v45, %v345_v49  ;;  %v8794_v57 = vand.u32 4294901760, %v7106_v17  ;;  %v348_v49 = vld [vmem:[%s5287_s29 + $0x2f0] sm:$0xff]  ;;  %v447_v45 = vld [vmem:[%s5294_s6 + $0x2f0] sm:$0xff] }
 0x2c5   : > { %8791 = vst [vmem:[#allocation60_spill] sm:$0xff] %v7186_v58  ;;  %v2050_v16 = vpop.f32.mrf.mxu2  ;;  %2633 = vmatmul.f32.gmra.mxu0 %v7106_v17 }
 0x2c6   : > { %v2051_v3 = vadd.f32 %v2050_v16, %v6418_v9  ;;  %v2363_v8 = vpop.f32.mrf.mxu3  ;;  %v7202_v9 = vsub.f32 %v540_v7, %v7194_v42 }
 0x2c7   : > { %v2364_v4 = vadd.f32 %v2363_v8, %v2043_v1  ;;  %v584_v1 = vld [vmem:[#allocation7 + $0x108] sm:$0xff] }
 0x2c8   : > { %v2762_v61 = vpop.f32.mrf.mxu1  ;;  %v7209_v8 = vand.u32 4294901760, %v584_v1 }
 0x2c9   : > { %v2555_v58 = vadd.f32 %v2554_v10, %v2364_v4  ;;  %v7212_v4 = vand.u32 4294901760, %v543_v21 }
 0x2ca   : > { %2185 = vmatmul.f32.gmra.mxu2 %v2184_v14  ;;  %v2559_v51 = vpop.f32.mrf.mxu0  ;;  %3294 = vmatpush.msrb.mxu0 %v7209_v8  ;;  %v7218_v17 = vsub.f32 %v584_v1, %v7209_v8 }
 0x2cb   : > { %v7204_v52 = vadd.f32 %v2762_v61, %v2555_v58  ;;  %2430 = vmatmul.f32.gmra.mxu3 %v7121_v38  ;;  %2857 = vmatmul.f32.gmra.mxu1 %v8794_v57  ;;  %v2192_v61 = vand.u32 4294901760, %v2191_v12  ;;  %v8444_v58 = vand.u32 4294901760, %v7202_v9  ;;  %v7226_v12 = vsub.f32 %v543_v21, %v7212_v4 }
 0x2cc   : > { %4034 = vmatpush.msra.mxu3 %v7209_v8  ;;  %v8445_v30 = vand.u32 4294901760, %v7218_v17  ;;  %3835 = vmatpush.msra.mxu2 %v7218_v17  ;;  %v546_v38 = vmul.f32 %v447_v45, %v348_v49  ;;  %v8796_v21 = vand.u32 4294901760, %v7133_v33 }
 0x2cd   : > { %8793 = vst [vmem:[#allocation61_spill] sm:$0xff] %v7204_v52  ;;  %v2058_v14 = vpop.f32.mrf.mxu2  ;;  %2638 = vmatmul.f32.gmra.mxu0 %v7133_v33  ;;  %v2199_v1 = vsub.f32 %v7202_v9, %v8444_v58 }
 0x2ce   : > { %v2059_v10 = vadd.f32 %v2058_v14, %v6443_v43  ;;  %v2367_v7 = vpop.f32.mrf.mxu3  ;;  %v7242_v52 = vand.u32 4294901760, %v546_v38 }
 0x2cf   : > { %v2368_v16 = vadd.f32 %v2367_v7, %v2051_v3  ;;  %v3649_v3 = vsub.f32 %v7218_v17, %v8445_v30  ;;  %v2200_v58 = vand.u32 4294901760, %v2199_v1  ;;  %v450_v30 = vld [vmem:[%s5294_s6 + $0x308] sm:$0xff]  ;;  %v583_v1 = vld [vmem:[#allocation7 + $0x100] sm:$0xff] }
 0x2d0   : > { %v2768_v57 = vpop.f32.mrf.mxu1 }
 0x2d1   : > { %v2560_v43 = vadd.f32 %v2559_v51, %v2368_v16  ;;  %v3650_v51 = vand.u32 4294901760, %v3649_v3  ;;  %v2206_v16 = vand.u32 4294901760, %v7226_v12 }
 0x2d2   : > { %2193 = vmatmul.f32.gmra.mxu2 %v2192_v61  ;;  %v2564_v14 = vpop.f32.mrf.mxu0 }
 0x2d3   : > { %v7234_v7 = vadd.f32 %v2768_v57, %v2560_v43  ;;  %2434 = vmatmul.f32.gmra.mxu3 %v7146_v37  ;;  %2863 = vmatmul.f32.gmra.mxu1 %v8796_v21  ;;  %v351_v43 = vld [vmem:[%s5287_s29 + $0x308] sm:$0xff]  ;;  %v2207_v33 = vsub.f32 %v7226_v12, %v2206_v16  ;;  %v7250_v21 = vsub.f32 %v546_v38, %v7242_v52 }
 0x2d4   : > { %3651 = vmatpush.msrb.mxu1 %v3650_v51  ;;  %v7257_v51 = vand.u32 4294901760, %v583_v1 }
 0x2d5   : > { %8795 = vst [vmem:[#allocation64_spill] sm:$0xff] %v7234_v7  ;;  %v2066_v61 = vpop.f32.mrf.mxu2  ;;  %2643 = vmatmul.f32.gmra.mxu0 %v7154_v31  ;;  %v2214_v38 = vand.u32 4294901760, %v7250_v21 }
 0x2d6   : > { %v2067_v49 = vadd.f32 %v2066_v61, %v6463_v60  ;;  %v2371_v45 = vpop.f32.mrf.mxu3  ;;  %v549_v60 = vmul.f32 %v450_v30, %v351_v43  ;;  %3296 = vmatpush.msrb.mxu0 %v7257_v51  ;;  %4036 = vmatpush.msra.mxu3 %v7257_v51 }
 0x2d7   : > { %v2372_v57 = vadd.f32 %v2371_v45, %v2059_v10  ;;  %v8797_v10 = vand.u32 4294901760, %v7154_v31  ;;  %v2208_v45 = vand.u32 4294901760, %v2207_v33 }
 0x2d8   : > { %v2774_v37 = vpop.f32.mrf.mxu1  ;;  %v7262_v30 = vand.u32 4294901760, %v549_v60 }
 0x2d9   : > { %v2565_v7 = vadd.f32 %v2564_v14, %v2372_v57 }
 0x2da   : > { %2201 = vmatmul.f32.gmra.mxu2 %v2200_v58  ;;  %v2569_v3 = vpop.f32.mrf.mxu0 }
 0x2db   : > { %v7252_v61 = vadd.f32 %v2774_v37, %v2565_v7  ;;  %2438 = vmatmul.f32.gmra.mxu3 %v7166_v5  ;;  %2869 = vmatmul.f32.gmra.mxu1 %v8797_v10  ;;  %v7266_v37 = vsub.f32 %v583_v1, %v7257_v51  ;;  %v8798_v7 = vand.u32 4294901760, %v6507_v46  ;;  %v8799_v10 = vand.u32 4294901760, %v6578_v53 }
 0x2dc   : > { %v2215_v1 = vsub.f32 %v7250_v21, %v2214_v38  ;;  %v8800_v53 = vand.u32 4294901760, %v7181_v26 }
 0x2dd   : > { %v2074_v14 = vpop.f32.mrf.mxu2  ;;  %2648 = vmatmul.f32.gmra.mxu0 %v7181_v26  ;;  %v3654_v33 = vand.u32 4294901760, %v7266_v37  ;;  %3838 = vmatpush.msra.mxu2 %v7266_v37 }
 0x2de   : > { %v2075_v58 = vadd.f32 %v2074_v14, %v6489_v63  ;;  %v2375_v57 = vpop.f32.mrf.mxu3  ;;  %4239 = vmatpush.msra.mxu0 %v8798_v7 }
 0x2df   : > { %v2376_v31 = vadd.f32 %v2375_v57, %v2067_v49  ;;  %v7279_v49 = vsub.f32 %v549_v60, %v7262_v30  ;;  %v3655_v46 = vsub.f32 %v7266_v37, %v3654_v33 }
 0x2e0   : > { %v2780_v43 = vpop.f32.mrf.mxu1  ;;  %4243 = vmatpush.msra.mxu0 %v8799_v10  ;;  %v2216_v10 = vand.u32 4294901760, %v2215_v1 }
 0x2e1   : > { %v2570_v63 = vadd.f32 %v2569_v3, %v2376_v31  ;;  %v3656_v3 = vand.u32 4294901760, %v3655_v46  ;;  %v8803_v46 = vand.u32 4294901760, %v6723_v47 }
 0x2e2   : > { %2209 = vmatmul.f32.gmra.mxu2 %v2208_v45  ;;  %v2574_v14 = vpop.f32.mrf.mxu0  ;;  %v8801_v45 = vand.u32 4294901760, %v6627_v6 }
 0x2e3   : > { %v7284_v57 = vadd.f32 %v2780_v43, %v2570_v63  ;;  %2442 = vmatmul.f32.gmra.mxu3 %v7194_v42  ;;  %2875 = vmatmul.f32.gmra.mxu1 %v8800_v53  ;;  %v2222_v43 = vand.u32 4294901760, %v7279_v49  ;;  %v8802_v63 = vand.u32 4294901760, %v6675_v19  ;;  %v8804_v19 = vand.u32 4294901760, %v6776_v24 }
 0x2e4   : > { %4247 = vmatpush.msra.mxu0 %v8801_v45  ;;  %3657 = vmatpush.msrb.mxu1 %v3656_v3  ;;  %v256_v3 = vld [vmem:[%s5287_s29 + $0x10] sm:$0xff]  ;;  %v355_v45 = vld [vmem:[%s5294_s6 + $0x10] sm:$0xff] }
 0x2e5   : > { %v2082_v31 = vpop.f32.mrf.mxu2  ;;  %2653 = vmatmul.f32.gmra.mxu0 %v7202_v9  ;;  %v2223_v1 = vsub.f32 %v7279_v49, %v2222_v43 }
 0x2e6   : > { %v2083_v60 = vadd.f32 %v2082_v31, %v6529_v20  ;;  %v2379_v7 = vpop.f32.mrf.mxu3  ;;  %4251 = vmatpush.msra.mxu0 %v8802_v63  ;;  %4434 = vmatpush.msra.mxu1 %v6496_v56  ;;  %v8805_v56 = vand.u32 4294901760, %v7202_v9  ;;  %v8807_v9 = vand.u32 4294901760, %v6872_v39 }
 0x2e7   : > { %v2380_v26 = vadd.f32 %v2379_v7, %v2075_v58  ;;  %v2224_v7 = vand.u32 4294901760, %v2223_v1 }
 0x2e8   : > { %v2786_v6 = vpop.f32.mrf.mxu1  ;;  %4255 = vmatpush.msra.mxu0 %v8803_v46  ;;  %4436 = vmatpush.msra.mxu1 %v6563_v0  ;;  %v8806_v0 = vand.u32 4294901760, %v6824_v27  ;;  %v8808_v27 = vand.u32 4294901760, %v6920_v50  ;;  %v358_v46 = vld [vmem:[%s5294_s6 + $0x28] sm:$0xff] }
 0x2e9   : > { %v2575_v53 = vadd.f32 %v2574_v14, %v2380_v26  ;;  %v454_v14 = vmul.f32 %v355_v45, %v256_v3  ;;  %v262_v45 = vld [vmem:[%s5287_s29 + $0x40] sm:$0xff] }
 0x2ea   : > { %2217 = vmatmul.f32.gmra.mxu2 %v2216_v10  ;;  %v2579_v20 = vpop.f32.mrf.mxu0  ;;  %4259 = vmatpush.msra.mxu0 %v8804_v19 }
 0x2eb   : > { %v7307_v58 = vadd.f32 %v2786_v6, %v2575_v53  ;;  %2446 = vmatmul.f32.gmra.mxu3 %v7212_v4  ;;  %2881 = vmatmul.f32.gmra.mxu1 %v8805_v56  ;;  %v7323_v26 = vand.u32 4294901760, %v454_v14 }
 0x2ec   : > { %4438 = vmatpush.msra.mxu1 %v6615_v34  ;;  %4263 = vmatpush.msra.mxu0 %v8806_v0 }
 0x2ed   : > { %v2090_v47 = vpop.f32.mrf.mxu2  ;;  %2658 = vmatmul.f32.gmra.mxu0 %v7226_v12  ;;  %v7338_v50 = vsub.f32 %v454_v14, %v7323_v26  ;;  %v8810_v12 = vand.u32 4294901760, %v7021_v35 }
 0x2ee   : > { %v2091_v24 = vadd.f32 %v2090_v47, %v6558_v29  ;;  %v2383_v31 = vpop.f32.mrf.mxu3  ;;  %4440 = vmatpush.msra.mxu1 %v6663_v36  ;;  %4267 = vmatpush.msra.mxu0 %v8807_v9  ;;  %v259_v29 = vld [vmem:[%s5287_s29 + $0x28] sm:$0xff]  ;;  %v8814_v47 = vand.u32 4294901760, %v7218_v17 }
 0x2ef   : > { %v2384_v10 = vadd.f32 %v2383_v31, %v2083_v60  ;;  %v8456_v1 = vand.u32 4294901760, %v7338_v50 }
 0x2f0   : > { %v2792_v34 = vpop.f32.mrf.mxu1  ;;  %4442 = vmatpush.msra.mxu1 %v6711_v22  ;;  %4271 = vmatpush.msra.mxu0 %v8808_v27  ;;  %v8809_v22 = vand.u32 4294901760, %v6973_v55 }
 0x2f1   : > { %v2580_v63 = vadd.f32 %v2579_v20, %v2384_v10  ;;  %v3300_v19 = vsub.f32 %v7338_v50, %v8456_v1  ;;  %v364_v10 = vld [vmem:[%s5294_s6 + $0x58] sm:$0xff]  ;;  %v292_v1 = vld [vmem:[%s5287_s29 + $0x130] sm:$0xff] }
 0x2f2   : > { %2225 = vmatmul.f32.gmra.mxu2 %v2224_v7  ;;  %v2584_v6 = vpop.f32.mrf.mxu0  ;;  %4444 = vmatpush.msra.mxu1 %v6766_v11  ;;  %v457_v11 = vmul.f32 %v358_v46, %v259_v29  ;;  %v8817_v29 = vld [vmem:[#allocation14_spill] sm:$0xff] }
 0x2f3   : > { %v7328_v36 = vadd.f32 %v2792_v34, %v2580_v63  ;;  %2450 = vmatmul.f32.gmra.mxu3 %v7242_v52  ;;  %2887 = vmatmul.f32.gmra.mxu1 %v2206_v16  ;;  %v8811_v16 = vand.u32 4294901760, %v7069_v28  ;;  %v8816_v34 = vld [vmem:[#allocation17_spill] sm:$0xff] }
 0x2f4   : > { %4446 = vmatpush.msra.mxu1 %v6814_v54  ;;  %4275 = vmatpush.msra.mxu0 %v8809_v22  ;;  %v7348_v3 = vand.u32 4294901760, %v457_v11  ;;  %v268_v22 = vld [vmem:[%s5287_s29 + $0x70] sm:$0xff] }
 0x2f5   : > { %v2098_v39 = vpop.f32.mrf.mxu2  ;;  %2663 = vmatmul.f32.gmra.mxu0 %v7250_v21 }
 0x2f6   : > { %v2099_v60 = vadd.f32 %v2098_v39, %v6588_v44  ;;  %v2387_v53 = vpop.f32.mrf.mxu3  ;;  %4448 = vmatpush.msra.mxu1 %v6862_v41  ;;  %4279 = vmatpush.msra.mxu0 %v8810_v12  ;;  %v361_v41 = vld [vmem:[%s5294_s6 + $0x40] sm:$0xff]  ;;  %v367_v39 = vld [vmem:[%s5294_s6 + $0x70] sm:$0xff] }
 0x2f7   : > { %v2388_v54 = vadd.f32 %v2387_v53, %v2091_v24  ;;  %v460_v56 = vmul.f32 %v361_v41, %v262_v45  ;;  %v3301_v24 = vand.u32 4294901760, %v3300_v19  ;;  %v466_v12 = vmul.f32 %v367_v39, %v268_v22  ;;  %v8819_v19 = vld [vmem:[#allocation18_spill] sm:$0xff] }
 0x2f8   : > { %v2798_v55 = vpop.f32.mrf.mxu1  ;;  %4450 = vmatpush.msra.mxu1 %v6910_v59  ;;  %4283 = vmatpush.msra.mxu0 %v8811_v16  ;;  %v8812_v59 = vand.u32 4294901760, %v7117_v2  ;;  %v8822_v39 = vld [vmem:[#allocation26_spill] sm:$0xff] }
 0x2f9   : > { %v2585_v20 = vadd.f32 %v2584_v6, %v2388_v54  ;;  %v7377_v7 = vand.u32 4294901760, %v460_v56  ;;  %v8818_v54 = vld [vmem:[#allocation19_spill] sm:$0xff] }
 0x2fa   : > { %2968 = vmatmul.f32.vlgmr.msrb.gmra.mxu2 %v6474_v25  ;;  %v2589_v44 = vpop.f32.mrf.mxu0  ;;  %4452 = vmatpush.msra.mxu1 %v6964_v23  ;;  %v7367_v23 = vsub.f32 %v457_v11, %v7348_v3 }
 0x2fb   : > { %v7354_v35 = vadd.f32 %v2798_v55, %v2585_v20  ;;  %2454 = vmatmul.f32.gmra.mxu3 %v7262_v30  ;;  %2893 = vmatmul.f32.gmra.mxu1 %v2214_v38  ;;  %v7395_v17 = vsub.f32 %v460_v56, %v7377_v7 }
 0x2fc   : > { %4454 = vmatpush.msra.mxu1 %v7012_v13  ;;  %4287 = vmatpush.msra.mxu0 %v8812_v59  ;;  %v8813_v13 = vand.u32 4294901760, %v7170_v15  ;;  %v8455_v31 = vand.u32 4294901760, %v7367_v23 }
 0x2fd   : > { %v2106_v28 = vpop.f32.mrf.mxu2  ;;  %2668 = vmatmul.f32.gmra.mxu0 %v7279_v49  ;;  %v8454_v63 = vand.u32 4294901760, %v7395_v17 }
 0x2fe   : > { %v2107_v21 = vadd.f32 %v2106_v28, %v6610_v32  ;;  %v2391_v38 = vpop.f32.mrf.mxu3  ;;  %4456 = vmatpush.msra.mxu1 %v7060_v62  ;;  %4291 = vmatpush.msra.mxu0 %v8813_v13  ;;  %v8815_v32 = vld [vmem:[#allocation16_spill] sm:$0xff]  ;;  %v265_v62 = vld [vmem:[%s5287_s29 + $0x58] sm:$0xff]  ;;  %v7417_v28 = vand.u32 4294901760, %v466_v12 }
 0x2ff   : > { %v2392_v2 = vadd.f32 %v2391_v38, %v2099_v60  ;;  %v3316_v60 = vsub.f32 %v7395_v17, %v8454_v63  ;;  %v370_v38 = vld [vmem:[%s5294_s6 + $0x88] sm:$0xff] }
 0x300   : > { %v2804_v0 = vpop.f32.mrf.mxu1  ;;  %4458 = vmatpush.msra.mxu1 %v7108_v40  ;;  %4295 = vmatpush.msra.mxu0 %v8814_v47  ;;  %v7430_v47 = vsub.f32 %v466_v12, %v7417_v28 }
 0x301   : > { %v2590_v14 = vadd.f32 %v2589_v44, %v2392_v2  ;;  %v3317_v41 = vand.u32 4294901760, %v3316_v60 }
 0x302   : > { %2972 = vmatmul.f32.gmra.mxu2 %v8815_v32  ;;  %v2594_v9 = vpop.f32.mrf.mxu0  ;;  %4460 = vmatpush.msra.mxu1 %v7161_v18  ;;  %v3308_v18 = vsub.f32 %v7367_v23, %v8455_v31 }
 0x303   : > { %v7383_v15 = vadd.f32 %v2804_v0, %v2590_v14  ;;  %3133 = vmatmul.f32.vlgmr.msrb.gmra.mxu3 %v6474_v25  ;;  %2899 = vmatmul.f32.gmra.mxu1 %v2222_v43  ;;  %v463_v25 = vmul.f32 %v364_v10, %v265_v62 }
 0x304   : > { %4462 = vmatpush.msra.mxu1 %v7209_v8  ;;  %4299 = vmatpush.msra.mxu0 %v3654_v33  ;;  %v3309_v27 = vand.u32 4294901760, %v3308_v18 }
 0x305   : > { %v2114_v40 = vpop.f32.mrf.mxu2  ;;  %3302 = vmatmul.f32.vlgmr.msrb.gmra.mxu0 %v3301_v24  ;;  %v7400_v6 = vand.u32 4294901760, %v463_v25  ;;  %v8820_v24 = vld [vmem:[#allocation21_spill] sm:$0xff] }
 0x306   : > { %v2115_v49 = vadd.f32 %v2114_v40, %v8816_v34  ;;  %v2395_v43 = vpop.f32.mrf.mxu3  ;;  %4464 = vmatpush.msra.mxu1 %v7257_v51 }
 0x307   : > { %v2396_v8 = vadd.f32 %v2395_v43, %v2107_v21  ;;  %v7413_v53 = vsub.f32 %v463_v25, %v7400_v6  ;;  %v271_v21 = vld [vmem:[%s5287_s29 + $0x88] sm:$0xff]  ;;  %v8451_v25 = vand.u32 4294901760, %v7430_v47 }
 0x308   : > { %v2810_v37 = vpop.f32.mrf.mxu1  ;;  %v469_v14 = vmul.f32 %v370_v38, %v271_v21 }
 0x309   : > { %v2595_v33 = vadd.f32 %v2594_v9, %v2396_v8  ;;  %v8452_v59 = vand.u32 4294901760, %v7413_v53  ;;  %v274_v8 = vld [vmem:[%s5287_s29 + $0xa0] sm:$0xff] }
 0x30a   : > { %2976 = vmatmul.f32.gmra.mxu2 %v8817_v29  ;;  %v2599_v46 = vpop.f32.mrf.mxu0  ;;  %v7434_v34 = vand.u32 4294901760, %v469_v14 }
 0x30b   : > { %v7405_v11 = vadd.f32 %v2810_v37, %v2595_v33  ;;  %3137 = vmatmul.f32.gmra.mxu3 %v8815_v32  ;;  %3659 = vmatmul.f32.vlgmr.msrb.gmra.mxu1 %v7323_v26  ;;  %v3324_v0 = vsub.f32 %v7413_v53, %v8452_v59  ;;  %v373_v37 = vld [vmem:[%s5294_s6 + $0xa0] sm:$0xff]  ;;  %v289_v59 = vld [vmem:[%s5287_s29 + $0x118] sm:$0xff] }
 0x30c   : > { %v472_v22 = vmul.f32 %v373_v37, %v274_v8  ;;  %v8825_v8 = vld [vmem:[#allocation22_spill] sm:$0xff] }
 0x30d   : > { %v2122_v51 = vpop.f32.mrf.mxu2  ;;  %3310 = vmatmul.f32.gmra.mxu0 %v3309_v27  ;;  %v3325_v18 = vand.u32 4294901760, %v3324_v0 }
 0x30e   : > { %v2123_v55 = vadd.f32 %v2122_v51, %v8818_v54  ;;  %v2399_v16 = vpop.f32.mrf.mxu3 }
 0x30f   : > { %v2400_v20 = vadd.f32 %v2399_v16, %v2115_v49  ;;  %v8821_v49 = vld [vmem:[#allocation15_spill] sm:$0xff] }
 0x310   : > { %v2816_v44 = vpop.f32.mrf.mxu1 }
 0x311   : > { %v2600_v45 = vadd.f32 %v2599_v46, %v2400_v20  ;;  %v7447_v46 = vsub.f32 %v469_v14, %v7434_v34 }
 0x312   : > { %2980 = vmatmul.f32.gmra.mxu2 %v8819_v19  ;;  %v2604_v56 = vpop.f32.mrf.mxu0 }
 0x313   : > { %v7422_v13 = vadd.f32 %v2816_v44, %v2600_v45  ;;  %3141 = vmatmul.f32.gmra.mxu3 %v8817_v29  ;;  %3663 = vmatmul.f32.gmra.mxu1 %v7348_v3  ;;  %v3332_v29 = vsub.f32 %v7430_v47, %v8451_v25  ;;  %v8450_v20 = vand.u32 4294901760, %v7447_v46  ;;  %v7451_v44 = vand.u32 4294901760, %v472_v22  ;;  %v8823_v45 = vld [vmem:[#allocation20_spill] sm:$0xff] }
 0x315   : > { %v2130_v2 = vpop.f32.mrf.mxu2  ;;  %3318 = vmatmul.f32.gmra.mxu0 %v3317_v41  ;;  %v3333_v16 = vand.u32 4294901760, %v3332_v29  ;;  %v7464_v0 = vsub.f32 %v472_v22, %v7451_v44  ;;  %v379_v29 = vld [vmem:[%s5294_s6 + $0xd0] sm:$0xff] }
 0x316   : > { %v2131_v32 = vadd.f32 %v2130_v2, %v8820_v24  ;;  %v2403_v9 = vpop.f32.mrf.mxu3  ;;  %v3340_v2 = vsub.f32 %v7447_v46, %v8450_v20  ;;  %v8824_v24 = vld [vmem:[#allocation23_spill] sm:$0xff] }
 0x317   : > { %v2404_v62 = vadd.f32 %v2403_v9, %v2123_v55 }
 0x318   : > { %v2822_v10 = vpop.f32.mrf.mxu1 }
 0x319   : > { %v2605_v40 = vadd.f32 %v2604_v56, %v2404_v62  ;;  %v376_v56 = vld [vmem:[%s5294_s6 + $0xb8] sm:$0xff] }
 0x31a   : > { %2984 = vmatmul.f32.gmra.mxu2 %v8821_v49  ;;  %v2609_v43 = vpop.f32.mrf.mxu0 }
 0x31b   : > { %v7439_v33 = vadd.f32 %v2822_v10, %v2605_v40  ;;  %3145 = vmatmul.f32.gmra.mxu3 %v8819_v19  ;;  %3667 = vmatmul.f32.gmra.mxu1 %v7377_v7  ;;  %v277_v19 = vld [vmem:[%s5287_s29 + $0xb8] sm:$0xff] }
 0x31c   : > { %v475_v14 = vmul.f32 %v376_v56, %v277_v19 }
 0x31d   : > { %v2138_v27 = vpop.f32.mrf.mxu2  ;;  %3326 = vmatmul.f32.gmra.mxu0 %v3325_v18  ;;  %v3341_v18 = vand.u32 4294901760, %v3340_v2 }
 0x31e   : > { %v2139_v51 = vadd.f32 %v2138_v27, %v8822_v39  ;;  %v2407_v60 = vpop.f32.mrf.mxu3  ;;  %v280_v27 = vld [vmem:[%s5287_s29 + $0xd0] sm:$0xff] }
 0x31f   : > { %v2408_v12 = vadd.f32 %v2407_v60, %v2131_v32 }
 0x320   : > { %v2828_v54 = vpop.f32.mrf.mxu1 }
 0x321   : > { %v2610_v55 = vadd.f32 %v2609_v43, %v2408_v12  ;;  %v7468_v43 = vand.u32 4294901760, %v475_v14  ;;  %v478_v12 = vmul.f32 %v379_v29, %v280_v27  ;;  %v8829_v27 = vld [vmem:[#allocation35_spill] sm:$0xff] }
 0x322   : > { %2988 = vmatmul.f32.gmra.mxu2 %v8823_v45  ;;  %v2614_v41 = vpop.f32.mrf.mxu0 }
 0x323   : > { %v7456_v21 = vadd.f32 %v2828_v54, %v2610_v55  ;;  %3149 = vmatmul.f32.gmra.mxu3 %v8821_v49  ;;  %3671 = vmatmul.f32.gmra.mxu1 %v7400_v6  ;;  %v8448_v49 = vand.u32 4294901760, %v7464_v0  ;;  %v7481_v60 = vsub.f32 %v475_v14, %v7468_v43  ;;  %v8826_v54 = vld [vmem:[#allocation34_spill] sm:$0xff]  ;;  %v7485_v2 = vand.u32 4294901760, %v478_v12 }
 0x325   : > { %v2146_v38 = vpop.f32.mrf.mxu2  ;;  %3334 = vmatmul.f32.gmra.mxu0 %v3333_v16  ;;  %8827 = vst [vmem:[#allocation16_spill] sm:$0xff] %v7485_v2 }
 0x326   : > { %v2147_v32 = vadd.f32 %v2146_v38, %v8824_v24  ;;  %v2411_v9 = vpop.f32.mrf.mxu3  ;;  %v8449_v38 = vand.u32 4294901760, %v7481_v60  ;;  %v8828_v24 = vld [vmem:[#allocation24_spill] sm:$0xff] }
 0x327   : > { %v2412_v62 = vadd.f32 %v2411_v9, %v2139_v51  ;;  %v3348_v51 = vsub.f32 %v7464_v0, %v8448_v49  ;;  %v286_v49 = vld [vmem:[%s5287_s29 + $0x100] sm:$0xff] }
 0x328   : > { %v2834_v10 = vpop.f32.mrf.mxu1 }
 0x329   : > { %v2615_v40 = vadd.f32 %v2614_v41, %v2412_v62  ;;  %v3349_v56 = vand.u32 4294901760, %v3348_v51  ;;  %v283_v62 = vld [vmem:[%s5287_s29 + $0xe8] sm:$0xff] }
 0x32a   : > { %2992 = vmatmul.f32.gmra.mxu2 %v8825_v8  ;;  %v2619_v37 = vpop.f32.mrf.mxu0 }
 0x32b   : > { %v7473_v39 = vadd.f32 %v2834_v10, %v2615_v40  ;;  %3153 = vmatmul.f32.gmra.mxu3 %v8823_v45  ;;  %3675 = vmatmul.f32.gmra.mxu1 %v7417_v28  ;;  %v382_v10 = vld [vmem:[%s5294_s6 + $0xe8] sm:$0xff] }
 0x32d   : > { %v2154_v22 = vpop.f32.mrf.mxu2  ;;  %3342 = vmatmul.f32.gmra.mxu0 %v3341_v18  ;;  %v7498_v18 = vsub.f32 %v478_v12, %v7485_v2 }
 0x32e   : > { %v2155_v55 = vadd.f32 %v2154_v22, %v8826_v54  ;;  %v2415_v16 = vpop.f32.mrf.mxu3 }
 0x32f   : > { %v2416_v41 = vadd.f32 %v2415_v16, %v2147_v32  ;;  %v3356_v32 = vsub.f32 %v7481_v60, %v8449_v38  ;;  %v385_v38 = vld [vmem:[%s5294_s6 + $0x100] sm:$0xff] }
 0x330   : > { %v2840_v19 = vpop.f32.mrf.mxu1 }
 0x331   : > { %v2620_v45 = vadd.f32 %v2619_v37, %v2416_v41  ;;  %v481_v37 = vmul.f32 %v382_v10, %v283_v62  ;;  %v3357_v16 = vand.u32 4294901760, %v3356_v32  ;;  %v8453_v41 = vand.u32 4294901760, %v7498_v18  ;;  %v8833_v10 = vld [vmem:[#allocation39_spill] sm:$0xff] }
 0x332   : > { %2996 = vmatmul.f32.gmra.mxu2 %v8828_v24  ;;  %v2624_v9 = vpop.f32.mrf.mxu0  ;;  %v484_v62 = vmul.f32 %v385_v38, %v286_v49 }
 0x333   : > { %v7490_v40 = vadd.f32 %v2840_v19, %v2620_v45  ;;  %3157 = vmatmul.f32.gmra.mxu3 %v8825_v8  ;;  %3679 = vmatmul.f32.gmra.mxu1 %v7434_v34  ;;  %v7502_v19 = vand.u32 4294901760, %v481_v37  ;;  %v8831_v45 = vld [vmem:[#allocation36_spill] sm:$0xff] }
 0x335   : > { %v2162_v14 = vpop.f32.mrf.mxu2  ;;  %3350 = vmatmul.f32.gmra.mxu0 %v3349_v56  ;;  %8830 = vst [vmem:[#allocation17_spill] sm:$0xff] %v7502_v19 }
 0x336   : > { %v2163_v29 = vadd.f32 %v2162_v14, %v8829_v27  ;;  %v2419_v22 = vpop.f32.mrf.mxu3 }
 0x337   : > { %v2420_v51 = vadd.f32 %v2419_v22, %v2155_v55  ;;  %v3364_v55 = vsub.f32 %v7498_v18, %v8453_v41  ;;  %v388_v41 = vld [vmem:[%s5294_s6 + $0x118] sm:$0xff] }
 0x338   : > { %v2846_v54 = vpop.f32.mrf.mxu1 }
 0x339   : > { %v2625_v8 = vadd.f32 %v2624_v9, %v2420_v51  ;;  %v7515_v9 = vsub.f32 %v481_v37, %v7502_v19  ;;  %v3365_v51 = vand.u32 4294901760, %v3364_v55 }
 0x33a   : > { %3000 = vmatmul.f32.gmra.mxu2 %v8831_v45  ;;  %v2629_v56 = vpop.f32.mrf.mxu0 }
 0x33b   : > { %v7507_v20 = vadd.f32 %v2846_v54, %v2625_v8  ;;  %3161 = vmatmul.f32.gmra.mxu3 %v8828_v24  ;;  %3683 = vmatmul.f32.gmra.mxu1 %v7451_v44  ;;  %8832 = vst [vmem:[#allocation14_spill] sm:$0xff] %v7515_v9  ;;  %v8457_v54 = vand.u32 4294901760, %v7515_v9  ;;  %v7519_v8 = vand.u32 4294901760, %v484_v62 }
 0x33d   : > { %v2170_v12 = vpop.f32.mrf.mxu2  ;;  %3358 = vmatmul.f32.gmra.mxu0 %v3357_v16  ;;  %8834 = vst [vmem:[#allocation19_spill] sm:$0xff] %v7519_v8  ;;  %v8835_v16 = vld [vmem:[#allocation40_spill] sm:$0xff]  ;;  %v3372_v38 = vsub.f32 %v7515_v9, %v8457_v54  ;;  %v7532_v37 = vsub.f32 %v484_v62, %v7519_v8 }
 0x33e   : > { %v2171_v14 = vadd.f32 %v2170_v12, %v8833_v10  ;;  %v2423_v32 = vpop.f32.mrf.mxu3  ;;  %v391_v54 = vld [vmem:[%s5294_s6 + $0x130] sm:$0xff] }
 0x33f   : > { %v2424_v27 = vadd.f32 %v2423_v32, %v2163_v29  ;;  %8836 = vst [vmem:[#allocation18_spill] sm:$0xff] %v7532_v37  ;;  %v487_v29 = vmul.f32 %v388_v41, %v289_v59  ;;  %v490_v62 = vmul.f32 %v391_v54, %v292_v1 }
 0x340   : > { %v2852_v22 = vpop.f32.mrf.mxu1 }
 0x341   : > { %v2630_v24 = vadd.f32 %v2629_v56, %v2424_v27  ;;  %v8837_v56 = vld [vmem:[#allocation25_spill] sm:$0xff]  ;;  %v3373_v27 = vand.u32 4294901760, %v3372_v38 }
 0x342   : > { %3004 = vmatmul.f32.gmra.mxu2 %v8835_v16  ;;  %v2634_v25 = vpop.f32.mrf.mxu0 }
 0x343   : > { %v7524_v63 = vadd.f32 %v2852_v22, %v2630_v24  ;;  %3165 = vmatmul.f32.gmra.mxu3 %v8831_v45  ;;  %3687 = vmatmul.f32.gmra.mxu1 %v7468_v43  ;;  %v8462_v22 = vand.u32 4294901760, %v7532_v37  ;;  %v7536_v24 = vand.u32 4294901760, %v487_v29 }
 0x345   : > { %v2178_v49 = vpop.f32.mrf.mxu2  ;;  %3366 = vmatmul.f32.gmra.mxu0 %v3365_v51  ;;  %8838 = vst [vmem:[#allocation21_spill] sm:$0xff] %v7536_v24  ;;  %v8839_v51 = vld [vmem:[#allocation33_spill] sm:$0xff]  ;;  %v7549_v41 = vsub.f32 %v487_v29, %v7536_v24 }
 0x346   : > { %v2179_v12 = vadd.f32 %v2178_v49, %v8837_v56  ;;  %v2427_v55 = vpop.f32.mrf.mxu3 }
 0x347   : > { %v2428_v10 = vadd.f32 %v2427_v55, %v2171_v14  ;;  %8841 = vst [vmem:[#allocation26_spill] sm:$0xff] %v7549_v41  ;;  %v8842_v14 = vld [vmem:[#allocation56_spill] sm:$0xff] }
 0x348   : > { %v2858_v32 = vpop.f32.mrf.mxu1 }
 0x349   : > { %v2635_v45 = vadd.f32 %v2634_v25, %v2428_v10  ;;  %v3380_v25 = vsub.f32 %v7532_v37, %v8462_v22  ;;  %v394_v22 = vld [vmem:[%s5294_s6 + $0x148] sm:$0xff] }
 0x34a   : > { %3008 = vmatmul.f32.gmra.mxu2 %v8839_v51  ;;  %v2639_v31 = vpop.f32.mrf.mxu0 }
 0x34b   : > { %v7541_v9 = vadd.f32 %v2858_v32, %v2635_v45  ;;  %3169 = vmatmul.f32.gmra.mxu3 %v8835_v16  ;;  %3691 = vmatmul.f32.gmra.mxu1 %v7485_v2  ;;  %v3381_v10 = vand.u32 4294901760, %v3380_v25  ;;  %v8467_v32 = vand.u32 4294901760, %v7549_v41  ;;  %v7553_v45 = vand.u32 4294901760, %v490_v62 }
 0x34d   : > { %8840 = vst [vmem:[#allocation15_spill] sm:$0xff] %v7541_v9  ;;  %v2186_v59 = vpop.f32.mrf.mxu2  ;;  %3374 = vmatmul.f32.gmra.mxu0 %v3373_v27  ;;  %v8844_v27 = vld [vmem:[#allocation48_spill] sm:$0xff]  ;;  %v7566_v54 = vsub.f32 %v490_v62, %v7553_v45 }
 0x34e   : > { %v2187_v49 = vadd.f32 %v2186_v59, %v8842_v14  ;;  %v2431_v38 = vpop.f32.mrf.mxu3  ;;  %8843 = vst [vmem:[#allocation20_spill] sm:$0xff] %v7553_v45  ;;  %v295_v9 = vld [vmem:[%s5287_s29 + $0x148] sm:$0xff] }
 0x34f   : > { %v2432_v56 = vadd.f32 %v2431_v38, %v2179_v12  ;;  %8846 = vst [vmem:[#allocation22_spill] sm:$0xff] %v7566_v54  ;;  %v493_v29 = vmul.f32 %v394_v22, %v295_v9  ;;  %v8847_v12 = vld [vmem:[#allocation30_spill] sm:$0xff] }
 0x350   : > { %v2864_v55 = vpop.f32.mrf.mxu1 }
 0x351   : > { %v2640_v16 = vadd.f32 %v2639_v31, %v2432_v56  ;;  %v3388_v31 = vsub.f32 %v7549_v41, %v8467_v32  ;;  %v397_v32 = vld [vmem:[%s5294_s6 + $0x160] sm:$0xff] }
 0x352   : > { %3012 = vmatmul.f32.gmra.mxu2 %v8844_v27  ;;  %v2644_v2 = vpop.f32.mrf.mxu0 }
 0x353   : > { %v7558_v37 = vadd.f32 %v2864_v55, %v2640_v16  ;;  %3173 = vmatmul.f32.gmra.mxu3 %v8839_v51  ;;  %3695 = vmatmul.f32.gmra.mxu1 %v7502_v19  ;;  %v3389_v56 = vand.u32 4294901760, %v3388_v31  ;;  %v8472_v55 = vand.u32 4294901760, %v7566_v54  ;;  %v7570_v16 = vand.u32 4294901760, %v493_v29 }
 0x355   : > { %8845 = vst [vmem:[#allocation23_spill] sm:$0xff] %v7558_v37  ;;  %v2194_v1 = vpop.f32.mrf.mxu2  ;;  %3382 = vmatmul.f32.gmra.mxu0 %v3381_v10  ;;  %v8849_v10 = vld [vmem:[#allocation28_spill] sm:$0xff]  ;;  %v7583_v22 = vsub.f32 %v493_v29, %v7570_v16 }
 0x356   : > { %v2195_v59 = vadd.f32 %v2194_v1, %v8847_v12  ;;  %v2435_v25 = vpop.f32.mrf.mxu3  ;;  %8848 = vst [vmem:[#allocation34_spill] sm:$0xff] %v7570_v16  ;;  %v298_v37 = vld [vmem:[%s5287_s29 + $0x160] sm:$0xff] }
 0x357   : > { %v2436_v14 = vadd.f32 %v2435_v25, %v2187_v49  ;;  %8851 = vst [vmem:[#allocation35_spill] sm:$0xff] %v7583_v22  ;;  %v496_v62 = vmul.f32 %v397_v32, %v298_v37  ;;  %v8852_v49 = vld [vmem:[#allocation54_spill] sm:$0xff] }
 0x358   : > { %v2870_v38 = vpop.f32.mrf.mxu1 }
 0x359   : > { %v2645_v51 = vadd.f32 %v2644_v2, %v2436_v14  ;;  %v3396_v2 = vsub.f32 %v7566_v54, %v8472_v55  ;;  %v400_v55 = vld [vmem:[%s5294_s6 + $0x178] sm:$0xff] }
 0x35a   : > { %3016 = vmatmul.f32.gmra.mxu2 %v8849_v10  ;;  %v2649_v19 = vpop.f32.mrf.mxu0 }
 0x35b   : > { %v7575_v41 = vadd.f32 %v2870_v38, %v2645_v51  ;;  %3177 = vmatmul.f32.gmra.mxu3 %v8844_v27  ;;  %3699 = vmatmul.f32.gmra.mxu1 %v7519_v8  ;;  %v3397_v14 = vand.u32 4294901760, %v3396_v2  ;;  %v8477_v38 = vand.u32 4294901760, %v7583_v22  ;;  %v7587_v51 = vand.u32 4294901760, %v496_v62 }
 0x35d   : > { %8850 = vst [vmem:[#allocation24_spill] sm:$0xff] %v7575_v41  ;;  %v2202_v9 = vpop.f32.mrf.mxu2  ;;  %3390 = vmatmul.f32.gmra.mxu0 %v3389_v56  ;;  %v8854_v56 = vld [vmem:[#allocation52_spill] sm:$0xff]  ;;  %v301_v41 = vld [vmem:[%s5287_s29 + $0x178] sm:$0xff]  ;;  %v7600_v32 = vsub.f32 %v496_v62, %v7587_v51 }
 0x35e   : > { %v2203_v1 = vadd.f32 %v2202_v9, %v8852_v49  ;;  %v2439_v31 = vpop.f32.mrf.mxu3  ;;  %8853 = vst [vmem:[#allocation36_spill] sm:$0xff] %v7587_v51  ;;  %v499_v29 = vmul.f32 %v400_v55, %v301_v41 }
 0x35f   : > { %v2440_v12 = vadd.f32 %v2439_v31, %v2195_v59  ;;  %8856 = vst [vmem:[#allocation40_spill] sm:$0xff] %v7600_v32  ;;  %v8857_v59 = vld [vmem:[#allocation58_spill] sm:$0xff] }
 0x360   : > { %v2876_v25 = vpop.f32.mrf.mxu1 }
 0x361   : > { %v2650_v27 = vadd.f32 %v2649_v19, %v2440_v12  ;;  %v3404_v19 = vsub.f32 %v7583_v22, %v8477_v38  ;;  %v403_v38 = vld [vmem:[%s5294_s6 + $0x190] sm:$0xff] }
 0x362   : > { %3020 = vmatmul.f32.gmra.mxu2 %v8854_v56  ;;  %v2654_v8 = vpop.f32.mrf.mxu0 }
 0x363   : > { %v7592_v54 = vadd.f32 %v2876_v25, %v2650_v27  ;;  %3181 = vmatmul.f32.gmra.mxu3 %v8849_v10  ;;  %3703 = vmatmul.f32.gmra.mxu1 %v7536_v24  ;;  %v3405_v12 = vand.u32 4294901760, %v3404_v19  ;;  %v8482_v25 = vand.u32 4294901760, %v7600_v32  ;;  %v7604_v27 = vand.u32 4294901760, %v499_v29 }
 0x365   : > { %8855 = vst [vmem:[#allocation39_spill] sm:$0xff] %v7592_v54  ;;  %v2210_v37 = vpop.f32.mrf.mxu2  ;;  %3398 = vmatmul.f32.gmra.mxu0 %v3397_v14  ;;  %v8859_v14 = vld [vmem:[#allocation43_spill] sm:$0xff]  ;;  %v304_v54 = vld [vmem:[%s5287_s29 + $0x190] sm:$0xff]  ;;  %v7617_v55 = vsub.f32 %v499_v29, %v7604_v27 }
 0x366   : > { %v2211_v9 = vadd.f32 %v2210_v37, %v8857_v59  ;;  %v2443_v2 = vpop.f32.mrf.mxu3  ;;  %8858 = vst [vmem:[#allocation25_spill] sm:$0xff] %v7604_v27  ;;  %v502_v62 = vmul.f32 %v403_v38, %v304_v54 }
 0x367   : > { %v2444_v49 = vadd.f32 %v2443_v2, %v2203_v1  ;;  %8861 = vst [vmem:[#allocation56_spill] sm:$0xff] %v7617_v55  ;;  %v8862_v1 = vld [vmem:[#allocation32_spill] sm:$0xff] }
 0x368   : > { %v2882_v31 = vpop.f32.mrf.mxu1 }
 0x369   : > { %v2655_v10 = vadd.f32 %v2654_v8, %v2444_v49  ;;  %v3412_v8 = vsub.f32 %v7600_v32, %v8482_v25  ;;  %v406_v25 = vld [vmem:[%s5294_s6 + $0x1a8] sm:$0xff] }
 0x36a   : > { %3024 = vmatmul.f32.gmra.mxu2 %v8859_v14  ;;  %v2659_v24 = vpop.f32.mrf.mxu0 }
 0x36b   : > { %v7609_v22 = vadd.f32 %v2882_v31, %v2655_v10  ;;  %3185 = vmatmul.f32.gmra.mxu3 %v8854_v56  ;;  %3707 = vmatmul.f32.gmra.mxu1 %v7553_v45  ;;  %v3413_v49 = vand.u32 4294901760, %v3412_v8  ;;  %v8487_v31 = vand.u32 4294901760, %v7617_v55  ;;  %v7621_v10 = vand.u32 4294901760, %v502_v62 }
 0x36d   : > { %8860 = vst [vmem:[#allocation33_spill] sm:$0xff] %v7609_v22  ;;  %v2218_v41 = vpop.f32.mrf.mxu2  ;;  %3406 = vmatmul.f32.gmra.mxu0 %v3405_v12  ;;  %v8864_v12 = vld [vmem:[#allocation46_spill] sm:$0xff]  ;;  %v307_v22 = vld [vmem:[%s5287_s29 + $0x1a8] sm:$0xff]  ;;  %v7634_v38 = vsub.f32 %v502_v62, %v7621_v10 }
 0x36e   : > { %v2219_v37 = vadd.f32 %v2218_v41, %v8862_v1  ;;  %v2447_v19 = vpop.f32.mrf.mxu3  ;;  %8863 = vst [vmem:[#allocation48_spill] sm:$0xff] %v7621_v10  ;;  %v505_v29 = vmul.f32 %v406_v25, %v307_v22 }
 0x36f   : > { %v2448_v59 = vadd.f32 %v2447_v19, %v2211_v9  ;;  %8866 = vst [vmem:[#allocation28_spill] sm:$0xff] %v7634_v38  ;;  %v8867_v9 = vld [vmem:[#allocation65_spill] sm:$0xff] }
 0x370   : > { %v2888_v2 = vpop.f32.mrf.mxu1 }
 0x371   : > { %v2660_v56 = vadd.f32 %v2659_v24, %v2448_v59  ;;  %v3420_v24 = vsub.f32 %v7617_v55, %v8487_v31  ;;  %v409_v31 = vld [vmem:[%s5294_s6 + $0x1c0] sm:$0xff] }
 0x372   : > { %3028 = vmatmul.f32.gmra.mxu2 %v8864_v12  ;;  %v2664_v45 = vpop.f32.mrf.mxu0 }
 0x373   : > { %v7626_v32 = vadd.f32 %v2888_v2, %v2660_v56  ;;  %3189 = vmatmul.f32.gmra.mxu3 %v8859_v14  ;;  %3711 = vmatmul.f32.gmra.mxu1 %v7570_v16  ;;  %v3421_v59 = vand.u32 4294901760, %v3420_v24  ;;  %v8492_v2 = vand.u32 4294901760, %v7634_v38  ;;  %v7638_v56 = vand.u32 4294901760, %v505_v29 }
 0x375   : > { %8865 = vst [vmem:[#allocation30_spill] sm:$0xff] %v7626_v32  ;;  %v2226_v54 = vpop.f32.mrf.mxu2  ;;  %3414 = vmatmul.f32.gmra.mxu0 %v3413_v49  ;;  %v8869_v49 = vld [vmem:[#allocation50_spill] sm:$0xff]  ;;  %v310_v32 = vld [vmem:[%s5287_s29 + $0x1c0] sm:$0xff]  ;;  %v7651_v25 = vsub.f32 %v505_v29, %v7638_v56 }
 0x376   : > { %v2227_v41 = vadd.f32 %v2226_v54, %v8867_v9  ;;  %v2451_v8 = vpop.f32.mrf.mxu3  ;;  %8868 = vst [vmem:[#allocation54_spill] sm:$0xff] %v7638_v56  ;;  %v508_v62 = vmul.f32 %v409_v31, %v310_v32  ;;  %v8872_v54 = vld [vmem:[#allocation31_spill] sm:$0xff] }
 0x377   : > { %v2452_v1 = vadd.f32 %v2451_v8, %v2219_v37  ;;  %8871 = vst [vmem:[#allocation58_spill] sm:$0xff] %v7651_v25 }
 0x378   : > { %v2894_v19 = vpop.f32.mrf.mxu1 }
 0x379   : > { %v2665_v14 = vadd.f32 %v2664_v45, %v2452_v1  ;;  %v3428_v45 = vsub.f32 %v7634_v38, %v8492_v2  ;;  %v412_v2 = vld [vmem:[%s5294_s6 + $0x1d8] sm:$0xff] }
 0x37a   : > { %3032 = vmatmul.f32.gmra.mxu2 %v8869_v49  ;;  %v2669_v16 = vpop.f32.mrf.mxu0 }
 0x37b   : > { %v7643_v55 = vadd.f32 %v2894_v19, %v2665_v14  ;;  %3193 = vmatmul.f32.gmra.mxu3 %v8864_v12  ;;  %3715 = vmatmul.f32.gmra.mxu1 %v7587_v51  ;;  %v3429_v1 = vand.u32 4294901760, %v3428_v45  ;;  %v8497_v19 = vand.u32 4294901760, %v7651_v25  ;;  %v7655_v14 = vand.u32 4294901760, %v508_v62 }
 0x37d   : > { %8870 = vst [vmem:[#allocation52_spill] sm:$0xff] %v7643_v55  ;;  %v2969_v22 = vpop.f32.mrf.mxu2  ;;  %3422 = vmatmul.f32.gmra.mxu0 %v3421_v59  ;;  %v8874_v59 = vld [vmem:[#allocation27_spill] sm:$0xff]  ;;  %v7668_v31 = vsub.f32 %v508_v62, %v7655_v14 }
 0x37e   : > { %v2455_v37 = vpop.f32.mrf.mxu3  ;;  %v2970_v24 = vadd.f32 %v2969_v22, %v8872_v54  ;;  %8873 = vst [vmem:[#allocation43_spill] sm:$0xff] %v7655_v14  ;;  %v313_v55 = vld [vmem:[%s5287_s29 + $0x1d8] sm:$0xff] }
 0x37f   : > { %v2456_v9 = vadd.f32 %v2455_v37, %v2227_v41  ;;  %8876 = vst [vmem:[#allocation46_spill] sm:$0xff] %v7668_v31  ;;  %v511_v29 = vmul.f32 %v412_v2, %v313_v55  ;;  %v8877_v41 = vld [vmem:[#allocation38_spill] sm:$0xff] }
 0x380   : > { %v2900_v8 = vpop.f32.mrf.mxu1 }
 0x381   : > { %v2670_v12 = vadd.f32 %v2669_v16, %v2456_v9  ;;  %v3436_v16 = vsub.f32 %v7651_v25, %v8497_v19  ;;  %v415_v19 = vld [vmem:[%s5294_s6 + $0x1f0] sm:$0xff] }
 0x382   : > { %3036 = vmatmul.f32.gmra.mxu2 %v8874_v59  ;;  %v3303_v51 = vpop.f32.mrf.mxu0 }
 0x383   : > { %v7660_v38 = vadd.f32 %v2900_v8, %v2670_v12  ;;  %3197 = vmatmul.f32.gmra.mxu3 %v8869_v49  ;;  %3719 = vmatmul.f32.gmra.mxu1 %v7604_v27  ;;  %v3437_v9 = vand.u32 4294901760, %v3436_v16  ;;  %v8502_v8 = vand.u32 4294901760, %v7668_v31  ;;  %v7672_v12 = vand.u32 4294901760, %v511_v29 }
 0x385   : > { %8875 = vst [vmem:[#allocation32_spill] sm:$0xff] %v7660_v38  ;;  %v2973_v32 = vpop.f32.mrf.mxu2  ;;  %3430 = vmatmul.f32.gmra.mxu0 %v3429_v1  ;;  %v8879_v1 = vld [vmem:[#allocation62_spill] sm:$0xff]  ;;  %v7685_v2 = vsub.f32 %v511_v29, %v7672_v12 }
 0x386   : > { %v2974_v22 = vadd.f32 %v2973_v32, %v8877_v41  ;;  %v3134_v45 = vpop.f32.mrf.mxu3  ;;  %8878 = vst [vmem:[#allocation65_spill] sm:$0xff] %v7672_v12  ;;  %v316_v38 = vld [vmem:[%s5287_s29 + $0x1f0] sm:$0xff] }
 0x387   : > { %v3135_v37 = vadd.f32 %v3134_v45, %v2970_v24  ;;  %8881 = vst [vmem:[#allocation31_spill] sm:$0xff] %v7685_v2  ;;  %v514_v62 = vmul.f32 %v415_v19, %v316_v38  ;;  %v8882_v24 = vld [vmem:[#allocation42_spill] sm:$0xff] }
 0x388   : > { %v3660_v54 = vpop.f32.mrf.mxu1 }
 0x389   : > { %v3304_v49 = vadd.f32 %v3303_v51, %v3135_v37  ;;  %v3444_v51 = vsub.f32 %v7668_v31, %v8502_v8  ;;  %v418_v8 = vld [vmem:[%s5294_s6 + $0x208] sm:$0xff] }
 0x38a   : > { %3040 = vmatmul.f32.gmra.mxu2 %v8879_v1  ;;  %v3311_v27 = vpop.f32.mrf.mxu0 }
 0x38b   : > { %v7677_v25 = vadd.f32 %v3660_v54, %v3304_v49  ;;  %3201 = vmatmul.f32.gmra.mxu3 %v8874_v59  ;;  %3723 = vmatmul.f32.gmra.mxu1 %v7621_v10  ;;  %v3445_v37 = vand.u32 4294901760, %v3444_v51  ;;  %v8507_v54 = vand.u32 4294901760, %v7685_v2  ;;  %v7689_v49 = vand.u32 4294901760, %v514_v62 }
 0x38d   : > { %8880 = vst [vmem:[#allocation50_spill] sm:$0xff] %v7677_v25  ;;  %v2977_v55 = vpop.f32.mrf.mxu2  ;;  %3438 = vmatmul.f32.gmra.mxu0 %v3437_v9  ;;  %v8884_v9 = vld [vmem:[#allocation63_spill] sm:$0xff]  ;;  %v319_v25 = vld [vmem:[%s5287_s29 + $0x208] sm:$0xff]  ;;  %v7702_v19 = vsub.f32 %v514_v62, %v7689_v49 }
 0x38e   : > { %v2978_v32 = vadd.f32 %v2977_v55, %v8882_v24  ;;  %v3138_v16 = vpop.f32.mrf.mxu3  ;;  %8883 = vst [vmem:[#allocation27_spill] sm:$0xff] %v7689_v49  ;;  %v517_v29 = vmul.f32 %v418_v8, %v319_v25 }
 0x38f   : > { %v3139_v41 = vadd.f32 %v3138_v16, %v2974_v22  ;;  %8886 = vst [vmem:[#allocation62_spill] sm:$0xff] %v7702_v19  ;;  %v8887_v22 = vld [vmem:[#allocation45_spill] sm:$0xff] }
 0x390   : > { %v3664_v45 = vpop.f32.mrf.mxu1 }
 0x391   : > { %v3312_v59 = vadd.f32 %v3311_v27, %v3139_v41  ;;  %v3452_v27 = vsub.f32 %v7685_v2, %v8507_v54  ;;  %v421_v54 = vld [vmem:[%s5294_s6 + $0x220] sm:$0xff] }
 0x392   : > { %3044 = vmatmul.f32.gmra.mxu2 %v8884_v9  ;;  %v3319_v10 = vpop.f32.mrf.mxu0 }
 0x393   : > { %v7694_v31 = vadd.f32 %v3664_v45, %v3312_v59  ;;  %3205 = vmatmul.f32.gmra.mxu3 %v8879_v1  ;;  %3727 = vmatmul.f32.gmra.mxu1 %v7638_v56  ;;  %v3453_v41 = vand.u32 4294901760, %v3452_v27  ;;  %v8512_v45 = vand.u32 4294901760, %v7702_v19  ;;  %v7706_v59 = vand.u32 4294901760, %v517_v29 }
 0x395   : > { %8885 = vst [vmem:[#allocation38_spill] sm:$0xff] %v7694_v31  ;;  %v2981_v38 = vpop.f32.mrf.mxu2  ;;  %3446 = vmatmul.f32.gmra.mxu0 %v3445_v37  ;;  %v8889_v37 = vld [vmem:[#allocation29_spill] sm:$0xff]  ;;  %v322_v31 = vld [vmem:[%s5287_s29 + $0x220] sm:$0xff]  ;;  %v7719_v8 = vsub.f32 %v517_v29, %v7706_v59 }
 0x396   : > { %v2982_v55 = vadd.f32 %v2981_v38, %v8887_v22  ;;  %v3142_v51 = vpop.f32.mrf.mxu3  ;;  %8888 = vst [vmem:[#allocation42_spill] sm:$0xff] %v7706_v59  ;;  %v520_v62 = vmul.f32 %v421_v54, %v322_v31 }
 0x397   : > { %v3143_v24 = vadd.f32 %v3142_v51, %v2978_v32  ;;  %8891 = vst [vmem:[#allocation45_spill] sm:$0xff] %v7719_v8  ;;  %v8892_v32 = vld [vmem:[#allocation49_spill] sm:$0xff] }
 0x398   : > { %v3668_v16 = vpop.f32.mrf.mxu1 }
 0x399   : > { %v3320_v1 = vadd.f32 %v3319_v10, %v3143_v24  ;;  %v3460_v10 = vsub.f32 %v7702_v19, %v8512_v45  ;;  %v424_v45 = vld [vmem:[%s5294_s6 + $0x238] sm:$0xff] }
 0x39a   : > { %3048 = vmatmul.f32.gmra.mxu2 %v8889_v37  ;;  %v3327_v56 = vpop.f32.mrf.mxu0 }
 0x39b   : > { %v7711_v2 = vadd.f32 %v3668_v16, %v3320_v1  ;;  %3209 = vmatmul.f32.gmra.mxu3 %v8884_v9  ;;  %3731 = vmatmul.f32.gmra.mxu1 %v7655_v14  ;;  %v3461_v24 = vand.u32 4294901760, %v3460_v10  ;;  %v8517_v16 = vand.u32 4294901760, %v7719_v8  ;;  %v7723_v1 = vand.u32 4294901760, %v520_v62 }
 0x39d   : > { %8890 = vst [vmem:[#allocation63_spill] sm:$0xff] %v7711_v2  ;;  %v2985_v25 = vpop.f32.mrf.mxu2  ;;  %3454 = vmatmul.f32.gmra.mxu0 %v3453_v41  ;;  %v8894_v41 = vld [vmem:[#allocation37_spill] sm:$0xff]  ;;  %v325_v2 = vld [vmem:[%s5287_s29 + $0x238] sm:$0xff]  ;;  %v7736_v54 = vsub.f32 %v520_v62, %v7723_v1 }
 0x39e   : > { %v2986_v38 = vadd.f32 %v2985_v25, %v8892_v32  ;;  %v3146_v27 = vpop.f32.mrf.mxu3  ;;  %8893 = vst [vmem:[#allocation29_spill] sm:$0xff] %v7723_v1  ;;  %v523_v29 = vmul.f32 %v424_v45, %v325_v2 }
 0x39f   : > { %v3147_v22 = vadd.f32 %v3146_v27, %v2982_v55  ;;  %8896 = vst [vmem:[#allocation37_spill] sm:$0xff] %v7736_v54  ;;  %v8897_v55 = vld [vmem:[#allocation53_spill] sm:$0xff] }
 0x3a0   : > { %v3672_v51 = vpop.f32.mrf.mxu1 }
 0x3a1   : > { %v3328_v9 = vadd.f32 %v3327_v56, %v3147_v22  ;;  %v3468_v56 = vsub.f32 %v7719_v8, %v8517_v16  ;;  %v427_v16 = vld [vmem:[%s5294_s6 + $0x250] sm:$0xff] }
 0x3a2   : > { %3052 = vmatmul.f32.gmra.mxu2 %v8894_v41  ;;  %v3335_v14 = vpop.f32.mrf.mxu0 }
 0x3a3   : > { %v7728_v19 = vadd.f32 %v3672_v51, %v3328_v9  ;;  %3213 = vmatmul.f32.gmra.mxu3 %v8889_v37  ;;  %3735 = vmatmul.f32.gmra.mxu1 %v7672_v12  ;;  %v3469_v22 = vand.u32 4294901760, %v3468_v56  ;;  %v8522_v51 = vand.u32 4294901760, %v7736_v54  ;;  %v7740_v9 = vand.u32 4294901760, %v523_v29 }
 0x3a5   : > { %8895 = vst [vmem:[#allocation49_spill] sm:$0xff] %v7728_v19  ;;  %v2989_v31 = vpop.f32.mrf.mxu2  ;;  %3462 = vmatmul.f32.gmra.mxu0 %v3461_v24  ;;  %v8899_v24 = vld [vmem:[#allocation41_spill] sm:$0xff]  ;;  %v7753_v45 = vsub.f32 %v523_v29, %v7740_v9  ;;  %v8905_v29 = vld [vmem:[#allocation59_spill] sm:$0xff] }
 0x3a6   : > { %v2990_v25 = vadd.f32 %v2989_v31, %v8897_v55  ;;  %v3150_v10 = vpop.f32.mrf.mxu3  ;;  %8898 = vst [vmem:[#allocation53_spill] sm:$0xff] %v7740_v9  ;;  %v328_v19 = vld [vmem:[%s5287_s29 + $0x250] sm:$0xff] }
 0x3a7   : > { %v3151_v32 = vadd.f32 %v3150_v10, %v2986_v38  ;;  %8900 = vst [vmem:[#allocation41_spill] sm:$0xff] %v7753_v45  ;;  %v526_v62 = vmul.f32 %v427_v16, %v328_v19 }
 0x3a8   : > { %v3676_v27 = vpop.f32.mrf.mxu1 }
 0x3a9   : > { %v3336_v37 = vadd.f32 %v3335_v14, %v3151_v32  ;;  %v3476_v14 = vsub.f32 %v7736_v54, %v8522_v51  ;;  %v8527_v32 = vand.u32 4294901760, %v7753_v45  ;;  %v430_v51 = vld [vmem:[%s5294_s6 + $0x268] sm:$0xff] }
 0x3aa   : > { %3056 = vmatmul.f32.gmra.mxu2 %v8899_v24  ;;  %v3343_v12 = vpop.f32.mrf.mxu0 }
 0x3ab   : > { %v7745_v8 = vadd.f32 %v3676_v27, %v3336_v37  ;;  %3217 = vmatmul.f32.gmra.mxu3 %v8894_v41  ;;  %3739 = vmatmul.f32.gmra.mxu1 %v7689_v49  ;;  %v3477_v10 = vand.u32 4294901760, %v3476_v14  ;;  %v7757_v27 = vand.u32 4294901760, %v526_v62  ;;  %v8902_v37 = vld [vmem:[#allocation44_spill] sm:$0xff] }
 0x3ac   : > { %v331_v49 = vld [vmem:[%s5287_s29 + $0x268] sm:$0xff] }
 0x3ad   : > { %v2993_v2 = vpop.f32.mrf.mxu2  ;;  %3470 = vmatmul.f32.gmra.mxu0 %v3469_v22  ;;  %8901 = vst [vmem:[#allocation66_spill] sm:$0xff] %v7757_v27  ;;  %v7770_v19 = vsub.f32 %v526_v62, %v7757_v27  ;;  %v529_v16 = vmul.f32 %v430_v51, %v331_v49 }
 0x3ae   : > { %v2994_v38 = vadd.f32 %v2993_v2, %v7138_v48  ;;  %v3154_v31 = vpop.f32.mrf.mxu3 }
 0x3af   : > { %v3155_v56 = vadd.f32 %v3154_v31, %v2990_v25  ;;  %8904 = vst [vmem:[#allocation67_spill] sm:$0xff] %v7770_v19 }
 0x3b0   : > { %v3680_v55 = vpop.f32.mrf.mxu1 }
 0x3b1   : > { %v3344_v41 = vadd.f32 %v3343_v12, %v3155_v56  ;;  %v3484_v12 = vsub.f32 %v7753_v45, %v8527_v32  ;;  %v433_v32 = vld [vmem:[%s5294_s6 + $0x280] sm:$0xff] }
 0x3b2   : > { %3060 = vmatmul.f32.gmra.mxu2 %v8902_v37  ;;  %v3351_v22 = vpop.f32.mrf.mxu0 }
 0x3b3   : > { %v7762_v54 = vadd.f32 %v3680_v55, %v3344_v41  ;;  %3221 = vmatmul.f32.gmra.mxu3 %v8899_v24  ;;  %3743 = vmatmul.f32.gmra.mxu1 %v7706_v59  ;;  %v3485_v56 = vand.u32 4294901760, %v3484_v12  ;;  %v8532_v55 = vand.u32 4294901760, %v7770_v19  ;;  %v7774_v41 = vand.u32 4294901760, %v529_v16 }
 0x3b5   : > { %8903 = vst [vmem:[#allocation44_spill] sm:$0xff] %v7762_v54  ;;  %v2997_v48 = vpop.f32.mrf.mxu2  ;;  %3478 = vmatmul.f32.gmra.mxu0 %v3477_v10  ;;  %v8906_v10 = vld [vmem:[#allocation47_spill] sm:$0xff]  ;;  %v3492_v51 = vsub.f32 %v7770_v19, %v8532_v55  ;;  %v7787_v62 = vsub.f32 %v529_v16, %v7774_v41  ;;  %v436_v55 = vld [vmem:[%s5294_s6 + $0x298] sm:$0xff] }
 0x3b6   : > { %v2998_v25 = vadd.f32 %v2997_v48, %v8905_v29  ;;  %v3158_v2 = vpop.f32.mrf.mxu3  ;;  %v334_v54 = vld [vmem:[%s5287_s29 + $0x280] sm:$0xff] }
 0x3b7   : > { %v3159_v14 = vadd.f32 %v3158_v2, %v2994_v38  ;;  %8908 = vst [vmem:[#allocation47_spill] sm:$0xff] %v7787_v62  ;;  %v532_v38 = vmul.f32 %v433_v32, %v334_v54 }
 0x3b8   : > { %v3684_v31 = vpop.f32.mrf.mxu1 }
 0x3b9   : > { %v3352_v24 = vadd.f32 %v3351_v22, %v3159_v14  ;;  %v8909_v22 = vld [vmem:[#allocation60_spill] sm:$0xff]  ;;  %v3493_v14 = vand.u32 4294901760, %v3492_v51 }
 0x3ba   : > { %3064 = vmatmul.f32.gmra.mxu2 %v8906_v10  ;;  %v3359_v59 = vpop.f32.mrf.mxu0 }
 0x3bb   : > { %v7779_v45 = vadd.f32 %v3684_v31, %v3352_v24  ;;  %3225 = vmatmul.f32.gmra.mxu3 %v8902_v37  ;;  %3747 = vmatmul.f32.gmra.mxu1 %v7723_v1  ;;  %v8537_v31 = vand.u32 4294901760, %v7787_v62  ;;  %v7791_v24 = vand.u32 4294901760, %v532_v38 }
 0x3bd   : > { %8907 = vst [vmem:[#allocation59_spill] sm:$0xff] %v7779_v45  ;;  %v3001_v49 = vpop.f32.mrf.mxu2  ;;  %3486 = vmatmul.f32.gmra.mxu0 %v3485_v56  ;;  %v8910_v56 = vld [vmem:[#allocation51_spill] sm:$0xff]  ;;  %v7804_v32 = vsub.f32 %v532_v38, %v7791_v24 }
 0x3be   : > { %v3002_v48 = vadd.f32 %v3001_v49, %v8909_v22  ;;  %v3162_v12 = vpop.f32.mrf.mxu3  ;;  %v337_v45 = vld [vmem:[%s5287_s29 + $0x298] sm:$0xff] }
 0x3bf   : > { %v3163_v29 = vadd.f32 %v3162_v12, %v2998_v25  ;;  %8912 = vst [vmem:[#allocation51_spill] sm:$0xff] %v7804_v32  ;;  %v535_v16 = vmul.f32 %v436_v55, %v337_v45  ;;  %v8913_v25 = vld [vmem:[#allocation61_spill] sm:$0xff] }
 0x3c0   : > { %v3688_v2 = vpop.f32.mrf.mxu1 }
 0x3c1   : > { %v3360_v37 = vadd.f32 %v3359_v59, %v3163_v29  ;;  %v3500_v59 = vsub.f32 %v7787_v62, %v8537_v31  ;;  %v439_v31 = vld [vmem:[%s5294_s6 + $0x2b0] sm:$0xff] }
 0x3c2   : > { %3068 = vmatmul.f32.gmra.mxu2 %v8910_v56  ;;  %v3367_v1 = vpop.f32.mrf.mxu0 }
 0x3c3   : > { %v7796_v19 = vadd.f32 %v3688_v2, %v3360_v37  ;;  %3229 = vmatmul.f32.gmra.mxu3 %v8906_v10  ;;  %3751 = vmatmul.f32.gmra.mxu1 %v7740_v9  ;;  %v3501_v29 = vand.u32 4294901760, %v3500_v59  ;;  %v8542_v2 = vand.u32 4294901760, %v7804_v32  ;;  %v7808_v37 = vand.u32 4294901760, %v535_v16 }
 0x3c5   : > { %8911 = vst [vmem:[#allocation60_spill] sm:$0xff] %v7796_v19  ;;  %v3005_v54 = vpop.f32.mrf.mxu2  ;;  %3494 = vmatmul.f32.gmra.mxu0 %v3493_v14  ;;  %v8914_v14 = vld [vmem:[#allocation55_spill] sm:$0xff]  ;;  %v340_v19 = vld [vmem:[%s5287_s29 + $0x2b0] sm:$0xff]  ;;  %v7821_v55 = vsub.f32 %v535_v16, %v7808_v37 }
 0x3c6   : > { %v3006_v49 = vadd.f32 %v3005_v54, %v8913_v25  ;;  %v3166_v51 = vpop.f32.mrf.mxu3  ;;  %v538_v38 = vmul.f32 %v439_v31, %v340_v19 }
 0x3c7   : > { %v3167_v22 = vadd.f32 %v3166_v51, %v3002_v48  ;;  %8916 = vst [vmem:[#allocation55_spill] sm:$0xff] %v7821_v55  ;;  %v8917_v48 = vld [vmem:[#allocation64_spill] sm:$0xff] }
 0x3c8   : > { %v3692_v12 = vpop.f32.mrf.mxu1 }
 0x3c9   : > { %v3368_v10 = vadd.f32 %v3367_v1, %v3167_v22  ;;  %v3508_v1 = vsub.f32 %v7804_v32, %v8542_v2  ;;  %v442_v2 = vld [vmem:[%s5294_s6 + $0x2c8] sm:$0xff] }
 0x3ca   : > { %3072 = vmatmul.f32.gmra.mxu2 %v8914_v14  ;;  %v3375_v9 = vpop.f32.mrf.mxu0 }
 0x3cb   : > { %v7813_v62 = vadd.f32 %v3692_v12, %v3368_v10  ;;  %3233 = vmatmul.f32.gmra.mxu3 %v8910_v56  ;;  %3755 = vmatmul.f32.gmra.mxu1 %v7757_v27  ;;  %v3509_v22 = vand.u32 4294901760, %v3508_v1  ;;  %v8545_v12 = vand.u32 4294901760, %v7821_v55  ;;  %v7825_v10 = vand.u32 4294901760, %v538_v38 }
 0x3cd   : > { %8915 = vst [vmem:[#allocation61_spill] sm:$0xff] %v7813_v62  ;;  %v3009_v45 = vpop.f32.mrf.mxu2  ;;  %3502 = vmatmul.f32.gmra.mxu0 %v3501_v29  ;;  %v8918_v29 = vld [vmem:[#allocation57_spill] sm:$0xff]  ;;  %v7838_v31 = vsub.f32 %v538_v38, %v7825_v10 }
 0x3ce   : > { %v3010_v54 = vadd.f32 %v3009_v45, %v8917_v48  ;;  %v3170_v59 = vpop.f32.mrf.mxu3  ;;  %v343_v62 = vld [vmem:[%s5287_s29 + $0x2c8] sm:$0xff] }
 0x3cf   : > { %v3171_v25 = vadd.f32 %v3170_v59, %v3006_v49  ;;  %8919 = vst [vmem:[#allocation64_spill] sm:$0xff] %v7838_v31  ;;  %v541_v16 = vmul.f32 %v442_v2, %v343_v62 }
 0x3d0   : > { %v3696_v51 = vpop.f32.mrf.mxu1 }
 0x3d1   : > { %v3376_v56 = vadd.f32 %v3375_v9, %v3171_v25  ;;  %v3516_v9 = vsub.f32 %v7821_v55, %v8545_v12  ;;  %v8548_v25 = vand.u32 4294901760, %v7838_v31  ;;  %v445_v12 = vld [vmem:[%s5294_s6 + $0x2e0] sm:$0xff] }
 0x3d2   : > { %3076 = vmatmul.f32.gmra.mxu2 %v8918_v29  ;;  %v3383_v27 = vpop.f32.mrf.mxu0 }
 0x3d3   : > { %v7830_v32 = vadd.f32 %v3696_v51, %v3376_v56  ;;  %3237 = vmatmul.f32.gmra.mxu3 %v8914_v14  ;;  %3759 = vmatmul.f32.gmra.mxu1 %v7774_v41  ;;  %v3517_v59 = vand.u32 4294901760, %v3516_v9  ;;  %v7842_v51 = vand.u32 4294901760, %v541_v16 }
 0x3d5   : > { %v3013_v19 = vpop.f32.mrf.mxu2  ;;  %3510 = vmatmul.f32.gmra.mxu0 %v3509_v22  ;;  %v346_v22 = vld [vmem:[%s5287_s29 + $0x2e0] sm:$0xff]  ;;  %v7855_v62 = vsub.f32 %v541_v16, %v7842_v51 }
 0x3d6   : > { %v3014_v49 = vadd.f32 %v3013_v19, %v7252_v61  ;;  %v3174_v45 = vpop.f32.mrf.mxu3  ;;  %v544_v2 = vmul.f32 %v445_v12, %v346_v22 }
 0x3d7   : > { %v3175_v1 = vadd.f32 %v3174_v45, %v3010_v54  ;;  %8920 = vst [vmem:[#allocation57_spill] sm:$0xff] %v7855_v62 }
 0x3d8   : > { %v3700_v48 = vpop.f32.mrf.mxu1 }
 0x3d9   : > { %v3384_v14 = vadd.f32 %v3383_v27, %v3175_v1  ;;  %v3524_v27 = vsub.f32 %v7838_v31, %v8548_v25  ;;  %v8551_v1 = vand.u32 4294901760, %v7855_v62  ;;  %v448_v25 = vld [vmem:[%s5294_s6 + $0x2f8] sm:$0xff] }
 0x3da   : > { %3080 = vmatmul.f32.gmra.mxu2 %v7166_v5  ;;  %v3391_v56 = vpop.f32.mrf.mxu0 }
 0x3db   : > { %v7847_v55 = vadd.f32 %v3700_v48, %v3384_v14  ;;  %3241 = vmatmul.f32.gmra.mxu3 %v8918_v29  ;;  %3763 = vmatmul.f32.gmra.mxu1 %v7791_v24  ;;  %v3525_v45 = vand.u32 4294901760, %v3524_v27  ;;  %v7859_v48 = vand.u32 4294901760, %v544_v2  ;;  %v3532_v12 = vsub.f32 %v7855_v62, %v8551_v1  ;;  %v451_v1 = vld [vmem:[%s5294_s6 + $0x310] sm:$0xff] }
 0x3dd   : > { %v3017_v61 = vpop.f32.mrf.mxu2  ;;  %3518 = vmatmul.f32.gmra.mxu0 %v3517_v59  ;;  %v349_v59 = vld [vmem:[%s5287_s29 + $0x2f8] sm:$0xff]  ;;  %v7872_v16 = vsub.f32 %v544_v2, %v7859_v48 }
 0x3de   : > { %v3018_v38 = vadd.f32 %v3017_v61, %v7284_v57  ;;  %v3178_v54 = vpop.f32.mrf.mxu3 }
 0x3df   : > { %v3179_v19 = vadd.f32 %v3178_v54, %v3014_v49  ;;  %v547_v49 = vmul.f32 %v448_v25, %v349_v59  ;;  %v3533_v54 = vand.u32 4294901760, %v3532_v12 }
 0x3e0   : > { %v3704_v9 = vpop.f32.mrf.mxu1 }
 0x3e1   : > { %v3392_v29 = vadd.f32 %v3391_v56, %v3179_v19  ;;  %v3539_v19 = vand.u32 4294901760, %v7872_v16 }
 0x3e2   : > { %3084 = vmatmul.f32.gmra.mxu2 %v7194_v42  ;;  %v3399_v14 = vpop.f32.mrf.mxu0 }
 0x3e3   : > { %v7864_v31 = vadd.f32 %v3704_v9, %v3392_v29  ;;  %3245 = vmatmul.f32.gmra.mxu3 %v7166_v5  ;;  %3767 = vmatmul.f32.gmra.mxu1 %v7808_v37  ;;  %v7876_v9 = vand.u32 4294901760, %v547_v49  ;;  %v3540_v25 = vsub.f32 %v7872_v16, %v3539_v19 }
 0x3e5   : > { %v3021_v57 = vpop.f32.mrf.mxu2  ;;  %3526 = vmatmul.f32.gmra.mxu0 %v3525_v45  ;;  %v352_v45 = vld [vmem:[%s5287_s29 + $0x310] sm:$0xff]  ;;  %v7889_v2 = vsub.f32 %v547_v49, %v7876_v9 }
 0x3e6   : > { %v3022_v56 = vadd.f32 %v3021_v57, %v7307_v58  ;;  %v3182_v22 = vpop.f32.mrf.mxu3 }
 0x3e7   : > { %v3183_v61 = vadd.f32 %v3182_v22, %v3018_v38  ;;  %v550_v38 = vmul.f32 %v451_v1, %v352_v45 }
 0x3e8   : > { %v3708_v27 = vpop.f32.mrf.mxu1 }
 0x3e9   : > { %v3400_v5 = vadd.f32 %v3399_v14, %v3183_v61  ;;  %v3541_v61 = vand.u32 4294901760, %v3540_v25 }
 0x3ea   : > { %3088 = vmatmul.f32.gmra.mxu2 %v7212_v4  ;;  %v3407_v29 = vpop.f32.mrf.mxu0 }
 0x3eb   : > { %v7881_v62 = vadd.f32 %v3708_v27, %v3400_v5  ;;  %3249 = vmatmul.f32.gmra.mxu3 %v7194_v42  ;;  %3771 = vmatmul.f32.gmra.mxu1 %v7825_v10  ;;  %v3547_v42 = vand.u32 4294901760, %v7889_v2  ;;  %v7893_v27 = vand.u32 4294901760, %v550_v38 }
 0x3ed   : > { %v3025_v58 = vpop.f32.mrf.mxu2  ;;  %3534 = vmatmul.f32.gmra.mxu0 %v3533_v54  ;;  %v7904_v49 = vsub.f32 %v550_v38, %v7893_v27 }
 0x3ee   : > { %v3026_v14 = vadd.f32 %v3025_v58, %v7328_v36  ;;  %v3186_v59 = vpop.f32.mrf.mxu3  ;;  %v3548_v36 = vsub.f32 %v7889_v2, %v3547_v42 }
 0x3ef   : > { %v3187_v57 = vadd.f32 %v3186_v59, %v3022_v56 }
 0x3f0   : > { %v3712_v12 = vpop.f32.mrf.mxu1  ;;  %v3549_v59 = vand.u32 4294901760, %v3548_v36 }
 0x3f1   : > { %v3408_v22 = vadd.f32 %v3407_v29, %v3187_v57 }
 0x3f2   : > { %3092 = vmatmul.f32.gmra.mxu2 %v7242_v52  ;;  %v3415_v5 = vpop.f32.mrf.mxu0 }
 0x3f3   : > { %v7896_v54 = vadd.f32 %v3712_v12, %v3408_v22  ;;  %3253 = vmatmul.f32.gmra.mxu3 %v7212_v4  ;;  %3775 = vmatmul.f32.gmra.mxu1 %v7842_v51  ;;  %v3555_v4 = vand.u32 4294901760, %v7904_v49 }
 0x3f5   : > { %v3029_v1 = vpop.f32.mrf.mxu2  ;;  %3542 = vmatmul.f32.gmra.mxu0 %v3541_v61 }
 0x3f6   : > { %v3030_v56 = vadd.f32 %v3029_v1, %v7354_v35  ;;  %v3190_v29 = vpop.f32.mrf.mxu3  ;;  %v3556_v35 = vsub.f32 %v7904_v49, %v3555_v4 }
 0x3f7   : > { %v3191_v45 = vadd.f32 %v3190_v29, %v3026_v14 }
 0x3f8   : > { %v3716_v58 = vpop.f32.mrf.mxu1  ;;  %v3557_v36 = vand.u32 4294901760, %v3556_v35  ;;  %v8921_v35 = vand.u32 4294901760, %v7338_v50 }
 0x3f9   : > { %v3416_v25 = vadd.f32 %v3415_v5, %v3191_v45 }
 0x3fa   : > { %3096 = vmatmul.f32.gmra.mxu2 %v7262_v30  ;;  %v3423_v57 = vpop.f32.mrf.mxu0 }
 0x3fb   : > { %v7909_v12 = vadd.f32 %v3716_v58, %v3416_v25  ;;  %3257 = vmatmul.f32.gmra.mxu3 %v7242_v52  ;;  %3779 = vmatmul.f32.gmra.mxu1 %v7859_v48 }
 0x3fd   : > { %v3033_v38 = vpop.f32.mrf.mxu2  ;;  %3550 = vmatmul.f32.gmra.mxu0 %v3549_v59 }
 0x3fe   : > { %v3034_v14 = vadd.f32 %v3033_v38, %v7383_v15  ;;  %v3194_v22 = vpop.f32.mrf.mxu3 }
 0x3ff   : > { %v3195_v61 = vadd.f32 %v3194_v22, %v3030_v56 }
 0x400   : > { %v3720_v5 = vpop.f32.mrf.mxu1 }
 0x401   : > { %v3424_v1 = vadd.f32 %v3423_v57, %v3195_v61 }
 0x402   : > { %3841 = vmatmul.f32.vlgmr.msra.gmra.mxu2 %v7338_v50  ;;  %v3431_v29 = vpop.f32.mrf.mxu0 }
 0x403   : > { %v7918_v45 = vadd.f32 %v3720_v5, %v3424_v1  ;;  %3261 = vmatmul.f32.gmra.mxu3 %v7262_v30  ;;  %3783 = vmatmul.f32.gmra.mxu1 %v7876_v9 }
 0x405   : > { %v3037_v52 = vpop.f32.mrf.mxu2  ;;  %3558 = vmatmul.f32.gmra.mxu0 %v3557_v36 }
 0x406   : > { %v3038_v58 = vadd.f32 %v3037_v52, %v7405_v11  ;;  %v3198_v25 = vpop.f32.mrf.mxu3 }
 0x407   : > { %v3199_v15 = vadd.f32 %v3198_v25, %v3034_v14 }
 0x408   : > { %v3724_v59 = vpop.f32.mrf.mxu1 }
 0x409   : > { %v3432_v56 = vadd.f32 %v3431_v29, %v3199_v15  ;;  %v8922_v29 = vand.u32 4294901760, %v7367_v23 }
 0x40a   : > { %3846 = vmatmul.f32.gmra.mxu2 %v7367_v23  ;;  %v3439_v57 = vpop.f32.mrf.mxu0 }
 0x40b   : > { %v7924_v38 = vadd.f32 %v3724_v59, %v3432_v56  ;;  %4040 = vmatmul.f32.vlgmr.msra.gmra.mxu3 %v8921_v35  ;;  %3787 = vmatmul.f32.gmra.mxu1 %v7893_v27 }
 0x40d   : > { %v3041_v30 = vpop.f32.mrf.mxu2  ;;  %4301 = vmatmul.f32.vlgmr.msra.gmra.mxu0 %v7323_v26 }
 0x40e   : > { %v3042_v22 = vadd.f32 %v3041_v30, %v7422_v13  ;;  %v3202_v11 = vpop.f32.mrf.mxu3 }
 0x40f   : > { %v3203_v61 = vadd.f32 %v3202_v11, %v3038_v58 }
 0x410   : > { %v3728_v14 = vpop.f32.mrf.mxu1 }
 0x411   : > { %v3440_v5 = vadd.f32 %v3439_v57, %v3203_v61  ;;  %v8923_v57 = vand.u32 4294901760, %v7395_v17 }
 0x412   : > { %3851 = vmatmul.f32.gmra.mxu2 %v7395_v17  ;;  %v3447_v1 = vpop.f32.mrf.mxu0 }
 0x413   : > { %v7932_v36 = vadd.f32 %v3728_v14, %v3440_v5  ;;  %4046 = vmatmul.f32.gmra.mxu3 %v8922_v29  ;;  %4466 = vmatmul.f32.vlgmr.msra.gmra.mxu1 %v7323_v26  ;;  %v8924_v14 = vand.u32 4294901760, %v7413_v53 }
 0x415   : > { %v3045_v50 = vpop.f32.mrf.mxu2  ;;  %4305 = vmatmul.f32.gmra.mxu0 %v7348_v3 }
 0x416   : > { %v3046_v52 = vadd.f32 %v3045_v50, %v7439_v33  ;;  %v3206_v13 = vpop.f32.mrf.mxu3 }
 0x417   : > { %v3207_v25 = vadd.f32 %v3206_v13, %v3042_v22  ;;  %v8925_v13 = vand.u32 4294901760, %v7430_v47 }
 0x418   : > { %v3732_v58 = vpop.f32.mrf.mxu1 }
 0x419   : > { %v3448_v15 = vadd.f32 %v3447_v1, %v3207_v25 }
 0x41a   : > { %3856 = vmatmul.f32.gmra.mxu2 %v7413_v53  ;;  %v3455_v59 = vpop.f32.mrf.mxu0 }
 0x41b   : > { %v7940_v56 = vadd.f32 %v3732_v58, %v3448_v15  ;;  %4052 = vmatmul.f32.gmra.mxu3 %v8923_v57  ;;  %4470 = vmatmul.f32.gmra.mxu1 %v7348_v3 }
 0x41d   : > { %v3049_v26 = vpop.f32.mrf.mxu2  ;;  %4309 = vmatmul.f32.gmra.mxu0 %v7377_v7 }
 0x41e   : > { %v3050_v23 = vadd.f32 %v3049_v26, %v7456_v21  ;;  %v3210_v33 = vpop.f32.mrf.mxu3  ;;  %v8926_v26 = vand.u32 4294901760, %v7447_v46 }
 0x41f   : > { %v3211_v35 = vadd.f32 %v3210_v33, %v3046_v52 }
 0x420   : > { %v3736_v30 = vpop.f32.mrf.mxu1 }
 0x421   : > { %v3456_v22 = vadd.f32 %v3455_v59, %v3211_v35 }
 0x422   : > { %3861 = vmatmul.f32.gmra.mxu2 %v7430_v47  ;;  %v3463_v11 = vpop.f32.mrf.mxu0 }
 0x423   : > { %v7948_v61 = vadd.f32 %v3736_v30, %v3456_v22  ;;  %4058 = vmatmul.f32.gmra.mxu3 %v8924_v14  ;;  %4474 = vmatmul.f32.gmra.mxu1 %v7377_v7 }
 0x425   : > { %v3053_v3 = vpop.f32.mrf.mxu2  ;;  %4313 = vmatmul.f32.gmra.mxu0 %v7400_v6 }
 0x426   : > { %v3054_v17 = vadd.f32 %v3053_v3, %v7473_v39  ;;  %v3214_v21 = vpop.f32.mrf.mxu3 }
 0x427   : > { %v3215_v5 = vadd.f32 %v3214_v21, %v3050_v23 }
 0x428   : > { %v3740_v1 = vpop.f32.mrf.mxu1 }
 0x429   : > { %v3464_v29 = vadd.f32 %v3463_v11, %v3215_v5  ;;  %v8927_v11 = vand.u32 4294901760, %v7464_v0 }
 0x42a   : > { %3866 = vmatmul.f32.gmra.mxu2 %v7447_v46  ;;  %v3471_v50 = vpop.f32.mrf.mxu0 }
 0x42b   : > { %v7956_v52 = vadd.f32 %v3740_v1, %v3464_v29  ;;  %4064 = vmatmul.f32.gmra.mxu3 %v8925_v13  ;;  %4478 = vmatmul.f32.gmra.mxu1 %v7400_v6  ;;  %v8928_v1 = vand.u32 4294901760, %v7481_v60 }
 0x42d   : > { %v3057_v7 = vpop.f32.mrf.mxu2  ;;  %4317 = vmatmul.f32.gmra.mxu0 %v7417_v28 }
 0x42e   : > { %v3058_v53 = vadd.f32 %v3057_v7, %v7490_v40  ;;  %v3218_v39 = vpop.f32.mrf.mxu3 }
 0x42f   : > { %v3219_v25 = vadd.f32 %v3218_v39, %v3054_v17 }
 0x430   : > { %v3744_v58 = vpop.f32.mrf.mxu1 }
 0x431   : > { %v3472_v15 = vadd.f32 %v3471_v50, %v3219_v25 }
 0x432   : > { %3871 = vmatmul.f32.gmra.mxu2 %v7464_v0  ;;  %v3479_v59 = vpop.f32.mrf.mxu0  ;;  %v8929_v0 = vld [vmem:[#allocation15_spill] sm:$0xff] }
 0x433   : > { %v7964_v57 = vadd.f32 %v3744_v58, %v3472_v15  ;;  %4070 = vmatmul.f32.gmra.mxu3 %v8926_v26  ;;  %4482 = vmatmul.f32.gmra.mxu1 %v7417_v28  ;;  %v8931_v58 = vand.u32 4294901760, %v7498_v18  ;;  %v8933_v15 = vld [vmem:[#allocation23_spill] sm:$0xff] }
 0x435   : > { %v3061_v6 = vpop.f32.mrf.mxu2  ;;  %4321 = vmatmul.f32.gmra.mxu0 %v7434_v34 }
 0x436   : > { %v3062_v47 = vadd.f32 %v3061_v6, %v7507_v20  ;;  %v3222_v40 = vpop.f32.mrf.mxu3 }
 0x437   : > { %v3223_v23 = vadd.f32 %v3222_v40, %v3058_v53  ;;  %v8930_v53 = vld [vmem:[#allocation14_spill] sm:$0xff] }
 0x438   : > { %v3748_v33 = vpop.f32.mrf.mxu1 }
 0x439   : > { %v3480_v35 = vadd.f32 %v3479_v59, %v3223_v23  ;;  %v8934_v23 = vld [vmem:[#allocation18_spill] sm:$0xff] }
 0x43a   : > { %3876 = vmatmul.f32.gmra.mxu2 %v7481_v60  ;;  %v3487_v30 = vpop.f32.mrf.mxu0  ;;  %v8932_v60 = vld [vmem:[#allocation16_spill] sm:$0xff] }
 0x43b   : > { %v7972_v22 = vadd.f32 %v3748_v33, %v3480_v35  ;;  %4076 = vmatmul.f32.gmra.mxu3 %v8927_v11  ;;  %4486 = vmatmul.f32.gmra.mxu1 %v7434_v34  ;;  %v8937_v11 = vld [vmem:[#allocation24_spill] sm:$0xff] }
 0x43d   : > { %v3065_v28 = vpop.f32.mrf.mxu2  ;;  %4325 = vmatmul.f32.gmra.mxu0 %v7451_v44 }
 0x43e   : > { %v3066_v46 = vadd.f32 %v3065_v28, %v7524_v63  ;;  %v3226_v20 = vpop.f32.mrf.mxu3 }
 0x43f   : > { %v3227_v14 = vadd.f32 %v3226_v20, %v3062_v47 }
 0x440   : > { %v3752_v3 = vpop.f32.mrf.mxu1 }
 0x441   : > { %v3488_v17 = vadd.f32 %v3487_v30, %v3227_v14  ;;  %v8935_v30 = vand.u32 4294901760, %v8930_v53 }
 0x442   : > { %3881 = vmatmul.f32.gmra.mxu2 %v7498_v18  ;;  %v3495_v21 = vpop.f32.mrf.mxu0  ;;  %v8936_v18 = vld [vmem:[#allocation17_spill] sm:$0xff] }
 0x443   : > { %v7980_v5 = vadd.f32 %v3752_v3, %v3488_v17  ;;  %4082 = vmatmul.f32.gmra.mxu3 %v8928_v1  ;;  %4490 = vmatmul.f32.gmra.mxu1 %v7451_v44  ;;  %v8938_v17 = vld [vmem:[#allocation26_spill] sm:$0xff] }
 0x445   : > { %v3069_v34 = vpop.f32.mrf.mxu2  ;;  %4329 = vmatmul.f32.gmra.mxu0 %v7468_v43 }
 0x446   : > { %v3070_v29 = vadd.f32 %v3069_v34, %v8929_v0  ;;  %v3230_v63 = vpop.f32.mrf.mxu3  ;;  %v8939_v34 = vand.u32 4294901760, %v8934_v23 }
 0x447   : > { %v3231_v50 = vadd.f32 %v3230_v63, %v3066_v46  ;;  %v8941_v63 = vld [vmem:[#allocation39_spill] sm:$0xff] }
 0x448   : > { %v3756_v13 = vpop.f32.mrf.mxu1 }
 0x449   : > { %v3496_v7 = vadd.f32 %v3495_v21, %v3231_v50 }
 0x44a   : > { %3886 = vmatmul.f32.gmra.mxu2 %v8930_v53  ;;  %v3503_v39 = vpop.f32.mrf.mxu0 }
 0x44b   : > { %v7988_v25 = vadd.f32 %v3756_v13, %v3496_v7  ;;  %4088 = vmatmul.f32.gmra.mxu3 %v8931_v58  ;;  %4494 = vmatmul.f32.gmra.mxu1 %v7468_v43  ;;  %v8942_v58 = vld [vmem:[#allocation22_spill] sm:$0xff] }
 0x44d   : > { %v3073_v44 = vpop.f32.mrf.mxu2  ;;  %4333 = vmatmul.f32.gmra.mxu0 %v8932_v60 }
 0x44e   : > { %v3074_v59 = vadd.f32 %v3073_v44, %v8933_v15  ;;  %v3234_v26 = vpop.f32.mrf.mxu3  ;;  %v8943_v15 = vand.u32 4294901760, %v8938_v17 }
 0x44f   : > { %v3235_v6 = vadd.f32 %v3234_v26, %v3070_v29  ;;  %v8940_v29 = vld [vmem:[#allocation19_spill] sm:$0xff]  ;;  %v8944_v26 = vld [vmem:[#allocation21_spill] sm:$0xff] }
 0x450   : > { %v3760_v47 = vpop.f32.mrf.mxu1 }
 0x451   : > { %v3504_v40 = vadd.f32 %v3503_v39, %v3235_v6  ;;  %v8945_v6 = vld [vmem:[#allocation33_spill] sm:$0xff] }
 0x452   : > { %3891 = vmatmul.f32.gmra.mxu2 %v8934_v23  ;;  %v3511_v33 = vpop.f32.mrf.mxu0 }
 0x453   : > { %v7996_v35 = vadd.f32 %v3760_v47, %v3504_v40  ;;  %4094 = vmatmul.f32.gmra.mxu3 %v8935_v30  ;;  %4498 = vmatmul.f32.gmra.mxu1 %v8932_v60 }
 0x455   : > { %v3077_v43 = vpop.f32.mrf.mxu2  ;;  %4337 = vmatmul.f32.gmra.mxu0 %v8936_v18 }
 0x456   : > { %v3078_v28 = vadd.f32 %v3077_v43, %v8937_v11  ;;  %v3238_v46 = vpop.f32.mrf.mxu3  ;;  %v8946_v43 = vld [vmem:[#allocation35_spill] sm:$0xff] }
 0x457   : > { %v3239_v20 = vadd.f32 %v3238_v46, %v3074_v59 }
 0x458   : > { %v3764_v14 = vpop.f32.mrf.mxu1 }
 0x459   : > { %v3512_v3 = vadd.f32 %v3511_v33, %v3239_v20  ;;  %v8948_v20 = vld [vmem:[#allocation20_spill] sm:$0xff] }
 0x45a   : > { %3896 = vmatmul.f32.gmra.mxu2 %v8938_v17  ;;  %v3519_v21 = vpop.f32.mrf.mxu0 }
 0x45b   : > { %v8004_v1 = vadd.f32 %v3764_v14, %v3512_v3  ;;  %4100 = vmatmul.f32.gmra.mxu3 %v8939_v34  ;;  %4502 = vmatmul.f32.gmra.mxu1 %v8936_v18  ;;  %v8949_v14 = vld [vmem:[#allocation30_spill] sm:$0xff] }
 0x45d   : > { %v3081_v0 = vpop.f32.mrf.mxu2  ;;  %4341 = vmatmul.f32.gmra.mxu0 %v8940_v29 }
 0x45e   : > { %v3082_v50 = vadd.f32 %v3081_v0, %v8941_v63  ;;  %v3242_v13 = vpop.f32.mrf.mxu3 }
 0x45f   : > { %v3243_v7 = vadd.f32 %v3242_v13, %v3078_v28  ;;  %v8947_v28 = vand.u32 4294901760, %v8942_v58  ;;  %v8951_v13 = vand.u32 4294901760, %v8946_v43 }
 0x460   : > { %v3768_v53 = vpop.f32.mrf.mxu1 }
 0x461   : > { %v3520_v39 = vadd.f32 %v3519_v21, %v3243_v7 }
 0x462   : > { %3901 = vmatmul.f32.gmra.mxu2 %v8942_v58  ;;  %v3527_v44 = vpop.f32.mrf.mxu0 }
 0x463   : > { %v8012_v60 = vadd.f32 %v3768_v53, %v3520_v39  ;;  %4106 = vmatmul.f32.gmra.mxu3 %v8943_v15  ;;  %4506 = vmatmul.f32.gmra.mxu1 %v8940_v29  ;;  %v8950_v29 = vld [vmem:[#allocation40_spill] sm:$0xff]  ;;  %v8952_v53 = vld [vmem:[#allocation34_spill] sm:$0xff] }
 0x464   : > { %v8953_v39 = vld [vmem:[#allocation52_spill] sm:$0xff] }
 0x465   : > { %v3085_v59 = vpop.f32.mrf.mxu2  ;;  %4345 = vmatmul.f32.gmra.mxu0 %v8944_v26 }
 0x466   : > { %v3086_v47 = vadd.f32 %v3085_v59, %v8945_v6  ;;  %v3246_v40 = vpop.f32.mrf.mxu3  ;;  %v8954_v6 = vld [vmem:[#allocation56_spill] sm:$0xff] }
 0x467   : > { %v3247_v23 = vadd.f32 %v3246_v40, %v3082_v50 }
 0x468   : > { %v3772_v33 = vpop.f32.mrf.mxu1 }
 0x469   : > { %v3528_v30 = vadd.f32 %v3527_v44, %v3247_v23  ;;  %v8955_v23 = vand.u32 4294901760, %v8950_v29 }
 0x46a   : > { %3906 = vmatmul.f32.gmra.mxu2 %v8946_v43  ;;  %v3535_v18 = vpop.f32.mrf.mxu0  ;;  %v8957_v43 = vld [vmem:[#allocation32_spill] sm:$0xff] }
 0x46b   : > { %v8020_v11 = vadd.f32 %v3772_v33, %v3528_v30  ;;  %4112 = vmatmul.f32.gmra.mxu3 %v8947_v28  ;;  %4510 = vmatmul.f32.gmra.mxu1 %v8944_v26  ;;  %v8956_v30 = vld [vmem:[#allocation36_spill] sm:$0xff] }
 0x46d   : > { %v3089_v46 = vpop.f32.mrf.mxu2  ;;  %4349 = vmatmul.f32.gmra.mxu0 %v8948_v20 }
 0x46e   : > { %v3090_v3 = vadd.f32 %v3089_v46, %v8949_v14  ;;  %v3250_v17 = vpop.f32.mrf.mxu3 }
 0x46f   : > { %v3251_v21 = vadd.f32 %v3250_v17, %v3086_v47 }
 0x470   : > { %v3776_v34 = vpop.f32.mrf.mxu1 }
 0x471   : > { %v3536_v0 = vadd.f32 %v3535_v18, %v3251_v21 }
 0x472   : > { %3911 = vmatmul.f32.gmra.mxu2 %v8950_v29  ;;  %v3543_v63 = vpop.f32.mrf.mxu0  ;;  %v8960_v29 = vld [vmem:[#allocation25_spill] sm:$0xff] }
 0x473   : > { %v8028_v50 = vadd.f32 %v3776_v34, %v3536_v0  ;;  %4118 = vmatmul.f32.gmra.mxu3 %v8951_v13  ;;  %4514 = vmatmul.f32.gmra.mxu1 %v8948_v20  ;;  %v8959_v34 = vand.u32 4294901760, %v8954_v6 }
 0x475   : > { %v3093_v7 = vpop.f32.mrf.mxu2  ;;  %4353 = vmatmul.f32.gmra.mxu0 %v8952_v53 }
 0x476   : > { %v3094_v58 = vadd.f32 %v3093_v7, %v8953_v39  ;;  %v3254_v44 = vpop.f32.mrf.mxu3  ;;  %v8961_v39 = vld [vmem:[#allocation58_spill] sm:$0xff] }
 0x477   : > { %v3255_v15 = vadd.f32 %v3254_v44, %v3090_v3  ;;  %v8958_v3 = vld [vmem:[#allocation28_spill] sm:$0xff] }
 0x478   : > { %v3780_v59 = vpop.f32.mrf.mxu1 }
 0x479   : > { %v3544_v26 = vadd.f32 %v3543_v63, %v3255_v15  ;;  %v8962_v15 = vand.u32 4294901760, %v8958_v3 }
 0x47a   : > { %3916 = vmatmul.f32.gmra.mxu2 %v8954_v6  ;;  %v3551_v47 = vpop.f32.mrf.mxu0 }
 0x47b   : > { %v8036_v40 = vadd.f32 %v3780_v59, %v3544_v26  ;;  %4124 = vmatmul.f32.gmra.mxu3 %v8955_v23  ;;  %4518 = vmatmul.f32.gmra.mxu1 %v8952_v53  ;;  %v8963_v59 = vld [vmem:[#allocation50_spill] sm:$0xff] }
 0x47d   : > { %v3097_v33 = vpop.f32.mrf.mxu2  ;;  %4357 = vmatmul.f32.gmra.mxu0 %v8956_v30 }
 0x47e   : > { %v3098_v18 = vadd.f32 %v3097_v33, %v8957_v43  ;;  %v3258_v28 = vpop.f32.mrf.mxu3 }
 0x47f   : > { %v3259_v46 = vadd.f32 %v3258_v28, %v3094_v58 }
 0x480   : > { %v3784_v20 = vpop.f32.mrf.mxu1 }
 0x481   : > { %v3552_v14 = vadd.f32 %v3551_v47, %v3259_v46  ;;  %v8964_v47 = vld [vmem:[#allocation48_spill] sm:$0xff] }
 0x482   : > { %3921 = vmatmul.f32.gmra.mxu2 %v8958_v3  ;;  %v3559_v17 = vpop.f32.mrf.mxu0 }
 0x483   : > { %v8044_v21 = vadd.f32 %v3784_v20, %v3552_v14  ;;  %4130 = vmatmul.f32.gmra.mxu3 %v8959_v34  ;;  %4522 = vmatmul.f32.gmra.mxu1 %v8956_v30  ;;  %v8966_v20 = vand.u32 4294901760, %v8961_v39  ;;  %v8967_v14 = vld [vmem:[#allocation38_spill] sm:$0xff] }
 0x485   : > { %v3842_v0 = vpop.f32.mrf.mxu2  ;;  %4361 = vmatmul.f32.gmra.mxu0 %v8960_v29 }
 0x486   : > { %v3262_v63 = vpop.f32.mrf.mxu3  ;;  %v3843_v26 = vadd.f32 %v3842_v0, %v8963_v59  ;;  %v8968_v0 = vld [vmem:[#allocation54_spill] sm:$0xff] }
 0x487   : > { %v3263_v13 = vadd.f32 %v3262_v63, %v3098_v18  ;;  %v8965_v18 = vld [vmem:[#allocation46_spill] sm:$0xff] }
 0x488   : > { %v3788_v7 = vpop.f32.mrf.mxu1 }
 0x489   : > { %v3560_v53 = vadd.f32 %v3559_v17, %v3263_v13 }
 0x48a   : > { %3926 = vmatmul.f32.gmra.mxu2 %v8961_v39  ;;  %v4302_v58 = vpop.f32.mrf.mxu0 }
 0x48b   : > { %v8051_v44 = vadd.f32 %v3788_v7, %v3560_v53  ;;  %4136 = vmatmul.f32.gmra.mxu3 %v8962_v15  ;;  %4526 = vmatmul.f32.gmra.mxu1 %v8960_v29  ;;  %v8969_v15 = vld [vmem:[#allocation31_spill] sm:$0xff] }
 0x48d   : > { %v3847_v6 = vpop.f32.mrf.mxu2  ;;  %4365 = vmatmul.f32.gmra.mxu0 %v8964_v47 }
 0x48e   : > { %v4041_v23 = vpop.f32.mrf.mxu3  ;;  %v3848_v3 = vadd.f32 %v3847_v6, %v8967_v14  ;;  %v8971_v6 = vld [vmem:[#allocation63_spill] sm:$0xff] }
 0x48f   : > { %v4042_v33 = vadd.f32 %v4041_v23, %v3843_v26  ;;  %v8970_v26 = vand.u32 4294901760, %v8965_v18 }
 0x490   : > { %v4467_v30 = vpop.f32.mrf.mxu1 }
 0x491   : > { %v4303_v43 = vadd.f32 %v4302_v58, %v4042_v33 }
 0x492   : > { %3931 = vmatmul.f32.gmra.mxu2 %v8965_v18  ;;  %v4306_v28 = vpop.f32.mrf.mxu0 }
 0x493   : > { %v4468_v46 = vadd.f32 %v4467_v30, %v4303_v43  ;;  %4142 = vmatmul.f32.gmra.mxu3 %v8966_v20  ;;  %4530 = vmatmul.f32.gmra.mxu1 %v8964_v47  ;;  %v8972_v30 = vld [vmem:[#allocation43_spill] sm:$0xff] }
 0x495   : > { %v4598_v17 = vsub.f32 0.0, %v4468_v46  ;;  %v3852_v34 = vpop.f32.mrf.mxu2  ;;  %4369 = vmatmul.f32.gmra.mxu0 %v8968_v0 }
 0x496   : > { %v4047_v29 = vpop.f32.mrf.mxu3  ;;  %v3853_v47 = vadd.f32 %v3852_v34, %v8971_v6  ;;  %v8975_v34 = vld [vmem:[#allocation49_spill] sm:$0xff] }
 0x497   : > { %v4631_v63 = vmax.f32 %v4598_v17, 0.0  ;;  %v4048_v13 = vadd.f32 %v4047_v29, %v3848_v3  ;;  %v8973_v17 = vld [vmem:[#allocation62_spill] sm:$0xff] }
 0x498   : > { %v4471_v7 = vpop.f32.mrf.mxu1 }
 0x499   : > { %v4664_v53 = vmin.f32 %v4631_v63, 1.0  ;;  %v4307_v58 = vadd.f32 %v4306_v28, %v4048_v13 }
 0x49a   : > { %3936 = vmatmul.f32.gmra.mxu2 %v8969_v15  ;;  %v4310_v59 = vpop.f32.mrf.mxu0 }
 0x49b   : > { %4697 = vst [vmem:[%s8066_s20] sm:$0xff] %v4664_v53  ;;  %v4472_v39 = vadd.f32 %v4471_v7, %v4307_v58  ;;  %4148 = vmatmul.f32.gmra.mxu3 %v8970_v26  ;;  %4534 = vmatmul.f32.gmra.mxu1 %v8968_v0  ;;  %v8974_v0 = vand.u32 4294901760, %v8969_v15  ;;  %v8976_v53 = vld [vmem:[#allocation65_spill] sm:$0xff] }
 0x49d   : > { %v4599_v23 = vsub.f32 0.0, %v4472_v39  ;;  %v3857_v33 = vpop.f32.mrf.mxu2  ;;  %4373 = vmatmul.f32.gmra.mxu0 %v8972_v30 }
 0x49e   : > { %v4053_v43 = vpop.f32.mrf.mxu3  ;;  %v3858_v63 = vadd.f32 %v3857_v33, %v8975_v34 }
 0x49f   : > { %v4632_v28 = vmax.f32 %v4599_v23, 0.0  ;;  %v4054_v46 = vadd.f32 %v4053_v43, %v3853_v47  ;;  %v8977_v23 = vld [vmem:[#allocation45_spill] sm:$0xff] }
 0x4a0   : > { %v4475_v20 = vpop.f32.mrf.mxu1 }
 0x4a1   : > { %v4665_v14 = vmin.f32 %v4632_v28, 1.0  ;;  %v4311_v3 = vadd.f32 %v4310_v59, %v4054_v46 }
 0x4a2   : > { %3941 = vmatmul.f32.gmra.mxu2 %v8973_v17  ;;  %v4314_v29 = vpop.f32.mrf.mxu0 }
 0x4a3   : > { %4698 = vst [vmem:[%s8066_s20 + $0x8] sm:$0xff] %v4665_v14  ;;  %v4476_v18 = vadd.f32 %v4475_v20, %v4311_v3  ;;  %4154 = vmatmul.f32.gmra.mxu3 %v8974_v0  ;;  %4538 = vmatmul.f32.gmra.mxu1 %v8972_v30  ;;  %v8978_v30 = vand.u32 4294901760, %v8973_v17  ;;  %v8979_v20 = vld [vmem:[#allocation27_spill] sm:$0xff] }
 0x4a5   : > { %v4600_v13 = vsub.f32 0.0, %v4476_v18  ;;  %v3862_v7 = vpop.f32.mrf.mxu2  ;;  %4377 = vmatmul.f32.gmra.mxu0 %v8976_v53 }
 0x4a6   : > { %v4059_v58 = vpop.f32.mrf.mxu3  ;;  %v3863_v33 = vadd.f32 %v3862_v7, %v7745_v8  ;;  %v8982_v8 = vld [vmem:[#allocation44_spill] sm:$0xff] }
 0x4a7   : > { %v4633_v39 = vmax.f32 %v4600_v13, 0.0  ;;  %v4060_v59 = vadd.f32 %v4059_v58, %v3858_v63  ;;  %v8980_v63 = vld [vmem:[#allocation37_spill] sm:$0xff] }
 0x4a8   : > { %v4479_v26 = vpop.f32.mrf.mxu1 }
 0x4a9   : > { %v4666_v6 = vmin.f32 %v4633_v39, 1.0  ;;  %v4315_v47 = vadd.f32 %v4314_v29, %v4060_v59  ;;  %v8983_v59 = vld [vmem:[#allocation42_spill] sm:$0xff] }
 0x4aa   : > { %3946 = vmatmul.f32.gmra.mxu2 %v8977_v23  ;;  %v4318_v43 = vpop.f32.mrf.mxu0 }
 0x4ab   : > { %4699 = vst [vmem:[%s8066_s20 + $0x10] sm:$0xff] %v4666_v6  ;;  %v4480_v15 = vadd.f32 %v4479_v26, %v4315_v47  ;;  %4160 = vmatmul.f32.gmra.mxu3 %v8978_v30  ;;  %4542 = vmatmul.f32.gmra.mxu1 %v8976_v53  ;;  %v8981_v53 = vand.u32 4294901760, %v8977_v23 }
 0x4ad   : > { %v4601_v28 = vsub.f32 0.0, %v4480_v15  ;;  %v3867_v46 = vpop.f32.mrf.mxu2  ;;  %4381 = vmatmul.f32.gmra.mxu0 %v8979_v20 }
 0x4ae   : > { %v4065_v14 = vpop.f32.mrf.mxu3  ;;  %v3868_v7 = vadd.f32 %v3867_v46, %v8982_v8  ;;  %v8986_v46 = vld [vmem:[#allocation59_spill] sm:$0xff] }
 0x4af   : > { %v4634_v3 = vmax.f32 %v4601_v28, 0.0  ;;  %v4066_v29 = vadd.f32 %v4065_v14, %v3863_v33  ;;  %v8984_v33 = vld [vmem:[#allocation41_spill] sm:$0xff] }
 0x4b0   : > { %v4483_v18 = vpop.f32.mrf.mxu1 }
 0x4b1   : > { %v4667_v0 = vmin.f32 %v4634_v3, 1.0  ;;  %v4319_v34 = vadd.f32 %v4318_v43, %v4066_v29 }
 0x4b2   : > { %3951 = vmatmul.f32.gmra.mxu2 %v8980_v63  ;;  %v4322_v13 = vpop.f32.mrf.mxu0 }
 0x4b3   : > { %4700 = vst [vmem:[%s8066_s20 + $0x18] sm:$0xff] %v4667_v0  ;;  %v4484_v17 = vadd.f32 %v4483_v18, %v4319_v34  ;;  %4166 = vmatmul.f32.gmra.mxu3 %v8981_v53  ;;  %4546 = vmatmul.f32.gmra.mxu1 %v8979_v20  ;;  %v8985_v20 = vand.u32 4294901760, %v8980_v63  ;;  %v8987_v18 = vld [vmem:[#allocation29_spill] sm:$0xff] }
 0x4b5   : > { %v4602_v58 = vsub.f32 0.0, %v4484_v17  ;;  %v3872_v39 = vpop.f32.mrf.mxu2  ;;  %4385 = vmatmul.f32.gmra.mxu0 %v8983_v59 }
 0x4b6   : > { %v4071_v26 = vpop.f32.mrf.mxu3  ;;  %v3873_v14 = vadd.f32 %v3872_v39, %v8986_v46  ;;  %v8990_v39 = vld [vmem:[#allocation60_spill] sm:$0xff] }
 0x4b7   : > { %v4635_v6 = vmax.f32 %v4602_v58, 0.0  ;;  %v4072_v47 = vadd.f32 %v4071_v26, %v3868_v7  ;;  %v8988_v7 = vld [vmem:[#allocation67_spill] sm:$0xff] }
 0x4b8   : > { %v4487_v43 = vpop.f32.mrf.mxu1 }
 0x4b9   : > { %v4668_v15 = vmin.f32 %v4635_v6, 1.0  ;;  %v4323_v30 = vadd.f32 %v4322_v13, %v4072_v47 }
 0x4ba   : > { %3956 = vmatmul.f32.gmra.mxu2 %v8984_v33  ;;  %v4326_v28 = vpop.f32.mrf.mxu0 }
 0x4bb   : > { %4701 = vst [vmem:[%s8066_s20 + $0x20] sm:$0xff] %v4668_v15  ;;  %v4488_v23 = vadd.f32 %v4487_v43, %v4323_v30  ;;  %4172 = vmatmul.f32.gmra.mxu3 %v8985_v20  ;;  %4550 = vmatmul.f32.gmra.mxu1 %v8983_v59  ;;  %v8989_v59 = vand.u32 4294901760, %v8984_v33  ;;  %v8991_v43 = vld [vmem:[#allocation53_spill] sm:$0xff] }
 0x4bd   : > { %v4603_v3 = vsub.f32 0.0, %v4488_v23  ;;  %v3877_v29 = vpop.f32.mrf.mxu2  ;;  %4389 = vmatmul.f32.gmra.mxu0 %v8987_v18 }
 0x4be   : > { %v4077_v0 = vpop.f32.mrf.mxu3  ;;  %v3878_v26 = vadd.f32 %v3877_v29, %v8990_v39  ;;  %v8994_v29 = vld [vmem:[#allocation61_spill] sm:$0xff] }
 0x4bf   : > { %v4636_v34 = vmax.f32 %v4603_v3, 0.0  ;;  %v4078_v13 = vadd.f32 %v4077_v0, %v3873_v14  ;;  %v8992_v14 = vld [vmem:[#allocation47_spill] sm:$0xff] }
 0x4c0   : > { %v4491_v17 = vpop.f32.mrf.mxu1 }
 0x4c1   : > { %v4669_v53 = vmin.f32 %v4636_v34, 1.0  ;;  %v4327_v8 = vadd.f32 %v4326_v28, %v4078_v13 }
 0x4c2   : > { %3961 = vmatmul.f32.gmra.mxu2 %v8988_v7  ;;  %v4330_v58 = vpop.f32.mrf.mxu0 }
 0x4c3   : > { %4702 = vst [vmem:[%s8066_s20 + $0x28] sm:$0xff] %v4669_v53  ;;  %v4492_v63 = vadd.f32 %v4491_v17, %v4327_v8  ;;  %4178 = vmatmul.f32.gmra.mxu3 %v8989_v59  ;;  %4554 = vmatmul.f32.gmra.mxu1 %v8987_v18  ;;  %v8993_v18 = vand.u32 4294901760, %v8988_v7  ;;  %v8995_v17 = vld [vmem:[#allocation66_spill] sm:$0xff] }
 0x4c5   : > { %v4604_v6 = vsub.f32 0.0, %v4492_v63  ;;  %v3882_v47 = vpop.f32.mrf.mxu2  ;;  %4393 = vmatmul.f32.gmra.mxu0 %v8991_v43 }
 0x4c6   : > { %v4083_v15 = vpop.f32.mrf.mxu3  ;;  %v3883_v0 = vadd.f32 %v3882_v47, %v8994_v29 }
 0x4c7   : > { %v4637_v30 = vmax.f32 %v4604_v6, 0.0  ;;  %v4084_v28 = vadd.f32 %v4083_v15, %v3878_v26  ;;  %v8996_v26 = vld [vmem:[#allocation51_spill] sm:$0xff] }
 0x4c8   : > { %v4495_v23 = vpop.f32.mrf.mxu1 }
 0x4c9   : > { %v4670_v20 = vmin.f32 %v4637_v30, 1.0  ;;  %v4331_v46 = vadd.f32 %v4330_v58, %v4084_v28 }
 0x4ca   : > { %3966 = vmatmul.f32.gmra.mxu2 %v8992_v14  ;;  %v4334_v3 = vpop.f32.mrf.mxu0 }
 0x4cb   : > { %4703 = vst [vmem:[%s8066_s20 + $0x30] sm:$0xff] %v4670_v20  ;;  %v4496_v33 = vadd.f32 %v4495_v23, %v4331_v46  ;;  %4184 = vmatmul.f32.gmra.mxu3 %v8993_v18  ;;  %4558 = vmatmul.f32.gmra.mxu1 %v8991_v43  ;;  %v8997_v43 = vand.u32 4294901760, %v8992_v14  ;;  %v8998_v18 = vld [vmem:[#allocation55_spill] sm:$0xff] }
 0x4cd   : > { %v4605_v34 = vsub.f32 0.0, %v4496_v33  ;;  %v3887_v13 = vpop.f32.mrf.mxu2  ;;  %4397 = vmatmul.f32.gmra.mxu0 %v8995_v17 }
 0x4ce   : > { %v4089_v53 = vpop.f32.mrf.mxu3  ;;  %v3888_v47 = vadd.f32 %v3887_v13, %v7830_v32 }
 0x4cf   : > { %v4638_v8 = vmax.f32 %v4605_v34, 0.0  ;;  %v4090_v58 = vadd.f32 %v4089_v53, %v3883_v0  ;;  %v8999_v0 = vand.u32 4294901760, %v8996_v26 }
 0x4d0   : > { %v4499_v63 = vpop.f32.mrf.mxu1 }
 0x4d1   : > { %v4671_v59 = vmin.f32 %v4638_v8, 1.0  ;;  %v4335_v39 = vadd.f32 %v4334_v3, %v4090_v58 }
 0x4d2   : > { %3971 = vmatmul.f32.gmra.mxu2 %v8996_v26  ;;  %v4338_v6 = vpop.f32.mrf.mxu0 }
 0x4d3   : > { %4704 = vst [vmem:[%s8066_s20 + $0x38] sm:$0xff] %v4671_v59  ;;  %v4500_v7 = vadd.f32 %v4499_v63, %v4335_v39  ;;  %4190 = vmatmul.f32.gmra.mxu3 %v8997_v43  ;;  %4562 = vmatmul.f32.gmra.mxu1 %v8995_v17  ;;  %v9000_v39 = vld [vmem:[#allocation64_spill] sm:$0xff] }
 0x4d5   : > { %v4606_v15 = vsub.f32 0.0, %v4500_v7  ;;  %v3892_v30 = vpop.f32.mrf.mxu2  ;;  %4401 = vmatmul.f32.gmra.mxu0 %v7774_v41 }
 0x4d6   : > { %v4095_v28 = vpop.f32.mrf.mxu3  ;;  %v3893_v32 = vadd.f32 %v3892_v30, %v7847_v55 }
 0x4d7   : > { %v4639_v23 = vmax.f32 %v4606_v15, 0.0  ;;  %v4096_v20 = vadd.f32 %v4095_v28, %v3888_v47 }
 0x4d8   : > { %v4503_v46 = vpop.f32.mrf.mxu1 }
 0x4d9   : > { %v4672_v3 = vmin.f32 %v4639_v23, 1.0  ;;  %v4339_v33 = vadd.f32 %v4338_v6, %v4096_v20 }
 0x4da   : > { %3976 = vmatmul.f32.gmra.mxu2 %v8998_v18  ;;  %v4342_v29 = vpop.f32.mrf.mxu0 }
 0x4db   : > { %4705 = vst [vmem:[%s8066_s20 + $0x40] sm:$0xff] %v4672_v3  ;;  %v4504_v14 = vadd.f32 %v4503_v46, %v4339_v33  ;;  %4196 = vmatmul.f32.gmra.mxu3 %v8999_v0  ;;  %4566 = vmatmul.f32.gmra.mxu1 %v7774_v41  ;;  %v9001_v41 = vand.u32 4294901760, %v8998_v18  ;;  %v9002_v46 = vld [vmem:[#allocation57_spill] sm:$0xff] }
 0x4dd   : > { %v4607_v34 = vsub.f32 0.0, %v4504_v14  ;;  %v3897_v13 = vpop.f32.mrf.mxu2  ;;  %4405 = vmatmul.f32.gmra.mxu0 %v7791_v24 }
 0x4de   : > { %v4101_v17 = vpop.f32.mrf.mxu3  ;;  %v3898_v55 = vadd.f32 %v3897_v13, %v7864_v31 }
 0x4df   : > { %v4640_v53 = vmax.f32 %v4607_v34, 0.0  ;;  %v4102_v8 = vadd.f32 %v4101_v17, %v3893_v32 }
 0x4e0   : > { %v4507_v58 = vpop.f32.mrf.mxu1 }
 0x4e1   : > { %v4673_v63 = vmin.f32 %v4640_v53, 1.0  ;;  %v4343_v59 = vadd.f32 %v4342_v29, %v4102_v8 }
 0x4e2   : > { %3981 = vmatmul.f32.gmra.mxu2 %v9000_v39  ;;  %v4346_v6 = vpop.f32.mrf.mxu0 }
 0x4e3   : > { %4706 = vst [vmem:[%s8066_s20 + $0x48] sm:$0xff] %v4673_v63  ;;  %v4508_v26 = vadd.f32 %v4507_v58, %v4343_v59  ;;  %4202 = vmatmul.f32.gmra.mxu3 %v9001_v41  ;;  %4570 = vmatmul.f32.gmra.mxu1 %v7791_v24  ;;  %v9003_v24 = vand.u32 4294901760, %v9000_v39 }
 0x4e5   : > { %v4608_v7 = vsub.f32 0.0, %v4508_v26  ;;  %v3902_v43 = vpop.f32.mrf.mxu2  ;;  %4409 = vmatmul.f32.gmra.mxu0 %v7808_v37 }
 0x4e6   : > { %v4107_v47 = vpop.f32.mrf.mxu3  ;;  %v3903_v31 = vadd.f32 %v3902_v43, %v7881_v62 }
 0x4e7   : > { %v4641_v15 = vmax.f32 %v4608_v7, 0.0  ;;  %v4108_v30 = vadd.f32 %v4107_v47, %v3898_v55 }
 0x4e8   : > { %v4511_v28 = vpop.f32.mrf.mxu1 }
 0x4e9   : > { %v4674_v23 = vmin.f32 %v4641_v15, 1.0  ;;  %v4347_v20 = vadd.f32 %v4346_v6, %v4108_v30 }
 0x4ea   : > { %3986 = vmatmul.f32.gmra.mxu2 %v9002_v46  ;;  %v4350_v3 = vpop.f32.mrf.mxu0 }
 0x4eb   : > { %4707 = vst [vmem:[%s8066_s20 + $0x50] sm:$0xff] %v4674_v23  ;;  %v4512_v33 = vadd.f32 %v4511_v28, %v4347_v20  ;;  %4208 = vmatmul.f32.gmra.mxu3 %v9003_v24  ;;  %4574 = vmatmul.f32.gmra.mxu1 %v7808_v37  ;;  %v9004_v37 = vand.u32 4294901760, %v9002_v46 }
 0x4ed   : > { %v4609_v18 = vsub.f32 0.0, %v4512_v33  ;;  %v3907_v29 = vpop.f32.mrf.mxu2  ;;  %4413 = vmatmul.f32.gmra.mxu0 %v7825_v10 }
 0x4ee   : > { %v4113_v14 = vpop.f32.mrf.mxu3  ;;  %v3908_v62 = vadd.f32 %v3907_v29, %v7896_v54 }
 0x4ef   : > { %v4642_v0 = vmax.f32 %v4609_v18, 0.0  ;;  %v4114_v32 = vadd.f32 %v4113_v14, %v3903_v31 }
 0x4f0   : > { %v4515_v34 = vpop.f32.mrf.mxu1 }
 0x4f1   : > { %v4675_v13 = vmin.f32 %v4642_v0, 1.0  ;;  %v4351_v17 = vadd.f32 %v4350_v3, %v4114_v32 }
 0x4f2   : > { %3991 = vmatmul.f32.gmra.mxu2 %v7872_v16  ;;  %v4354_v53 = vpop.f32.mrf.mxu0 }
 0x4f3   : > { %4708 = vst [vmem:[%s8066_s20 + $0x58] sm:$0xff] %v4675_v13  ;;  %v4516_v8 = vadd.f32 %v4515_v34, %v4351_v17  ;;  %4214 = vmatmul.f32.gmra.mxu3 %v9004_v37  ;;  %4578 = vmatmul.f32.gmra.mxu1 %v7825_v10 }
 0x4f5   : > { %v4610_v58 = vsub.f32 0.0, %v4516_v8  ;;  %v3912_v63 = vpop.f32.mrf.mxu2  ;;  %4417 = vmatmul.f32.gmra.mxu0 %v7842_v51 }
 0x4f6   : > { %v4119_v59 = vpop.f32.mrf.mxu3  ;;  %v3913_v10 = vadd.f32 %v3912_v63, %v7909_v12 }
 0x4f7   : > { %v4643_v39 = vmax.f32 %v4610_v58, 0.0  ;;  %v4120_v6 = vadd.f32 %v4119_v59, %v3908_v62 }
 0x4f8   : > { %v4519_v26 = vpop.f32.mrf.mxu1 }
 0x4f9   : > { %v4676_v41 = vmin.f32 %v4643_v39, 1.0  ;;  %v4355_v55 = vadd.f32 %v4354_v53, %v4120_v6 }
 0x4fa   : > { %3996 = vmatmul.f32.gmra.mxu2 %v7889_v2  ;;  %v4358_v7 = vpop.f32.mrf.mxu0 }
 0x4fb   : > { %4709 = vst [vmem:[%s8066_s20 + $0x60] sm:$0xff] %v4676_v41  ;;  %v4520_v43 = vadd.f32 %v4519_v26, %v4355_v55  ;;  %4220 = vmatmul.f32.gmra.mxu3 %v3539_v19  ;;  %4582 = vmatmul.f32.gmra.mxu1 %v7842_v51 }
 0x4fd   : > { %v4611_v54 = vsub.f32 0.0, %v4520_v43  ;;  %v3917_v47 = vpop.f32.mrf.mxu2  ;;  %4421 = vmatmul.f32.gmra.mxu0 %v7859_v48 }
 0x4fe   : > { %v4125_v15 = vpop.f32.mrf.mxu3  ;;  %v3918_v51 = vadd.f32 %v3917_v47, %v7918_v45 }
 0x4ff   : > { %v4644_v30 = vmax.f32 %v4611_v54, 0.0  ;;  %v4126_v28 = vadd.f32 %v4125_v15, %v3913_v10 }
 0x500   : > { %v4523_v23 = vpop.f32.mrf.mxu1 }
 0x501   : > { %v4677_v20 = vmin.f32 %v4644_v30, 1.0  ;;  %v4359_v46 = vadd.f32 %v4358_v7, %v4126_v28 }
 0x502   : > { %4001 = vmatmul.f32.gmra.mxu2 %v7904_v49  ;;  %v4362_v3 = vpop.f32.mrf.mxu0 }
 0x503   : > { %4710 = vst [vmem:[%s8066_s20 + $0x68] sm:$0xff] %v4677_v20  ;;  %v4524_v16 = vadd.f32 %v4523_v23, %v4359_v46  ;;  %4226 = vmatmul.f32.gmra.mxu3 %v3547_v42  ;;  %4586 = vmatmul.f32.gmra.mxu1 %v7859_v48 }
 0x505   : > { %v4612_v19 = vsub.f32 0.0, %v4524_v16  ;;  %v3922_v12 = vpop.f32.mrf.mxu2  ;;  %4425 = vmatmul.f32.gmra.mxu0 %v7876_v9 }
 0x506   : > { %v4131_v33 = vpop.f32.mrf.mxu3  ;;  %v3923_v48 = vadd.f32 %v3922_v12, %v7924_v38 }
 0x507   : > { %v4645_v24 = vmax.f32 %v4612_v19, 0.0  ;;  %v4132_v31 = vadd.f32 %v4131_v33, %v3918_v51 }
 0x508   : > { %v4527_v18 = vpop.f32.mrf.mxu1 }
 0x509   : > { %v4678_v29 = vmin.f32 %v4645_v24, 1.0  ;;  %v4363_v14 = vadd.f32 %v4362_v3, %v4132_v31 }
 0x50a   : > { %v4366_v0 = vpop.f32.mrf.mxu0 }
 0x50b   : > { %4711 = vst [vmem:[%s8066_s20 + $0x70] sm:$0xff] %v4678_v29  ;;  %v4528_v32 = vadd.f32 %v4527_v18, %v4363_v14  ;;  %4232 = vmatmul.f32.gmra.mxu3 %v3555_v4  ;;  %4590 = vmatmul.f32.gmra.mxu1 %v7876_v9 }
 0x50d   : > { %v4613_v2 = vsub.f32 0.0, %v4528_v32  ;;  %v3927_v42 = vpop.f32.mrf.mxu2  ;;  %4429 = vmatmul.f32.gmra.mxu0 %v7893_v27 }
 0x50e   : > { %v4137_v45 = vpop.f32.mrf.mxu3  ;;  %v3928_v9 = vadd.f32 %v3927_v42, %v7932_v36 }
 0x50f   : > { %v4646_v34 = vmax.f32 %v4613_v2, 0.0  ;;  %v4138_v13 = vadd.f32 %v4137_v45, %v3923_v48 }
 0x510   : > { %v4531_v17 = vpop.f32.mrf.mxu1 }
 0x511   : > { %v4679_v53 = vmin.f32 %v4646_v34, 1.0  ;;  %v4367_v8 = vadd.f32 %v4366_v0, %v4138_v13 }
 0x512   : > { %v4370_v37 = vpop.f32.mrf.mxu0 }
 0x513   : > { %4712 = vst [vmem:[%s8066_s20 + $0x78] sm:$0xff] %v4679_v53  ;;  %v4532_v62 = vadd.f32 %v4531_v17, %v4367_v8  ;;  %4594 = vmatmul.f32.gmra.mxu1 %v7893_v27 }
 0x515   : > { %v4614_v49 = vsub.f32 0.0, %v4532_v62  ;;  %v3932_v4 = vpop.f32.mrf.mxu2 }
 0x516   : > { %v4143_v38 = vpop.f32.mrf.mxu3  ;;  %v3933_v55 = vadd.f32 %v3932_v4, %v7940_v56 }
 0x517   : > { %v4647_v58 = vmax.f32 %v4614_v49, 0.0  ;;  %v4144_v63 = vadd.f32 %v4143_v38, %v3928_v9 }
 0x518   : > { %v4535_v59 = vpop.f32.mrf.mxu1 }
 0x519   : > { %v4680_v39 = vmin.f32 %v4647_v58, 1.0  ;;  %v4371_v6 = vadd.f32 %v4370_v37, %v4144_v63 }
 0x51a   : > { %v4374_v26 = vpop.f32.mrf.mxu0 }
 0x51b   : > { %4713 = vst [vmem:[%s8066_s20 + $0x80] sm:$0xff] %v4680_v39  ;;  %v4536_v41 = vadd.f32 %v4535_v59, %v4371_v6 }
 0x51d   : > { %v4615_v7 = vsub.f32 0.0, %v4536_v41  ;;  %v3937_v43 = vpop.f32.mrf.mxu2 }
 0x51e   : > { %v4149_v10 = vpop.f32.mrf.mxu3  ;;  %v3938_v23 = vadd.f32 %v3937_v43, %v7948_v61 }
 0x51f   : > { %v4648_v27 = vmax.f32 %v4615_v7, 0.0  ;;  %v4150_v54 = vadd.f32 %v4149_v10, %v3933_v55 }
 0x520   : > { %v4539_v36 = vpop.f32.mrf.mxu1 }
 0x521   : > { %v4681_v47 = vmin.f32 %v4648_v27, 1.0  ;;  %v4375_v15 = vadd.f32 %v4374_v26, %v4150_v54 }
 0x522   : > { %v4378_v30 = vpop.f32.mrf.mxu0 }
 0x523   : > { %4714 = vst [vmem:[%s8066_s20 + $0x88] sm:$0xff] %v4681_v47  ;;  %v4540_v28 = vadd.f32 %v4539_v36, %v4375_v15 }
 0x525   : > { %v4616_v20 = vsub.f32 0.0, %v4540_v28  ;;  %v3942_v46 = vpop.f32.mrf.mxu2 }
 0x526   : > { %v4155_v3 = vpop.f32.mrf.mxu3  ;;  %v3943_v31 = vadd.f32 %v3942_v46, %v7956_v52 }
 0x527   : > { %v4649_v16 = vmax.f32 %v4616_v20, 0.0  ;;  %v4156_v51 = vadd.f32 %v4155_v3, %v3938_v23 }
 0x528   : > { %v4543_v56 = vpop.f32.mrf.mxu1 }
 0x529   : > { %v4682_v19 = vmin.f32 %v4649_v16, 1.0  ;;  %v4379_v12 = vadd.f32 %v4378_v30, %v4156_v51 }
 0x52a   : > { %v4382_v33 = vpop.f32.mrf.mxu0 }
 0x52b   : > { %4715 = vst [vmem:[%s8066_s20 + $0x90] sm:$0xff] %v4682_v19  ;;  %v4544_v24 = vadd.f32 %v4543_v56, %v4379_v12 }
 0x52d   : > { %v4617_v18 = vsub.f32 0.0, %v4544_v24  ;;  %v3947_v29 = vpop.f32.mrf.mxu2 }
 0x52e   : > { %v4161_v14 = vpop.f32.mrf.mxu3  ;;  %v3948_v34 = vadd.f32 %v3947_v29, %v7964_v57 }
 0x52f   : > { %v4650_v0 = vmax.f32 %v4617_v18, 0.0  ;;  %v4162_v32 = vadd.f32 %v4161_v14, %v3943_v31 }
 0x530   : > { %v4547_v61 = vpop.f32.mrf.mxu1 }
 0x531   : > { %v4683_v48 = vmin.f32 %v4650_v0, 1.0  ;;  %v4383_v2 = vadd.f32 %v4382_v33, %v4162_v32 }
 0x532   : > { %v4386_v42 = vpop.f32.mrf.mxu0 }
 0x533   : > { %4716 = vst [vmem:[%s8066_s20 + $0x98] sm:$0xff] %v4683_v48  ;;  %v4548_v45 = vadd.f32 %v4547_v61, %v4383_v2 }
 0x535   : > { %v4618_v13 = vsub.f32 0.0, %v4548_v45  ;;  %v3952_v17 = vpop.f32.mrf.mxu2 }
 0x536   : > { %v4167_v53 = vpop.f32.mrf.mxu3  ;;  %v3953_v38 = vadd.f32 %v3952_v17, %v7972_v22 }
 0x537   : > { %v4651_v8 = vmax.f32 %v4618_v13, 0.0  ;;  %v4168_v37 = vadd.f32 %v4167_v53, %v3948_v34 }
 0x538   : > { %v4551_v52 = vpop.f32.mrf.mxu1 }
 0x539   : > { %v4684_v62 = vmin.f32 %v4651_v8, 1.0  ;;  %v4387_v9 = vadd.f32 %v4386_v42, %v4168_v37 }
 0x53a   : > { %v4390_v49 = vpop.f32.mrf.mxu0 }
 0x53b   : > { %4717 = vst [vmem:[%s8066_s20 + $0xa0] sm:$0xff] %v4684_v62  ;;  %v4552_v4 = vadd.f32 %v4551_v52, %v4387_v9 }
 0x53d   : > { %v4619_v58 = vsub.f32 0.0, %v4552_v4  ;;  %v3957_v63 = vpop.f32.mrf.mxu2 }
 0x53e   : > { %v4173_v59 = vpop.f32.mrf.mxu3  ;;  %v3958_v43 = vadd.f32 %v3957_v63, %v7980_v5 }
 0x53f   : > { %v4652_v39 = vmax.f32 %v4619_v58, 0.0  ;;  %v4174_v6 = vadd.f32 %v4173_v59, %v3953_v38 }
 0x540   : > { %v4555_v57 = vpop.f32.mrf.mxu1 }
 0x541   : > { %v4685_v26 = vmin.f32 %v4652_v39, 1.0  ;;  %v4391_v41 = vadd.f32 %v4390_v49, %v4174_v6 }
 0x542   : > { %v4394_v55 = vpop.f32.mrf.mxu0 }
 0x543   : > { %4718 = vst [vmem:[%s8066_s20 + $0xa8] sm:$0xff] %v4685_v26  ;;  %v4556_v7 = vadd.f32 %v4555_v57, %v4391_v41 }
 0x545   : > { %v4620_v10 = vsub.f32 0.0, %v4556_v7  ;;  %v3962_v27 = vpop.f32.mrf.mxu2 }
 0x546   : > { %v4179_v54 = vpop.f32.mrf.mxu3  ;;  %v3963_v20 = vadd.f32 %v3962_v27, %v7988_v25 }
 0x547   : > { %v4653_v36 = vmax.f32 %v4620_v10, 0.0  ;;  %v4180_v47 = vadd.f32 %v4179_v54, %v3958_v43 }
 0x548   : > { %v4559_v22 = vpop.f32.mrf.mxu1 }
 0x549   : > { %v4686_v15 = vmin.f32 %v4653_v36, 1.0  ;;  %v4395_v30 = vadd.f32 %v4394_v55, %v4180_v47 }
 0x54a   : > { %v4398_v28 = vpop.f32.mrf.mxu0 }
 0x54b   : > { %4719 = vst [vmem:[%s8066_s20 + $0xb0] sm:$0xff] %v4686_v15  ;;  %v4560_v23 = vadd.f32 %v4559_v22, %v4395_v30 }
 0x54d   : > { %v4621_v46 = vsub.f32 0.0, %v4560_v23  ;;  %v3967_v3 = vpop.f32.mrf.mxu2 }
 0x54e   : > { %v4185_v16 = vpop.f32.mrf.mxu3  ;;  %v3968_v31 = vadd.f32 %v3967_v3, %v7996_v35 }
 0x54f   : > { %v4654_v51 = vmax.f32 %v4621_v46, 0.0  ;;  %v4186_v56 = vadd.f32 %v4185_v16, %v3963_v20 }
 0x550   : > { %v4563_v5 = vpop.f32.mrf.mxu1 }
 0x551   : > { %v4687_v19 = vmin.f32 %v4654_v51, 1.0  ;;  %v4399_v12 = vadd.f32 %v4398_v28, %v4186_v56 }
 0x552   : > { %v4402_v33 = vpop.f32.mrf.mxu0 }
 0x553   : > { %4720 = vst [vmem:[%s8066_s20 + $0xb8] sm:$0xff] %v4687_v19  ;;  %v4564_v24 = vadd.f32 %v4563_v5, %v4399_v12 }
 0x555   : > { %v4622_v18 = vsub.f32 0.0, %v4564_v24  ;;  %v3972_v29 = vpop.f32.mrf.mxu2 }
 0x556   : > { %v4191_v14 = vpop.f32.mrf.mxu3  ;;  %v3973_v45 = vadd.f32 %v3972_v29, %v8004_v1 }
 0x557   : > { %v4655_v0 = vmax.f32 %v4622_v18, 0.0  ;;  %v4192_v32 = vadd.f32 %v4191_v14, %v3968_v31 }
 0x558   : > { %v4567_v25 = vpop.f32.mrf.mxu1 }
 0x559   : > { %v4688_v61 = vmin.f32 %v4655_v0, 1.0  ;;  %v4403_v48 = vadd.f32 %v4402_v33, %v4192_v32 }
 0x55a   : > { %v4406_v2 = vpop.f32.mrf.mxu0 }
 0x55b   : > { %4721 = vst [vmem:[%s8066_s20 + $0xc0] sm:$0xff] %v4688_v61  ;;  %v4568_v42 = vadd.f32 %v4567_v25, %v4403_v48 }
 0x55d   : > { %v4623_v34 = vsub.f32 0.0, %v4568_v42  ;;  %v3977_v13 = vpop.f32.mrf.mxu2 }
 0x55e   : > { %v4197_v17 = vpop.f32.mrf.mxu3  ;;  %v3978_v49 = vadd.f32 %v3977_v13, %v8012_v60 }
 0x55f   : > { %v4656_v53 = vmax.f32 %v4623_v34, 0.0  ;;  %v4198_v8 = vadd.f32 %v4197_v17, %v3973_v45 }
 0x560   : > { %v4571_v35 = vpop.f32.mrf.mxu1 }
 0x561   : > { %v4689_v37 = vmin.f32 %v4656_v53, 1.0  ;;  %v4407_v52 = vadd.f32 %v4406_v2, %v4198_v8 }
 0x562   : > { %v4410_v62 = vpop.f32.mrf.mxu0 }
 0x563   : > { %4722 = vst [vmem:[%s8066_s20 + $0xc8] sm:$0xff] %v4689_v37  ;;  %v4572_v9 = vadd.f32 %v4571_v35, %v4407_v52 }
 0x565   : > { %v4624_v4 = vsub.f32 0.0, %v4572_v9  ;;  %v3982_v38 = vpop.f32.mrf.mxu2 }
 0x566   : > { %v4203_v58 = vpop.f32.mrf.mxu3  ;;  %v3983_v41 = vadd.f32 %v3982_v38, %v8020_v11 }
 0x567   : > { %v4657_v63 = vmax.f32 %v4624_v4, 0.0  ;;  %v4204_v59 = vadd.f32 %v4203_v58, %v3978_v49 }
 0x568   : > { %v4575_v1 = vpop.f32.mrf.mxu1 }
 0x569   : > { %v4690_v39 = vmin.f32 %v4657_v63, 1.0  ;;  %v4411_v6 = vadd.f32 %v4410_v62, %v4204_v59 }
 0x56a   : > { %v4414_v57 = vpop.f32.mrf.mxu0 }
 0x56b   : > { %4723 = vst [vmem:[%s8066_s20 + $0xd0] sm:$0xff] %v4690_v39  ;;  %v4576_v26 = vadd.f32 %v4575_v1, %v4411_v6 }
 0x56d   : > { %v4625_v55 = vsub.f32 0.0, %v4576_v26  ;;  %v3987_v7 = vpop.f32.mrf.mxu2 }
 0x56e   : > { %v4209_v43 = vpop.f32.mrf.mxu3  ;;  %v3988_v15 = vadd.f32 %v3987_v7, %v8028_v50 }
 0x56f   : > { %v4658_v10 = vmax.f32 %v4625_v55, 0.0  ;;  %v4210_v27 = vadd.f32 %v4209_v43, %v3983_v41 }
 0x570   : > { %v4579_v60 = vpop.f32.mrf.mxu1 }
 0x571   : > { %v4691_v54 = vmin.f32 %v4658_v10, 1.0  ;;  %v4415_v36 = vadd.f32 %v4414_v57, %v4210_v27 }
 0x572   : > { %v4418_v47 = vpop.f32.mrf.mxu0 }
 0x573   : > { %4724 = vst [vmem:[%s8066_s20 + $0xd8] sm:$0xff] %v4691_v54  ;;  %v4580_v22 = vadd.f32 %v4579_v60, %v4415_v36 }
 0x575   : > { %v4626_v30 = vsub.f32 0.0, %v4580_v22  ;;  %v3992_v28 = vpop.f32.mrf.mxu2 }
 0x576   : > { %v4215_v23 = vpop.f32.mrf.mxu3  ;;  %v3993_v5 = vadd.f32 %v3992_v28, %v8036_v40 }
 0x577   : > { %v4659_v20 = vmax.f32 %v4626_v30, 0.0  ;;  %v4216_v46 = vadd.f32 %v4215_v23, %v3988_v15 }
 0x578   : > { %v4583_v11 = vpop.f32.mrf.mxu1 }
 0x579   : > { %v4692_v3 = vmin.f32 %v4659_v20, 1.0  ;;  %v4419_v16 = vadd.f32 %v4418_v47, %v4216_v46 }
 0x57a   : > { %v4422_v51 = vpop.f32.mrf.mxu0 }
 0x57b   : > { %4725 = vst [vmem:[%s8066_s20 + $0xe0] sm:$0xff] %v4692_v3  ;;  %v4584_v56 = vadd.f32 %v4583_v11, %v4419_v16 }
 0x57d   : > { %v4627_v19 = vsub.f32 0.0, %v4584_v56  ;;  %v3997_v31 = vpop.f32.mrf.mxu2 }
 0x57e   : > { %v4221_v12 = vpop.f32.mrf.mxu3  ;;  %v3998_v32 = vadd.f32 %v3997_v31, %v8044_v21 }
 0x57f   : > { %v4660_v33 = vmax.f32 %v4627_v19, 0.0  ;;  %v4222_v24 = vadd.f32 %v4221_v12, %v3993_v5 }
 0x580   : > { %v4587_v50 = vpop.f32.mrf.mxu1 }
 0x581   : > { %v4693_v18 = vmin.f32 %v4660_v33, 1.0  ;;  %v4423_v29 = vadd.f32 %v4422_v51, %v4222_v24 }
 0x582   : > { %v4426_v0 = vpop.f32.mrf.mxu0 }
 0x583   : > { %4726 = vst [vmem:[%s8066_s20 + $0xe8] sm:$0xff] %v4693_v18  ;;  %v4588_v14 = vadd.f32 %v4587_v50, %v4423_v29 }
 0x585   : > { %v4628_v25 = vsub.f32 0.0, %v4588_v14  ;;  %v4002_v34 = vpop.f32.mrf.mxu2 }
 0x586   : > { %v4227_v61 = vpop.f32.mrf.mxu3  ;;  %v4003_v17 = vadd.f32 %v4002_v34, %v8051_v44 }
 0x587   : > { %v4661_v48 = vmax.f32 %v4628_v25, 0.0  ;;  %v4228_v2 = vadd.f32 %v4227_v61, %v3998_v32 }
 0x588   : > { %v4591_v40 = vpop.f32.mrf.mxu1 }
 0x589   : > { %v4694_v42 = vmin.f32 %v4661_v48, 1.0  ;;  %v4427_v45 = vadd.f32 %v4426_v0, %v4228_v2 }
 0x58a   : > { %v4430_v35 = vpop.f32.mrf.mxu0 }
 0x58b   : > { %4727 = vst [vmem:[%s8066_s20 + $0xf0] sm:$0xff] %v4694_v42  ;;  %v4592_v13 = vadd.f32 %v4591_v40, %v4427_v45 }
 0x58d   : > { %v4629_v53 = vsub.f32 0.0, %v4592_v13 }
 0x58e   : > { %v4233_v8 = vpop.f32.mrf.mxu3 }
 0x58f   : > { %v4662_v21 = vmax.f32 %v4629_v53, 0.0  ;;  %v4234_v37 = vadd.f32 %v4233_v8, %v4003_v17 }
 0x590   : > { %v4595_v52 = vpop.f32.mrf.mxu1 }
 0x591   : > { %v4695_v62 = vmin.f32 %v4662_v21, 1.0  ;;  %v4431_v9 = vadd.f32 %v4430_v35, %v4234_v37 }
 0x593   : > { %4728 = vst [vmem:[%s8066_s20 + $0xf8] sm:$0xff] %v4695_v62  ;;  %v4596_v49 = vadd.f32 %v4595_v52, %v4431_v9 }
 0x595   : > { %v4630_v4 = vsub.f32 0.0, %v4596_v49 }
 0x597   : > { %v4663_v44 = vmax.f32 %v4630_v4, 0.0 }
 0x599   : > { %v4696_v38 = vmin.f32 %v4663_v44, 1.0 }
 0x59b   : > { %4729 = vst [vmem:[%s8066_s20 + $0x100] sm:$0xff] %v4696_v38 }
 0x59c   : > { %5088 = shalt.err (!%p5085_p2)
}
 0x59d   : > { %s5142_s5 = smov 128   ;;  %s5143_s29 = smov 8  }
 0x59e   : > { %4909 = dma.vmem_to_hbm [thread:$0]  (%p5227_p3), %s4744_s10, 4224, %s4746_s17, %s4731_s16, %s5142_s5, %s5142_s5, %s5143_s29  }
 0x59f PF: > { %s4760_s9 = sand.u32 1, %s5123_s12   ;;  %p9005_p12 = scmp.ge.s32.totalorder %s5135_s15, 2 }
 0x5a0   : > { %s4761_s23 = scalar_lea.sflag [#allocation4], %s4760_s9 }
 0x5a1   : > { %p4923_p13 = pnand %p9005_p12, %p5199_p6 }
 0x5a3   : > { %p4924_p0 = pneg %p4923_p13 }
 0x5a5   : > { %5118 = dma.done.wait (%p4924_p0), %s4761_s23, 4224  }
 0x5a6   : > { %5120 = vsyncadd (%p4924_p0), %s4761_s23, 4294963072  ;;  %s9006_s6 = sld [smem:[#allocation13_spill]]  ;;  %p19_p5 = scmp.ge.s32.totalorder %s5217_s28, 4  }
 0x5a7   : > { %s9007_s12 = smov %s5127_s13  ;;  %s9008_s13 = smov %s5131_s14 }
 0x5a8   : > { %s9010_s15 = smov %s5217_s28  ;;  %21 = sbr.rel (!%p19_p5) target bundleno = 9 (0x9), region = 94 }
 0x5ac   : > { %s9009_s14 = smov %s9006_s6 }
 0x5ad   :  { %4767 = vsyncpa [#allocation3], 1 }
 0x5ae   :  { %4769 = vsyncpa [#allocation3 + $0x1], 1 }
 0x5af   :  { %4770 = vsyncpa [#allocation6], 1 }
 0x5b0   :  { %4772 = vsyncpa [#allocation6 + $0x1], 1 }
 0x5b1   :  { %4773 = vsyncpa [#allocation4], 1 }
 0x5b2   :  { %4775 = vsyncpa [#allocation4 + $0x1], 1 }

</bundles_post_ra>
